<compile_context>
chip_gen: v6e
topology: v6e:2x2x1
jax: 0.10.0
libtpu: 0.0.40
codegen_flags: <defaults>
</compile_context>

<pallas_src>
import jax
import jax.numpy as jnp
from jax import lax
from jax.experimental import pallas as pl
from jax.experimental.pallas import tpu as pltpu

EPS = 1e-5      # nn.BatchNorm2d default eps
LANE = 128      # TPU lane width; channel dims padded to a multiple of this


# ------------------------------ small helpers -------------------------------

def _round_up(c, m=LANE):
    return ((c + m - 1) // m) * m


def _pad_axis(x, axis, size):
    pad = [(0, 0)] * x.ndim
    pad[axis] = (0, size - x.shape[axis])
    return jnp.pad(x, pad)


def _fold_bn(gamma, beta, mean, var):
    scale = gamma * lax.rsqrt(var + EPS)
    bias = beta - mean * scale
    return scale, bias


def _phase_decompose(x_pad, ds):
    """(N, Hp, Wp, C) zero-padded input -> (N*ds*ds, Hq, Wq, C) phase layout
    so that a stride-ds 3x3 tap becomes an unstrided static slice."""
    N, Hp, Wp, C = x_pad.shape
    Hq = -(-Hp // ds)
    Wq = -(-Wp // ds)
    x = jnp.pad(x_pad, ((0, 0), (0, Hq * ds - Hp), (0, Wq * ds - Wp), (0, 0)))
    x = x.reshape(N, Hq, ds, Wq, ds, C)
    x = jnp.transpose(x, (0, 2, 4, 1, 3, 5))          # (N, ds, ds, Hq, Wq, C)
    return x.reshape(N * ds * ds, Hq, Wq, C)


# ------------------------------ Pallas kernel --------------------------------

def _make_block_kernel(ds, Ho, Wo, has_proj):
    """Fused ResNetBasicBlock: conv3x3(ds)+BN+ReLU -> conv3x3(1)+BN,
    shortcut (1x1 conv+BN or identity), residual add, final ReLU."""
    taps = [(ky, kx) for ky in range(3) for kx in range(3)]
    M = Ho * Wo

    def kernel(*refs):
        if has_proj:
            (x_ref, w1_ref, b1_ref, w2_ref, b2_ref,
             ws_ref, bs_ref, o_ref, y1_scr) = refs
        else:
            (x_ref, w1_ref, b1_ref, w2_ref, b2_ref, o_ref, y1_scr) = refs
        cp_out = o_ref.shape[-1]

        # --- conv1: 3x3 stride-ds (BN scale folded into w1), bias, ReLU -----
        acc = jnp.zeros((M, cp_out), jnp.float32)
        for t, (ky, kx) in enumerate(taps):
            ph = (ky % ds) * ds + (kx % ds)
            u0, v0 = ky // ds, kx // ds
            xt = x_ref[ph, u0:u0 + Ho, v0:v0 + Wo, :].reshape(M, -1)
            acc = acc + jnp.dot(xt.astype(jnp.bfloat16), w1_ref[t],
                                preferred_element_type=jnp.float32)
        y1 = jnp.maximum(acc + b1_ref[...], 0.0)

        # --- stage y1 with a 1-pixel zero halo in VMEM (stays on chip) ------
        y1_scr[...] = jnp.zeros_like(y1_scr)
        y1_scr[1:Ho + 1, 1:Wo + 1, :] = y1.reshape(Ho, Wo, cp_out)

        # --- conv2: 3x3 stride-1 (BN folded into w2 / b2) -------------------
        acc2 = jnp.zeros((M, cp_out), jnp.float32)
        for t, (ky, kx) in enumerate(taps):
            yt = y1_scr[ky:ky + Ho, kx:kx + Wo, :].reshape(M, -1)
            acc2 = acc2 + jnp.dot(yt.astype(jnp.bfloat16), w2_ref[t],
                                  preferred_element_type=jnp.float32)
        main = acc2 + b2_ref[...]

        # --- shortcut + residual add + ReLU ---------------------------------
        ph_r = (1 % ds) * ds + (1 % ds)
        r0 = 1 // ds
        xres = x_ref[ph_r, r0:r0 + Ho, r0:r0 + Wo, :].reshape(M, -1)
        if has_proj:        # projection: 1x1 conv (stride ds) + BN
            short = jnp.dot(xres.astype(jnp.bfloat16), ws_ref[...],
                            preferred_element_type=jnp.float32) + bs_ref[...]
        else:               # identity (Cin == Cout); padded channels are zero
            short = xres
        o_ref[0] = jnp.maximum(main + short, 0.0).reshape(Ho, Wo, cp_out)

    return kernel


# ------------------------------ block wrapper --------------------------------

def _block_forward(x, bp):
    """x: (N, H, W, Cp_in) NHWC, channels already zero-padded to LANE."""
    N, H, W, Cp_in = x.shape
    ds = bp['ds']
    Ho = (H - 1) // ds + 1
    Wo = (W - 1) // ds + 1
    Cp_out = bp['w1'].shape[-1]
    dsq = ds * ds

    x_pad = jnp.pad(x, ((0, 0), (1, 1), (1, 1), (0, 0)))
    x_ph = _phase_decompose(x_pad, ds)                  # (N*dsq, Hq, Wq, Cp_in)
    _, Hq, Wq, _ = x_ph.shape

    kernel = _make_block_kernel(ds, Ho, Wo, bp['has_proj'])

    in_specs = [
        pl.BlockSpec((dsq, Hq, Wq, Cp_in), lambda i: (i, 0, 0, 0)),
        pl.BlockSpec((9, Cp_in, Cp_out), lambda i: (0, 0, 0)),
        pl.BlockSpec((1, Cp_out), lambda i: (0, 0)),
        pl.BlockSpec((9, Cp_out, Cp_out), lambda i: (0, 0, 0)),
        pl.BlockSpec((1, Cp_out), lambda i: (0, 0)),
    ]
    args = [x_ph, bp['w1'], bp['b1'], bp['w2'], bp['b2']]
    if bp['has_proj']:
        in_specs += [pl.BlockSpec((Cp_in, Cp_out), lambda i: (0, 0)),
                     pl.BlockSpec((1, Cp_out), lambda i: (0, 0))]
        args += [bp['ws'], bp['bs']]

    return pl.pallas_call(
        kernel,
        out_shape=jax.ShapeDtypeStruct((N, Ho, Wo, Cp_out), jnp.float32),
        grid_spec=pltpu.PrefetchScalarGridSpec(
            num_scalar_prefetch=0,
            grid=(N,),
            in_specs=in_specs,
            out_specs=pl.BlockSpec((1, Ho, Wo, Cp_out), lambda i: (i, 0, 0, 0)),
            scratch_shapes=[pltpu.VMEM((Ho + 2, Wo + 2, Cp_out), jnp.float32)]),
        compiler_params=pltpu.CompilerParams(
            dimension_semantics=("parallel",),
            vmem_limit_bytes=32 * 1024 * 1024),
    )(*args)


# --------------------------- parameter preparation ---------------------------

def prepare_block_params(p):
    """Fold BN into weights/bias, pad channels to LANE, lay out taps, cast bf16."""
    ds = p['downsampling']
    co, ci, _, _ = p['w1'].shape
    cp_in, cp_out = _round_up(ci), _round_up(co)

    def conv_w(w_oihw, scale, cpi, cpo):
        o_, i_, kh, kw = w_oihw.shape
        w = w_oihw * scale[:, None, None, None]                 # fold BN scale
        w = jnp.transpose(w, (2, 3, 1, 0)).reshape(kh * kw, i_, o_)
        w = _pad_axis(_pad_axis(w, 1, cpi), 2, cpo)
        return w.astype(jnp.bfloat16)

    s1, b1 = _fold_bn(*p['bn1'])
    s2, b2 = _fold_bn(*p['bn2'])
    bp = {
        'ds': ds,
        'has_proj': 'ws' in p,
        'cout': co,
        'w1': conv_w(p['w1'], s1, cp_in, cp_out),
        'b1': _pad_axis(b1.reshape(1, -1), 1, cp_out).astype(jnp.float32),
        'w2': conv_w(p['w2'], s2, cp_out, cp_out),
        'b2': _pad_axis(b2.reshape(1, -1), 1, cp_out).astype(jnp.float32),
    }
    if 'ws' in p:
        ss, bs = _fold_bn(*p['bns'])
        bp['ws'] = conv_w(p['ws'], ss, cp_in, cp_out).reshape(cp_in, cp_out)
        bp['bs'] = _pad_axis(bs.reshape(1, -1), 1, cp_out).astype(jnp.float32)
    return bp


def prepare_layer_params(params):
    return [prepare_block_params(p) for p in params]


def resnet_layer_forward(x_nchw, prepped):
    x = jnp.transpose(x_nchw, (0, 2, 3, 1))                 # NCHW -> NHWC
    x = _pad_axis(x, 3, _round_up(x.shape[-1]))             # lane-pad channels
    for bp in prepped:
        x = _block_forward(x, bp)
    x = x[..., :prepped[-1]['cout']]                        # drop channel pad
    return jnp.transpose(x, (0, 3, 1, 2))                   # NHWC -> NCHW


# --------------------------- deterministic params ----------------------------

def _bn_params(key, c):
    k1, k2, k3, k4 = jax.random.split(key, 4)
    gamma = 0.5 + jax.random.uniform(k1, (c,), jnp.float32)
    beta = 0.1 * jax.random.normal(k2, (c,), jnp.float32)
    mean = 0.1 * jax.random.normal(k3, (c,), jnp.float32)
    var = 0.5 + jax.random.uniform(k4, (c,), jnp.float32)
    return gamma, beta, mean, var


def init_resnet_layer_params(key, in_channels, out_channels, n=1):
    downsampling = 2 if in_channels != out_channels else 1
    params = []
    cin = in_channels
    for b in range(n):
        key, kw1, kb1, kw2, kb2, kws, kbs = jax.random.split(key, 7)
        ds = downsampling if b == 0 else 1
        p = {
            'downsampling': ds,
            'w1': 0.1 * jax.random.normal(kw1, (out_channels, cin, 3, 3), jnp.float32),
            'bn1': _bn_params(kb1, out_channels),
            'w2': 0.1 * jax.random.normal(kw2, (out_channels, out_channels, 3, 3), jnp.float32),
            'bn2': _bn_params(kb2, out_channels),
        }
        if cin != out_channels:  # should_apply_shortcut (expansion=1)
            p['ws'] = 0.1 * jax.random.normal(kws, (out_channels, cin, 1, 1), jnp.float32)
            p['bns'] = _bn_params(kbs, out_channels)
        params.append(p)
        cin = out_channels
    return params


# ------------------------------ JAX reference --------------------------------
# Matches the kernel's numerics: eval-mode BN folded, bf16 conv inputs/weights
# with f32 accumulation (native TPU MXU precision).

def _ref_block_forward(x, p):
    ds = p['downsampling']

    def conv(x, w_oihw, scale, stride, pad):
        w = w_oihw * scale[:, None, None, None]
        w = jnp.transpose(w, (2, 3, 1, 0))                   # HWIO
        return lax.conv_general_dilated(
            x.astype(jnp.bfloat16), w.astype(jnp.bfloat16),
            (stride, stride), ((pad, pad), (pad, pad)),
            dimension_numbers=('NHWC', 'HWIO', 'NHWC'),
            preferred_element_type=jnp.float32)

    s1, b1 = _fold_bn(*p['bn1'])
    s2, b2 = _fold_bn(*p['bn2'])
    y = jax.nn.relu(conv(x, p['w1'], s1, ds, 1) + b1.reshape(1, 1, 1, -1))
    y = conv(y, p['w2'], s2, 1, 1) + b2.reshape(1, 1, 1, -1)
    if 'ws' in p:
        ss, bs = _fold_bn(*p['bns'])
        r = conv(x, p['ws'], ss, ds, 0) + bs.reshape(1, 1, 1, -1)
    else:
        r = x
    return jax.nn.relu(y + r)


# ----------------------------------- main -------------------------------------

if __name__ == "__main__":
    key = jax.random.PRNGKey(0)
    k_x, k_p = jax.random.split(key)

    # ResNetLayer(in_channels=4, out_channels=8, n=2): block 0 downsamples
    # (stride 2, projection shortcut), block 1 keeps shape (identity shortcut).
    N, Cin, Cout, H, W, n_blocks = 2, 4, 8, 16, 16, 2
    x_nchw = jax.random.normal(k_x, (N, Cin, H, W), jnp.float32)
    params = init_resnet_layer_params(k_p, Cin, Cout, n=n_blocks)

    prepped = prepare_layer_params(params)          # folded/padded once, not per call
    fwd = jax.jit(lambda x: resnet_layer_forward(x, prepped))
    out = jax.block_until_ready(fwd(x_nchw))

    # reference (eval-mode BN, bf16-MXU-matched numerics)
    xr = jnp.transpose(x_nchw, (0, 2, 3, 1))
    for p in params:
        xr = _ref_block_forward(xr, p)
    ref = jnp.transpose(xr, (0, 3, 1, 2))

    assert out.shape == (N, Cout, H // 2, W // 2), out.shape
    max_err = float(jnp.max(jnp.abs(out - ref)))
    assert jnp.allclose(out, ref, atol=2e-2, rtol=2e-2), max_err

    print("KERNEL_OK")
</pallas_src>

<mosaic_0001>
module attributes {stable_mosaic.version = 11 : i64} {
  func.func @kernel(%arg0: i32, %arg1: memref<4x9x9x128xf32, #tpu.memory_space<vmem>>, %arg2: memref<9x128x128xbf16, #tpu.memory_space<vmem>>, %arg3: memref<1x128xf32, #tpu.memory_space<vmem>>, %arg4: memref<9x128x128xbf16, #tpu.memory_space<vmem>>, %arg5: memref<1x128xf32, #tpu.memory_space<vmem>>, %arg6: memref<128x128xbf16, #tpu.memory_space<vmem>>, %arg7: memref<1x128xf32, #tpu.memory_space<vmem>>, %arg8: memref<1x8x8x128xf32, #tpu.memory_space<vmem>>, %arg9: memref<10x10x128xf32, #tpu.memory_space<vmem>>) attributes {dimension_semantics = [#tpu.dimension_semantics<parallel>], iteration_bounds = array<i64: 2>, scalar_prefetch = 0 : i64, scratch_operands = 1 : i64, tpu.core_type = #tpu.core_type<tc>, window_params = [{transform_indices = @transform_0, window_bounds = array<i64: 4, 9, 9, 128>}, {pipeline_mode = #tpu.pipeline_mode<synchronous>, transform_indices = @transform_1, window_bounds = array<i64: 9, 128, 128>}, {pipeline_mode = #tpu.pipeline_mode<synchronous>, transform_indices = @transform_2, window_bounds = array<i64: 1, 128>}, {pipeline_mode = #tpu.pipeline_mode<synchronous>, transform_indices = @transform_3, window_bounds = array<i64: 9, 128, 128>}, {pipeline_mode = #tpu.pipeline_mode<synchronous>, transform_indices = @transform_4, window_bounds = array<i64: 1, 128>}, {pipeline_mode = #tpu.pipeline_mode<synchronous>, transform_indices = @transform_5, window_bounds = array<i64: 128, 128>}, {pipeline_mode = #tpu.pipeline_mode<synchronous>, transform_indices = @transform_6, window_bounds = array<i64: 1, 128>}, {transform_indices = @transform_7, window_bounds = array<i64: 1, 8, 8, 128>}]} {
    %cst = arith.constant 0.000000e+00 : f32
    %0 = vector.broadcast %cst : f32 to vector<64x128xf32>
    %c0 = arith.constant 0 : index
    %c0_0 = arith.constant 0 : index
    %c0_1 = arith.constant 0 : index
    %c0_2 = arith.constant 0 : index
    %1 = vector.load %arg1[%c0, %c0_0, %c0_1, %c0_2] : memref<4x9x9x128xf32, #tpu.memory_space<vmem>>, vector<1x8x8x128xf32>
    %2 = vector.shape_cast %1 : vector<1x8x8x128xf32> to vector<8x8x128xf32>
    %3 = vector.shape_cast %2 : vector<8x8x128xf32> to vector<64x128xf32>
    %4 = arith.truncf %3 : vector<64x128xf32> to vector<64x128xbf16>
    %c0_3 = arith.constant 0 : index
    %c0_4 = arith.constant 0 : index
    %c0_5 = arith.constant 0 : index
    %5 = vector.load %arg2[%c0_3, %c0_4, %c0_5] : memref<9x128x128xbf16, #tpu.memory_space<vmem>>, vector<1x128x128xbf16>
    %6 = vector.shape_cast %5 : vector<1x128x128xbf16> to vector<128x128xbf16>
    %cst_6 = arith.constant dense<0.000000e+00> : vector<64x128xf32>
    %7 = tpu.matmul %4, %6, %cst_6 {dimension_numbers = #tpu.dot_dimension_numbers<[1], [0], [0], [1], [0, 0, 1, 1], [], []>} : vector<64x128xbf16>, vector<128x128xbf16>, vector<64x128xf32> -> vector<64x128xf32>
    %8 = arith.addf %0, %7 : vector<64x128xf32>
    %c1 = arith.constant 1 : index
    %c0_7 = arith.constant 0 : index
    %c0_8 = arith.constant 0 : index
    %c0_9 = arith.constant 0 : index
    %9 = vector.load %arg1[%c1, %c0_7, %c0_8, %c0_9] : memref<4x9x9x128xf32, #tpu.memory_space<vmem>>, vector<1x8x8x128xf32>
    %10 = vector.shape_cast %9 : vector<1x8x8x128xf32> to vector<8x8x128xf32>
    %11 = vector.shape_cast %10 : vector<8x8x128xf32> to vector<64x128xf32>
    %12 = arith.truncf %11 : vector<64x128xf32> to vector<64x128xbf16>
    %c1_10 = arith.constant 1 : index
    %c0_11 = arith.constant 0 : index
    %c0_12 = arith.constant 0 : index
    %13 = vector.load %arg2[%c1_10, %c0_11, %c0_12] : memref<9x128x128xbf16, #tpu.memory_space<vmem>>, vector<1x128x128xbf16>
    %14 = vector.shape_cast %13 : vector<1x128x128xbf16> to vector<128x128xbf16>
    %cst_13 = arith.constant dense<0.000000e+00> : vector<64x128xf32>
    %15 = tpu.matmul %12, %14, %cst_13 {dimension_numbers = #tpu.dot_dimension_numbers<[1], [0], [0], [1], [0, 0, 1, 1], [], []>} : vector<64x128xbf16>, vector<128x128xbf16>, vector<64x128xf32> -> vector<64x128xf32>
    %16 = arith.addf %8, %15 : vector<64x128xf32>
    %c0_14 = arith.constant 0 : index
    %c0_15 = arith.constant 0 : index
    %c1_16 = arith.constant 1 : index
    %c0_17 = arith.constant 0 : index
    %17 = vector.load %arg1[%c0_14, %c0_15, %c1_16, %c0_17] : memref<4x9x9x128xf32, #tpu.memory_space<vmem>>, vector<1x8x8x128xf32>
    %18 = vector.shape_cast %17 : vector<1x8x8x128xf32> to vector<8x8x128xf32>
    %19 = vector.shape_cast %18 : vector<8x8x128xf32> to vector<64x128xf32>
    %20 = arith.truncf %19 : vector<64x128xf32> to vector<64x128xbf16>
    %c2 = arith.constant 2 : index
    %c0_18 = arith.constant 0 : index
    %c0_19 = arith.constant 0 : index
    %21 = vector.load %arg2[%c2, %c0_18, %c0_19] : memref<9x128x128xbf16, #tpu.memory_space<vmem>>, vector<1x128x128xbf16>
    %22 = vector.shape_cast %21 : vector<1x128x128xbf16> to vector<128x128xbf16>
    %cst_20 = arith.constant dense<0.000000e+00> : vector<64x128xf32>
    %23 = tpu.matmul %20, %22, %cst_20 {dimension_numbers = #tpu.dot_dimension_numbers<[1], [0], [0], [1], [0, 0, 1, 1], [], []>} : vector<64x128xbf16>, vector<128x128xbf16>, vector<64x128xf32> -> vector<64x128xf32>
    %24 = arith.addf %16, %23 : vector<64x128xf32>
    %c2_21 = arith.constant 2 : index
    %c0_22 = arith.constant 0 : index
    %c0_23 = arith.constant 0 : index
    %c0_24 = arith.constant 0 : index
    %25 = vector.load %arg1[%c2_21, %c0_22, %c0_23, %c0_24] : memref<4x9x9x128xf32, #tpu.memory_space<vmem>>, vector<1x8x8x128xf32>
    %26 = vector.shape_cast %25 : vector<1x8x8x128xf32> to vector<8x8x128xf32>
    %27 = vector.shape_cast %26 : vector<8x8x128xf32> to vector<64x128xf32>
    %28 = arith.truncf %27 : vector<64x128xf32> to vector<64x128xbf16>
    %c3 = arith.constant 3 : index
    %c0_25 = arith.constant 0 : index
    %c0_26 = arith.constant 0 : index
    %29 = vector.load %arg2[%c3, %c0_25, %c0_26] : memref<9x128x128xbf16, #tpu.memory_space<vmem>>, vector<1x128x128xbf16>
    %30 = vector.shape_cast %29 : vector<1x128x128xbf16> to vector<128x128xbf16>
    %cst_27 = arith.constant dense<0.000000e+00> : vector<64x128xf32>
    %31 = tpu.matmul %28, %30, %cst_27 {dimension_numbers = #tpu.dot_dimension_numbers<[1], [0], [0], [1], [0, 0, 1, 1], [], []>} : vector<64x128xbf16>, vector<128x128xbf16>, vector<64x128xf32> -> vector<64x128xf32>
    %32 = arith.addf %24, %31 : vector<64x128xf32>
    %c3_28 = arith.constant 3 : index
    %c0_29 = arith.constant 0 : index
    %c0_30 = arith.constant 0 : index
    %c0_31 = arith.constant 0 : index
    %33 = vector.load %arg1[%c3_28, %c0_29, %c0_30, %c0_31] : memref<4x9x9x128xf32, #tpu.memory_space<vmem>>, vector<1x8x8x128xf32>
    %34 = vector.shape_cast %33 : vector<1x8x8x128xf32> to vector<8x8x128xf32>
    %35 = vector.shape_cast %34 : vector<8x8x128xf32> to vector<64x128xf32>
    %36 = arith.truncf %35 : vector<64x128xf32> to vector<64x128xbf16>
    %c4 = arith.constant 4 : index
    %c0_32 = arith.constant 0 : index
    %c0_33 = arith.constant 0 : index
    %37 = vector.load %arg2[%c4, %c0_32, %c0_33] : memref<9x128x128xbf16, #tpu.memory_space<vmem>>, vector<1x128x128xbf16>
    %38 = vector.shape_cast %37 : vector<1x128x128xbf16> to vector<128x128xbf16>
    %cst_34 = arith.constant dense<0.000000e+00> : vector<64x128xf32>
    %39 = tpu.matmul %36, %38, %cst_34 {dimension_numbers = #tpu.dot_dimension_numbers<[1], [0], [0], [1], [0, 0, 1, 1], [], []>} : vector<64x128xbf16>, vector<128x128xbf16>, vector<64x128xf32> -> vector<64x128xf32>
    %40 = arith.addf %32, %39 : vector<64x128xf32>
    %c2_35 = arith.constant 2 : index
    %c0_36 = arith.constant 0 : index
    %c1_37 = arith.constant 1 : index
    %c0_38 = arith.constant 0 : index
    %41 = vector.load %arg1[%c2_35, %c0_36, %c1_37, %c0_38] : memref<4x9x9x128xf32, #tpu.memory_space<vmem>>, vector<1x8x8x128xf32>
    %42 = vector.shape_cast %41 : vector<1x8x8x128xf32> to vector<8x8x128xf32>
    %43 = vector.shape_cast %42 : vector<8x8x128xf32> to vector<64x128xf32>
    %44 = arith.truncf %43 : vector<64x128xf32> to vector<64x128xbf16>
    %c5 = arith.constant 5 : index
    %c0_39 = arith.constant 0 : index
    %c0_40 = arith.constant 0 : index
    %45 = vector.load %arg2[%c5, %c0_39, %c0_40] : memref<9x128x128xbf16, #tpu.memory_space<vmem>>, vector<1x128x128xbf16>
    %46 = vector.shape_cast %45 : vector<1x128x128xbf16> to vector<128x128xbf16>
    %cst_41 = arith.constant dense<0.000000e+00> : vector<64x128xf32>
    %47 = tpu.matmul %44, %46, %cst_41 {dimension_numbers = #tpu.dot_dimension_numbers<[1], [0], [0], [1], [0, 0, 1, 1], [], []>} : vector<64x128xbf16>, vector<128x128xbf16>, vector<64x128xf32> -> vector<64x128xf32>
    %48 = arith.addf %40, %47 : vector<64x128xf32>
    %c0_42 = arith.constant 0 : index
    %c1_43 = arith.constant 1 : index
    %c0_44 = arith.constant 0 : index
    %c0_45 = arith.constant 0 : index
    %49 = vector.load %arg1[%c0_42, %c1_43, %c0_44, %c0_45] : memref<4x9x9x128xf32, #tpu.memory_space<vmem>>, vector<1x8x8x128xf32>
    %50 = vector.shape_cast %49 : vector<1x8x8x128xf32> to vector<8x8x128xf32>
    %51 = vector.shape_cast %50 : vector<8x8x128xf32> to vector<64x128xf32>
    %52 = arith.truncf %51 : vector<64x128xf32> to vector<64x128xbf16>
    %c6 = arith.constant 6 : index
    %c0_46 = arith.constant 0 : index
    %c0_47 = arith.constant 0 : index
    %53 = vector.load %arg2[%c6, %c0_46, %c0_47] : memref<9x128x128xbf16, #tpu.memory_space<vmem>>, vector<1x128x128xbf16>
    %54 = vector.shape_cast %53 : vector<1x128x128xbf16> to vector<128x128xbf16>
    %cst_48 = arith.constant dense<0.000000e+00> : vector<64x128xf32>
    %55 = tpu.matmul %52, %54, %cst_48 {dimension_numbers = #tpu.dot_dimension_numbers<[1], [0], [0], [1], [0, 0, 1, 1], [], []>} : vector<64x128xbf16>, vector<128x128xbf16>, vector<64x128xf32> -> vector<64x128xf32>
    %56 = arith.addf %48, %55 : vector<64x128xf32>
    %c1_49 = arith.constant 1 : index
    %c1_50 = arith.constant 1 : index
    %c0_51 = arith.constant 0 : index
    %c0_52 = arith.constant 0 : index
    %57 = vector.load %arg1[%c1_49, %c1_50, %c0_51, %c0_52] : memref<4x9x9x128xf32, #tpu.memory_space<vmem>>, vector<1x8x8x128xf32>
    %58 = vector.shape_cast %57 : vector<1x8x8x128xf32> to vector<8x8x128xf32>
    %59 = vector.shape_cast %58 : vector<8x8x128xf32> to vector<64x128xf32>
    %60 = arith.truncf %59 : vector<64x128xf32> to vector<64x128xbf16>
    %c7 = arith.constant 7 : index
    %c0_53 = arith.constant 0 : index
    %c0_54 = arith.constant 0 : index
    %61 = vector.load %arg2[%c7, %c0_53, %c0_54] : memref<9x128x128xbf16, #tpu.memory_space<vmem>>, vector<1x128x128xbf16>
    %62 = vector.shape_cast %61 : vector<1x128x128xbf16> to vector<128x128xbf16>
    %cst_55 = arith.constant dense<0.000000e+00> : vector<64x128xf32>
    %63 = tpu.matmul %60, %62, %cst_55 {dimension_numbers = #tpu.dot_dimension_numbers<[1], [0], [0], [1], [0, 0, 1, 1], [], []>} : vector<64x128xbf16>, vector<128x128xbf16>, vector<64x128xf32> -> vector<64x128xf32>
    %64 = arith.addf %56, %63 : vector<64x128xf32>
    %c0_56 = arith.constant 0 : index
    %c1_57 = arith.constant 1 : index
    %c1_58 = arith.constant 1 : index
    %c0_59 = arith.constant 0 : index
    %65 = vector.load %arg1[%c0_56, %c1_57, %c1_58, %c0_59] : memref<4x9x9x128xf32, #tpu.memory_space<vmem>>, vector<1x8x8x128xf32>
    %66 = vector.shape_cast %65 : vector<1x8x8x128xf32> to vector<8x8x128xf32>
    %67 = vector.shape_cast %66 : vector<8x8x128xf32> to vector<64x128xf32>
    %68 = arith.truncf %67 : vector<64x128xf32> to vector<64x128xbf16>
    %c8 = arith.constant 8 : index
    %c0_60 = arith.constant 0 : index
    %c0_61 = arith.constant 0 : index
    %69 = vector.load %arg2[%c8, %c0_60, %c0_61] : memref<9x128x128xbf16, #tpu.memory_space<vmem>>, vector<1x128x128xbf16>
    %70 = vector.shape_cast %69 : vector<1x128x128xbf16> to vector<128x128xbf16>
    %cst_62 = arith.constant dense<0.000000e+00> : vector<64x128xf32>
    %71 = tpu.matmul %68, %70, %cst_62 {dimension_numbers = #tpu.dot_dimension_numbers<[1], [0], [0], [1], [0, 0, 1, 1], [], []>} : vector<64x128xbf16>, vector<128x128xbf16>, vector<64x128xf32> -> vector<64x128xf32>
    %72 = arith.addf %64, %71 : vector<64x128xf32>
    %c0_63 = arith.constant 0 : index
    %c0_64 = arith.constant 0 : index
    %73 = vector.load %arg3[%c0_63, %c0_64] : memref<1x128xf32, #tpu.memory_space<vmem>>, vector<1x128xf32>
    %74 = vector.broadcast %73 : vector<1x128xf32> to vector<64x128xf32>
    %75 = arith.addf %72, %74 : vector<64x128xf32>
    %cst_65 = arith.constant 0.000000e+00 : f32
    %76 = vector.broadcast %cst_65 : f32 to vector<64x128xf32>
    %77 = arith.maximumf %75, %76 : vector<64x128xf32>
    %cst_66 = arith.constant 0.000000e+00 : f32
    %78 = vector.broadcast %cst_66 : f32 to vector<10x10x128xf32>
    %c0_67 = arith.constant 0 : index
    %c0_68 = arith.constant 0 : index
    %c0_69 = arith.constant 0 : index
    %79 = vector.load %arg9[%c0_67, %c0_68, %c0_69] : memref<10x10x128xf32, #tpu.memory_space<vmem>>, vector<10x10x128xf32>
    tpu.vector_store %arg9[%c0_67, %c0_68, %c0_69], %78 {strides = array<i32>} : memref<10x10x128xf32, #tpu.memory_space<vmem>>, vector<10x10x128xf32>,
    %80 = vector.shape_cast %77 : vector<64x128xf32> to vector<8x8x128xf32>
    %c1_70 = arith.constant 1 : index
    %c1_71 = arith.constant 1 : index
    %c0_72 = arith.constant 0 : index
    %81 = vector.load %arg9[%c1_70, %c1_71, %c0_72] : memref<10x10x128xf32, #tpu.memory_space<vmem>>, vector<8x8x128xf32>
    tpu.vector_store %arg9[%c1_70, %c1_71, %c0_72], %80 {strides = array<i32>} : memref<10x10x128xf32, #tpu.memory_space<vmem>>, vector<8x8x128xf32>,
    %cst_73 = arith.constant 0.000000e+00 : f32
    %82 = vector.broadcast %cst_73 : f32 to vector<64x128xf32>
    %c0_74 = arith.constant 0 : index
    %c0_75 = arith.constant 0 : index
    %c0_76 = arith.constant 0 : index
    %83 = vector.load %arg9[%c0_74, %c0_75, %c0_76] : memref<10x10x128xf32, #tpu.memory_space<vmem>>, vector<8x8x128xf32>
    %84 = vector.shape_cast %83 : vector<8x8x128xf32> to vector<64x128xf32>
    %85 = arith.truncf %84 : vector<64x128xf32> to vector<64x128xbf16>
    %c0_77 = arith.constant 0 : index
    %c0_78 = arith.constant 0 : index
    %c0_79 = arith.constant 0 : index
    %86 = vector.load %arg4[%c0_77, %c0_78, %c0_79] : memref<9x128x128xbf16, #tpu.memory_space<vmem>>, vector<1x128x128xbf16>
    %87 = vector.shape_cast %86 : vector<1x128x128xbf16> to vector<128x128xbf16>
    %cst_80 = arith.constant dense<0.000000e+00> : vector<64x128xf32>
    %88 = tpu.matmul %85, %87, %cst_80 {dimension_numbers = #tpu.dot_dimension_numbers<[1], [0], [0], [1], [0, 0, 1, 1], [], []>} : vector<64x128xbf16>, vector<128x128xbf16>, vector<64x128xf32> -> vector<64x128xf32>
    %89 = arith.addf %82, %88 : vector<64x128xf32>
    %c0_81 = arith.constant 0 : index
    %c1_82 = arith.constant 1 : index
    %c0_83 = arith.constant 0 : index
    %90 = vector.load %arg9[%c0_81, %c1_82, %c0_83] : memref<10x10x128xf32, #tpu.memory_space<vmem>>, vector<8x8x128xf32>
    %91 = vector.shape_cast %90 : vector<8x8x128xf32> to vector<64x128xf32>
    %92 = arith.truncf %91 : vector<64x128xf32> to vector<64x128xbf16>
    %c1_84 = arith.constant 1 : index
    %c0_85 = arith.constant 0 : index
    %c0_86 = arith.constant 0 : index
    %93 = vector.load %arg4[%c1_84, %c0_85, %c0_86] : memref<9x128x128xbf16, #tpu.memory_space<vmem>>, vector<1x128x128xbf16>
    %94 = vector.shape_cast %93 : vector<1x128x128xbf16> to vector<128x128xbf16>
    %cst_87 = arith.constant dense<0.000000e+00> : vector<64x128xf32>
    %95 = tpu.matmul %92, %94, %cst_87 {dimension_numbers = #tpu.dot_dimension_numbers<[1], [0], [0], [1], [0, 0, 1, 1], [], []>} : vector<64x128xbf16>, vector<128x128xbf16>, vector<64x128xf32> -> vector<64x128xf32>
    %96 = arith.addf %89, %95 : vector<64x128xf32>
    %c0_88 = arith.constant 0 : index
    %c2_89 = arith.constant 2 : index
    %c0_90 = arith.constant 0 : index
    %97 = vector.load %arg9[%c0_88, %c2_89, %c0_90] : memref<10x10x128xf32, #tpu.memory_space<vmem>>, vector<8x8x128xf32>
    %98 = vector.shape_cast %97 : vector<8x8x128xf32> to vector<64x128xf32>
    %99 = arith.truncf %98 : vector<64x128xf32> to vector<64x128xbf16>
    %c2_91 = arith.constant 2 : index
    %c0_92 = arith.constant 0 : index
    %c0_93 = arith.constant 0 : index
    %100 = vector.load %arg4[%c2_91, %c0_92, %c0_93] : memref<9x128x128xbf16, #tpu.memory_space<vmem>>, vector<1x128x128xbf16>
    %101 = vector.shape_cast %100 : vector<1x128x128xbf16> to vector<128x128xbf16>
    %cst_94 = arith.constant dense<0.000000e+00> : vector<64x128xf32>
    %102 = tpu.matmul %99, %101, %cst_94 {dimension_numbers = #tpu.dot_dimension_numbers<[1], [0], [0], [1], [0, 0, 1, 1], [], []>} : vector<64x128xbf16>, vector<128x128xbf16>, vector<64x128xf32> -> vector<64x128xf32>
    %103 = arith.addf %96, %102 : vector<64x128xf32>
    %c1_95 = arith.constant 1 : index
    %c0_96 = arith.constant 0 : index
    %c0_97 = arith.constant 0 : index
    %104 = vector.load %arg9[%c1_95, %c0_96, %c0_97] : memref<10x10x128xf32, #tpu.memory_space<vmem>>, vector<8x8x128xf32>
    %105 = vector.shape_cast %104 : vector<8x8x128xf32> to vector<64x128xf32>
    %106 = arith.truncf %105 : vector<64x128xf32> to vector<64x128xbf16>
    %c3_98 = arith.constant 3 : index
    %c0_99 = arith.constant 0 : index
    %c0_100 = arith.constant 0 : index
    %107 = vector.load %arg4[%c3_98, %c0_99, %c0_100] : memref<9x128x128xbf16, #tpu.memory_space<vmem>>, vector<1x128x128xbf16>
    %108 = vector.shape_cast %107 : vector<1x128x128xbf16> to vector<128x128xbf16>
    %cst_101 = arith.constant dense<0.000000e+00> : vector<64x128xf32>
    %109 = tpu.matmul %106, %108, %cst_101 {dimension_numbers = #tpu.dot_dimension_numbers<[1], [0], [0], [1], [0, 0, 1, 1], [], []>} : vector<64x128xbf16>, vector<128x128xbf16>, vector<64x128xf32> -> vector<64x128xf32>
    %110 = arith.addf %103, %109 : vector<64x128xf32>
    %c1_102 = arith.constant 1 : index
    %c1_103 = arith.constant 1 : index
    %c0_104 = arith.constant 0 : index
    %111 = vector.load %arg9[%c1_102, %c1_103, %c0_104] : memref<10x10x128xf32, #tpu.memory_space<vmem>>, vector<8x8x128xf32>
    %112 = vector.shape_cast %111 : vector<8x8x128xf32> to vector<64x128xf32>
    %113 = arith.truncf %112 : vector<64x128xf32> to vector<64x128xbf16>
    %c4_105 = arith.constant 4 : index
    %c0_106 = arith.constant 0 : index
    %c0_107 = arith.constant 0 : index
    %114 = vector.load %arg4[%c4_105, %c0_106, %c0_107] : memref<9x128x128xbf16, #tpu.memory_space<vmem>>, vector<1x128x128xbf16>
    %115 = vector.shape_cast %114 : vector<1x128x128xbf16> to vector<128x128xbf16>
    %cst_108 = arith.constant dense<0.000000e+00> : vector<64x128xf32>
    %116 = tpu.matmul %113, %115, %cst_108 {dimension_numbers = #tpu.dot_dimension_numbers<[1], [0], [0], [1], [0, 0, 1, 1], [], []>} : vector<64x128xbf16>, vector<128x128xbf16>, vector<64x128xf32> -> vector<64x128xf32>
    %117 = arith.addf %110, %116 : vector<64x128xf32>
    %c1_109 = arith.constant 1 : index
    %c2_110 = arith.constant 2 : index
    %c0_111 = arith.constant 0 : index
    %118 = vector.load %arg9[%c1_109, %c2_110, %c0_111] : memref<10x10x128xf32, #tpu.memory_space<vmem>>, vector<8x8x128xf32>
    %119 = vector.shape_cast %118 : vector<8x8x128xf32> to vector<64x128xf32>
    %120 = arith.truncf %119 : vector<64x128xf32> to vector<64x128xbf16>
    %c5_112 = arith.constant 5 : index
    %c0_113 = arith.constant 0 : index
    %c0_114 = arith.constant 0 : index
    %121 = vector.load %arg4[%c5_112, %c0_113, %c0_114] : memref<9x128x128xbf16, #tpu.memory_space<vmem>>, vector<1x128x128xbf16>
    %122 = vector.shape_cast %121 : vector<1x128x128xbf16> to vector<128x128xbf16>
    %cst_115 = arith.constant dense<0.000000e+00> : vector<64x128xf32>
    %123 = tpu.matmul %120, %122, %cst_115 {dimension_numbers = #tpu.dot_dimension_numbers<[1], [0], [0], [1], [0, 0, 1, 1], [], []>} : vector<64x128xbf16>, vector<128x128xbf16>, vector<64x128xf32> -> vector<64x128xf32>
    %124 = arith.addf %117, %123 : vector<64x128xf32>
    %c2_116 = arith.constant 2 : index
    %c0_117 = arith.constant 0 : index
    %c0_118 = arith.constant 0 : index
    %125 = vector.load %arg9[%c2_116, %c0_117, %c0_118] : memref<10x10x128xf32, #tpu.memory_space<vmem>>, vector<8x8x128xf32>
    %126 = vector.shape_cast %125 : vector<8x8x128xf32> to vector<64x128xf32>
    %127 = arith.truncf %126 : vector<64x128xf32> to vector<64x128xbf16>
    %c6_119 = arith.constant 6 : index
    %c0_120 = arith.constant 0 : index
    %c0_121 = arith.constant 0 : index
    %128 = vector.load %arg4[%c6_119, %c0_120, %c0_121] : memref<9x128x128xbf16, #tpu.memory_space<vmem>>, vector<1x128x128xbf16>
    %129 = vector.shape_cast %128 : vector<1x128x128xbf16> to vector<128x128xbf16>
    %cst_122 = arith.constant dense<0.000000e+00> : vector<64x128xf32>
    %130 = tpu.matmul %127, %129, %cst_122 {dimension_numbers = #tpu.dot_dimension_numbers<[1], [0], [0], [1], [0, 0, 1, 1], [], []>} : vector<64x128xbf16>, vector<128x128xbf16>, vector<64x128xf32> -> vector<64x128xf32>
    %131 = arith.addf %124, %130 : vector<64x128xf32>
    %c2_123 = arith.constant 2 : index
    %c1_124 = arith.constant 1 : index
    %c0_125 = arith.constant 0 : index
    %132 = vector.load %arg9[%c2_123, %c1_124, %c0_125] : memref<10x10x128xf32, #tpu.memory_space<vmem>>, vector<8x8x128xf32>
    %133 = vector.shape_cast %132 : vector<8x8x128xf32> to vector<64x128xf32>
    %134 = arith.truncf %133 : vector<64x128xf32> to vector<64x128xbf16>
    %c7_126 = arith.constant 7 : index
    %c0_127 = arith.constant 0 : index
    %c0_128 = arith.constant 0 : index
    %135 = vector.load %arg4[%c7_126, %c0_127, %c0_128] : memref<9x128x128xbf16, #tpu.memory_space<vmem>>, vector<1x128x128xbf16>
    %136 = vector.shape_cast %135 : vector<1x128x128xbf16> to vector<128x128xbf16>
    %cst_129 = arith.constant dense<0.000000e+00> : vector<64x128xf32>
    %137 = tpu.matmul %134, %136, %cst_129 {dimension_numbers = #tpu.dot_dimension_numbers<[1], [0], [0], [1], [0, 0, 1, 1], [], []>} : vector<64x128xbf16>, vector<128x128xbf16>, vector<64x128xf32> -> vector<64x128xf32>
    %138 = arith.addf %131, %137 : vector<64x128xf32>
    %c2_130 = arith.constant 2 : index
    %c2_131 = arith.constant 2 : index
    %c0_132 = arith.constant 0 : index
    %139 = vector.load %arg9[%c2_130, %c2_131, %c0_132] : memref<10x10x128xf32, #tpu.memory_space<vmem>>, vector<8x8x128xf32>
    %140 = vector.shape_cast %139 : vector<8x8x128xf32> to vector<64x128xf32>
    %141 = arith.truncf %140 : vector<64x128xf32> to vector<64x128xbf16>
    %c8_133 = arith.constant 8 : index
    %c0_134 = arith.constant 0 : index
    %c0_135 = arith.constant 0 : index
    %142 = vector.load %arg4[%c8_133, %c0_134, %c0_135] : memref<9x128x128xbf16, #tpu.memory_space<vmem>>, vector<1x128x128xbf16>
    %143 = vector.shape_cast %142 : vector<1x128x128xbf16> to vector<128x128xbf16>
    %cst_136 = arith.constant dense<0.000000e+00> : vector<64x128xf32>
    %144 = tpu.matmul %141, %143, %cst_136 {dimension_numbers = #tpu.dot_dimension_numbers<[1], [0], [0], [1], [0, 0, 1, 1], [], []>} : vector<64x128xbf16>, vector<128x128xbf16>, vector<64x128xf32> -> vector<64x128xf32>
    %145 = arith.addf %138, %144 : vector<64x128xf32>
    %c0_137 = arith.constant 0 : index
    %c0_138 = arith.constant 0 : index
    %146 = vector.load %arg5[%c0_137, %c0_138] : memref<1x128xf32, #tpu.memory_space<vmem>>, vector<1x128xf32>
    %147 = vector.broadcast %146 : vector<1x128xf32> to vector<64x128xf32>
    %148 = arith.addf %145, %147 : vector<64x128xf32>
    %c3_139 = arith.constant 3 : index
    %c0_140 = arith.constant 0 : index
    %c0_141 = arith.constant 0 : index
    %c0_142 = arith.constant 0 : index
    %149 = vector.load %arg1[%c3_139, %c0_140, %c0_141, %c0_142] : memref<4x9x9x128xf32, #tpu.memory_space<vmem>>, vector<1x8x8x128xf32>
    %150 = vector.shape_cast %149 : vector<1x8x8x128xf32> to vector<8x8x128xf32>
    %151 = vector.shape_cast %150 : vector<8x8x128xf32> to vector<64x128xf32>
    %152 = arith.truncf %151 : vector<64x128xf32> to vector<64x128xbf16>
    %c0_143 = arith.constant 0 : index
    %c0_144 = arith.constant 0 : index
    %153 = vector.load %arg6[%c0_143, %c0_144] : memref<128x128xbf16, #tpu.memory_space<vmem>>, vector<128x128xbf16>
    %cst_145 = arith.constant dense<0.000000e+00> : vector<64x128xf32>
    %154 = tpu.matmul %152, %153, %cst_145 {dimension_numbers = #tpu.dot_dimension_numbers<[1], [0], [0], [1], [0, 0, 1, 1], [], []>} : vector<64x128xbf16>, vector<128x128xbf16>, vector<64x128xf32> -> vector<64x128xf32>
    %c0_146 = arith.constant 0 : index
    %c0_147 = arith.constant 0 : index
    %155 = vector.load %arg7[%c0_146, %c0_147] : memref<1x128xf32, #tpu.memory_space<vmem>>, vector<1x128xf32>
    %156 = vector.broadcast %155 : vector<1x128xf32> to vector<64x128xf32>
    %157 = arith.addf %154, %156 : vector<64x128xf32>
    %158 = arith.addf %148, %157 : vector<64x128xf32>
    %cst_148 = arith.constant 0.000000e+00 : f32
    %159 = vector.broadcast %cst_148 : f32 to vector<64x128xf32>
    %160 = arith.maximumf %158, %159 : vector<64x128xf32>
    %161 = vector.shape_cast %160 : vector<64x128xf32> to vector<8x8x128xf32>
    %c0_149 = arith.constant 0 : index
    %c0_150 = arith.constant 0 : index
    %c0_151 = arith.constant 0 : index
    %c0_152 = arith.constant 0 : index
    %162 = vector.load %arg8[%c0_149, %c0_150, %c0_151, %c0_152] : memref<1x8x8x128xf32, #tpu.memory_space<vmem>>, vector<1x8x8x128xf32>
    %163 = vector.shape_cast %162 : vector<1x8x8x128xf32> to vector<8x8x128xf32>
    %164 = vector.shape_cast %161 : vector<8x8x128xf32> to vector<1x8x8x128xf32>
    tpu.vector_store %arg8[%c0_149, %c0_150, %c0_151, %c0_152], %164 {strides = array<i32>} : memref<1x8x8x128xf32, #tpu.memory_space<vmem>>, vector<1x8x8x128xf32>,
    return
  }
  func.func @transform_0(%arg0: i32) -> (i32, i32, i32, i32) {
    %c0_i32 = arith.constant 0 : i32
    %c0_i32_0 = arith.constant 0 : i32
    %c0_i32_1 = arith.constant 0 : i32
    %c0_i32_2 = arith.constant 0 : i32
    return %arg0, %c0_i32, %c0_i32_0, %c0_i32_1 : i32, i32, i32, i32
  }
  func.func @transform_1(%arg0: i32) -> (i32, i32, i32) {
    %c0_i32 = arith.constant 0 : i32
    %c0_i32_0 = arith.constant 0 : i32
    %c0_i32_1 = arith.constant 0 : i32
    %c0_i32_2 = arith.constant 0 : i32
    return %c0_i32, %c0_i32_0, %c0_i32_1 : i32, i32, i32
  }
  func.func @transform_2(%arg0: i32) -> (i32, i32) {
    %c0_i32 = arith.constant 0 : i32
    %c0_i32_0 = arith.constant 0 : i32
    %c0_i32_1 = arith.constant 0 : i32
    return %c0_i32, %c0_i32_0 : i32, i32
  }
  func.func @transform_3(%arg0: i32) -> (i32, i32, i32) {
    %c0_i32 = arith.constant 0 : i32
    %c0_i32_0 = arith.constant 0 : i32
    %c0_i32_1 = arith.constant 0 : i32
    %c0_i32_2 = arith.constant 0 : i32
    return %c0_i32, %c0_i32_0, %c0_i32_1 : i32, i32, i32
  }
  func.func @transform_4(%arg0: i32) -> (i32, i32) {
    %c0_i32 = arith.constant 0 : i32
    %c0_i32_0 = arith.constant 0 : i32
    %c0_i32_1 = arith.constant 0 : i32
    return %c0_i32, %c0_i32_0 : i32, i32
  }
  func.func @transform_5(%arg0: i32) -> (i32, i32) {
    %c0_i32 = arith.constant 0 : i32
    %c0_i32_0 = arith.constant 0 : i32
    %c0_i32_1 = arith.constant 0 : i32
    return %c0_i32, %c0_i32_0 : i32, i32
  }
  func.func @transform_6(%arg0: i32) -> (i32, i32) {
    %c0_i32 = arith.constant 0 : i32
    %c0_i32_0 = arith.constant 0 : i32
    %c0_i32_1 = arith.constant 0 : i32
    return %c0_i32, %c0_i32_0 : i32, i32
  }
  func.func @transform_7(%arg0: i32) -> (i32, i32, i32, i32) {
    %c0_i32 = arith.constant 0 : i32
    %c0_i32_0 = arith.constant 0 : i32
    %c0_i32_1 = arith.constant 0 : i32
    %c0_i32_2 = arith.constant 0 : i32
    return %arg0, %c0_i32, %c0_i32_0, %c0_i32_1 : i32, i32, i32, i32
  }
}

module attributes {stable_mosaic.version = 11 : i64} {
  func.func @kernel(%arg0: i32, %arg1: memref<1x10x10x128xf32, #tpu.memory_space<vmem>>, %arg2: memref<9x128x128xbf16, #tpu.memory_space<vmem>>, %arg3: memref<1x128xf32, #tpu.memory_space<vmem>>, %arg4: memref<9x128x128xbf16, #tpu.memory_space<vmem>>, %arg5: memref<1x128xf32, #tpu.memory_space<vmem>>, %arg6: memref<1x8x8x128xf32, #tpu.memory_space<vmem>>, %arg7: memref<10x10x128xf32, #tpu.memory_space<vmem>>) attributes {dimension_semantics = [#tpu.dimension_semantics<parallel>], iteration_bounds = array<i64: 2>, scalar_prefetch = 0 : i64, scratch_operands = 1 : i64, tpu.core_type = #tpu.core_type<tc>, window_params = [{transform_indices = @transform_0, window_bounds = array<i64: 1, 10, 10, 128>}, {pipeline_mode = #tpu.pipeline_mode<synchronous>, transform_indices = @transform_1, window_bounds = array<i64: 9, 128, 128>}, {pipeline_mode = #tpu.pipeline_mode<synchronous>, transform_indices = @transform_2, window_bounds = array<i64: 1, 128>}, {pipeline_mode = #tpu.pipeline_mode<synchronous>, transform_indices = @transform_3, window_bounds = array<i64: 9, 128, 128>}, {pipeline_mode = #tpu.pipeline_mode<synchronous>, transform_indices = @transform_4, window_bounds = array<i64: 1, 128>}, {transform_indices = @transform_5, window_bounds = array<i64: 1, 8, 8, 128>}]} {
    %cst = arith.constant 0.000000e+00 : f32
    %0 = vector.broadcast %cst : f32 to vector<64x128xf32>
    %c0 = arith.constant 0 : index
    %c0_0 = arith.constant 0 : index
    %c0_1 = arith.constant 0 : index
    %c0_2 = arith.constant 0 : index
    %1 = vector.load %arg1[%c0, %c0_0, %c0_1, %c0_2] : memref<1x10x10x128xf32, #tpu.memory_space<vmem>>, vector<1x8x8x128xf32>
    %2 = vector.shape_cast %1 : vector<1x8x8x128xf32> to vector<8x8x128xf32>
    %3 = vector.shape_cast %2 : vector<8x8x128xf32> to vector<64x128xf32>
    %4 = arith.truncf %3 : vector<64x128xf32> to vector<64x128xbf16>
    %c0_3 = arith.constant 0 : index
    %c0_4 = arith.constant 0 : index
    %c0_5 = arith.constant 0 : index
    %5 = vector.load %arg2[%c0_3, %c0_4, %c0_5] : memref<9x128x128xbf16, #tpu.memory_space<vmem>>, vector<1x128x128xbf16>
    %6 = vector.shape_cast %5 : vector<1x128x128xbf16> to vector<128x128xbf16>
    %cst_6 = arith.constant dense<0.000000e+00> : vector<64x128xf32>
    %7 = tpu.matmul %4, %6, %cst_6 {dimension_numbers = #tpu.dot_dimension_numbers<[1], [0], [0], [1], [0, 0, 1, 1], [], []>} : vector<64x128xbf16>, vector<128x128xbf16>, vector<64x128xf32> -> vector<64x128xf32>
    %8 = arith.addf %0, %7 : vector<64x128xf32>
    %c0_7 = arith.constant 0 : index
    %c0_8 = arith.constant 0 : index
    %c1 = arith.constant 1 : index
    %c0_9 = arith.constant 0 : index
    %9 = vector.load %arg1[%c0_7, %c0_8, %c1, %c0_9] : memref<1x10x10x128xf32, #tpu.memory_space<vmem>>, vector<1x8x8x128xf32>
    %10 = vector.shape_cast %9 : vector<1x8x8x128xf32> to vector<8x8x128xf32>
    %11 = vector.shape_cast %10 : vector<8x8x128xf32> to vector<64x128xf32>
    %12 = arith.truncf %11 : vector<64x128xf32> to vector<64x128xbf16>
    %c1_10 = arith.constant 1 : index
    %c0_11 = arith.constant 0 : index
    %c0_12 = arith.constant 0 : index
    %13 = vector.load %arg2[%c1_10, %c0_11, %c0_12] : memref<9x128x128xbf16, #tpu.memory_space<vmem>>, vector<1x128x128xbf16>
    %14 = vector.shape_cast %13 : vector<1x128x128xbf16> to vector<128x128xbf16>
    %cst_13 = arith.constant dense<0.000000e+00> : vector<64x128xf32>
    %15 = tpu.matmul %12, %14, %cst_13 {dimension_numbers = #tpu.dot_dimension_numbers<[1], [0], [0], [1], [0, 0, 1, 1], [], []>} : vector<64x128xbf16>, vector<128x128xbf16>, vector<64x128xf32> -> vector<64x128xf32>
    %16 = arith.addf %8, %15 : vector<64x128xf32>
    %c0_14 = arith.constant 0 : index
    %c0_15 = arith.constant 0 : index
    %c2 = arith.constant 2 : index
    %c0_16 = arith.constant 0 : index
    %17 = vector.load %arg1[%c0_14, %c0_15, %c2, %c0_16] : memref<1x10x10x128xf32, #tpu.memory_space<vmem>>, vector<1x8x8x128xf32>
    %18 = vector.shape_cast %17 : vector<1x8x8x128xf32> to vector<8x8x128xf32>
    %19 = vector.shape_cast %18 : vector<8x8x128xf32> to vector<64x128xf32>
    %20 = arith.truncf %19 : vector<64x128xf32> to vector<64x128xbf16>
    %c2_17 = arith.constant 2 : index
    %c0_18 = arith.constant 0 : index
    %c0_19 = arith.constant 0 : index
    %21 = vector.load %arg2[%c2_17, %c0_18, %c0_19] : memref<9x128x128xbf16, #tpu.memory_space<vmem>>, vector<1x128x128xbf16>
    %22 = vector.shape_cast %21 : vector<1x128x128xbf16> to vector<128x128xbf16>
    %cst_20 = arith.constant dense<0.000000e+00> : vector<64x128xf32>
    %23 = tpu.matmul %20, %22, %cst_20 {dimension_numbers = #tpu.dot_dimension_numbers<[1], [0], [0], [1], [0, 0, 1, 1], [], []>} : vector<64x128xbf16>, vector<128x128xbf16>, vector<64x128xf32> -> vector<64x128xf32>
    %24 = arith.addf %16, %23 : vector<64x128xf32>
    %c0_21 = arith.constant 0 : index
    %c1_22 = arith.constant 1 : index
    %c0_23 = arith.constant 0 : index
    %c0_24 = arith.constant 0 : index
    %25 = vector.load %arg1[%c0_21, %c1_22, %c0_23, %c0_24] : memref<1x10x10x128xf32, #tpu.memory_space<vmem>>, vector<1x8x8x128xf32>
    %26 = vector.shape_cast %25 : vector<1x8x8x128xf32> to vector<8x8x128xf32>
    %27 = vector.shape_cast %26 : vector<8x8x128xf32> to vector<64x128xf32>
    %28 = arith.truncf %27 : vector<64x128xf32> to vector<64x128xbf16>
    %c3 = arith.constant 3 : index
    %c0_25 = arith.constant 0 : index
    %c0_26 = arith.constant 0 : index
    %29 = vector.load %arg2[%c3, %c0_25, %c0_26] : memref<9x128x128xbf16, #tpu.memory_space<vmem>>, vector<1x128x128xbf16>
    %30 = vector.shape_cast %29 : vector<1x128x128xbf16> to vector<128x128xbf16>
    %cst_27 = arith.constant dense<0.000000e+00> : vector<64x128xf32>
    %31 = tpu.matmul %28, %30, %cst_27 {dimension_numbers = #tpu.dot_dimension_numbers<[1], [0], [0], [1], [0, 0, 1, 1], [], []>} : vector<64x128xbf16>, vector<128x128xbf16>, vector<64x128xf32> -> vector<64x128xf32>
    %32 = arith.addf %24, %31 : vector<64x128xf32>
    %c0_28 = arith.constant 0 : index
    %c1_29 = arith.constant 1 : index
    %c1_30 = arith.constant 1 : index
    %c0_31 = arith.constant 0 : index
    %33 = vector.load %arg1[%c0_28, %c1_29, %c1_30, %c0_31] : memref<1x10x10x128xf32, #tpu.memory_space<vmem>>, vector<1x8x8x128xf32>
    %34 = vector.shape_cast %33 : vector<1x8x8x128xf32> to vector<8x8x128xf32>
    %35 = vector.shape_cast %34 : vector<8x8x128xf32> to vector<64x128xf32>
    %36 = arith.truncf %35 : vector<64x128xf32> to vector<64x128xbf16>
    %c4 = arith.constant 4 : index
    %c0_32 = arith.constant 0 : index
    %c0_33 = arith.constant 0 : index
    %37 = vector.load %arg2[%c4, %c0_32, %c0_33] : memref<9x128x128xbf16, #tpu.memory_space<vmem>>, vector<1x128x128xbf16>
    %38 = vector.shape_cast %37 : vector<1x128x128xbf16> to vector<128x128xbf16>
    %cst_34 = arith.constant dense<0.000000e+00> : vector<64x128xf32>
    %39 = tpu.matmul %36, %38, %cst_34 {dimension_numbers = #tpu.dot_dimension_numbers<[1], [0], [0], [1], [0, 0, 1, 1], [], []>} : vector<64x128xbf16>, vector<128x128xbf16>, vector<64x128xf32> -> vector<64x128xf32>
    %40 = arith.addf %32, %39 : vector<64x128xf32>
    %c0_35 = arith.constant 0 : index
    %c1_36 = arith.constant 1 : index
    %c2_37 = arith.constant 2 : index
    %c0_38 = arith.constant 0 : index
    %41 = vector.load %arg1[%c0_35, %c1_36, %c2_37, %c0_38] : memref<1x10x10x128xf32, #tpu.memory_space<vmem>>, vector<1x8x8x128xf32>
    %42 = vector.shape_cast %41 : vector<1x8x8x128xf32> to vector<8x8x128xf32>
    %43 = vector.shape_cast %42 : vector<8x8x128xf32> to vector<64x128xf32>
    %44 = arith.truncf %43 : vector<64x128xf32> to vector<64x128xbf16>
    %c5 = arith.constant 5 : index
    %c0_39 = arith.constant 0 : index
    %c0_40 = arith.constant 0 : index
    %45 = vector.load %arg2[%c5, %c0_39, %c0_40] : memref<9x128x128xbf16, #tpu.memory_space<vmem>>, vector<1x128x128xbf16>
    %46 = vector.shape_cast %45 : vector<1x128x128xbf16> to vector<128x128xbf16>
    %cst_41 = arith.constant dense<0.000000e+00> : vector<64x128xf32>
    %47 = tpu.matmul %44, %46, %cst_41 {dimension_numbers = #tpu.dot_dimension_numbers<[1], [0], [0], [1], [0, 0, 1, 1], [], []>} : vector<64x128xbf16>, vector<128x128xbf16>, vector<64x128xf32> -> vector<64x128xf32>
    %48 = arith.addf %40, %47 : vector<64x128xf32>
    %c0_42 = arith.constant 0 : index
    %c2_43 = arith.constant 2 : index
    %c0_44 = arith.constant 0 : index
    %c0_45 = arith.constant 0 : index
    %49 = vector.load %arg1[%c0_42, %c2_43, %c0_44, %c0_45] : memref<1x10x10x128xf32, #tpu.memory_space<vmem>>, vector<1x8x8x128xf32>
    %50 = vector.shape_cast %49 : vector<1x8x8x128xf32> to vector<8x8x128xf32>
    %51 = vector.shape_cast %50 : vector<8x8x128xf32> to vector<64x128xf32>
    %52 = arith.truncf %51 : vector<64x128xf32> to vector<64x128xbf16>
    %c6 = arith.constant 6 : index
    %c0_46 = arith.constant 0 : index
    %c0_47 = arith.constant 0 : index
    %53 = vector.load %arg2[%c6, %c0_46, %c0_47] : memref<9x128x128xbf16, #tpu.memory_space<vmem>>, vector<1x128x128xbf16>
    %54 = vector.shape_cast %53 : vector<1x128x128xbf16> to vector<128x128xbf16>
    %cst_48 = arith.constant dense<0.000000e+00> : vector<64x128xf32>
    %55 = tpu.matmul %52, %54, %cst_48 {dimension_numbers = #tpu.dot_dimension_numbers<[1], [0], [0], [1], [0, 0, 1, 1], [], []>} : vector<64x128xbf16>, vector<128x128xbf16>, vector<64x128xf32> -> vector<64x128xf32>
    %56 = arith.addf %48, %55 : vector<64x128xf32>
    %c0_49 = arith.constant 0 : index
    %c2_50 = arith.constant 2 : index
    %c1_51 = arith.constant 1 : index
    %c0_52 = arith.constant 0 : index
    %57 = vector.load %arg1[%c0_49, %c2_50, %c1_51, %c0_52] : memref<1x10x10x128xf32, #tpu.memory_space<vmem>>, vector<1x8x8x128xf32>
    %58 = vector.shape_cast %57 : vector<1x8x8x128xf32> to vector<8x8x128xf32>
    %59 = vector.shape_cast %58 : vector<8x8x128xf32> to vector<64x128xf32>
    %60 = arith.truncf %59 : vector<64x128xf32> to vector<64x128xbf16>
    %c7 = arith.constant 7 : index
    %c0_53 = arith.constant 0 : index
    %c0_54 = arith.constant 0 : index
    %61 = vector.load %arg2[%c7, %c0_53, %c0_54] : memref<9x128x128xbf16, #tpu.memory_space<vmem>>, vector<1x128x128xbf16>
    %62 = vector.shape_cast %61 : vector<1x128x128xbf16> to vector<128x128xbf16>
    %cst_55 = arith.constant dense<0.000000e+00> : vector<64x128xf32>
    %63 = tpu.matmul %60, %62, %cst_55 {dimension_numbers = #tpu.dot_dimension_numbers<[1], [0], [0], [1], [0, 0, 1, 1], [], []>} : vector<64x128xbf16>, vector<128x128xbf16>, vector<64x128xf32> -> vector<64x128xf32>
    %64 = arith.addf %56, %63 : vector<64x128xf32>
    %c0_56 = arith.constant 0 : index
    %c2_57 = arith.constant 2 : index
    %c2_58 = arith.constant 2 : index
    %c0_59 = arith.constant 0 : index
    %65 = vector.load %arg1[%c0_56, %c2_57, %c2_58, %c0_59] : memref<1x10x10x128xf32, #tpu.memory_space<vmem>>, vector<1x8x8x128xf32>
    %66 = vector.shape_cast %65 : vector<1x8x8x128xf32> to vector<8x8x128xf32>
    %67 = vector.shape_cast %66 : vector<8x8x128xf32> to vector<64x128xf32>
    %68 = arith.truncf %67 : vector<64x128xf32> to vector<64x128xbf16>
    %c8 = arith.constant 8 : index
    %c0_60 = arith.constant 0 : index
    %c0_61 = arith.constant 0 : index
    %69 = vector.load %arg2[%c8, %c0_60, %c0_61] : memref<9x128x128xbf16, #tpu.memory_space<vmem>>, vector<1x128x128xbf16>
    %70 = vector.shape_cast %69 : vector<1x128x128xbf16> to vector<128x128xbf16>
    %cst_62 = arith.constant dense<0.000000e+00> : vector<64x128xf32>
    %71 = tpu.matmul %68, %70, %cst_62 {dimension_numbers = #tpu.dot_dimension_numbers<[1], [0], [0], [1], [0, 0, 1, 1], [], []>} : vector<64x128xbf16>, vector<128x128xbf16>, vector<64x128xf32> -> vector<64x128xf32>
    %72 = arith.addf %64, %71 : vector<64x128xf32>
    %c0_63 = arith.constant 0 : index
    %c0_64 = arith.constant 0 : index
    %73 = vector.load %arg3[%c0_63, %c0_64] : memref<1x128xf32, #tpu.memory_space<vmem>>, vector<1x128xf32>
    %74 = vector.broadcast %73 : vector<1x128xf32> to vector<64x128xf32>
    %75 = arith.addf %72, %74 : vector<64x128xf32>
    %cst_65 = arith.constant 0.000000e+00 : f32
    %76 = vector.broadcast %cst_65 : f32 to vector<64x128xf32>
    %77 = arith.maximumf %75, %76 : vector<64x128xf32>
    %cst_66 = arith.constant 0.000000e+00 : f32
    %78 = vector.broadcast %cst_66 : f32 to vector<10x10x128xf32>
    %c0_67 = arith.constant 0 : index
    %c0_68 = arith.constant 0 : index
    %c0_69 = arith.constant 0 : index
    %79 = vector.load %arg7[%c0_67, %c0_68, %c0_69] : memref<10x10x128xf32, #tpu.memory_space<vmem>>, vector<10x10x128xf32>
    tpu.vector_store %arg7[%c0_67, %c0_68, %c0_69], %78 {strides = array<i32>} : memref<10x10x128xf32, #tpu.memory_space<vmem>>, vector<10x10x128xf32>,
    %80 = vector.shape_cast %77 : vector<64x128xf32> to vector<8x8x128xf32>
    %c1_70 = arith.constant 1 : index
    %c1_71 = arith.constant 1 : index
    %c0_72 = arith.constant 0 : index
    %81 = vector.load %arg7[%c1_70, %c1_71, %c0_72] : memref<10x10x128xf32, #tpu.memory_space<vmem>>, vector<8x8x128xf32>
    tpu.vector_store %arg7[%c1_70, %c1_71, %c0_72], %80 {strides = array<i32>} : memref<10x10x128xf32, #tpu.memory_space<vmem>>, vector<8x8x128xf32>,
    %cst_73 = arith.constant 0.000000e+00 : f32
    %82 = vector.broadcast %cst_73 : f32 to vector<64x128xf32>
    %c0_74 = arith.constant 0 : index
    %c0_75 = arith.constant 0 : index
    %c0_76 = arith.constant 0 : index
    %83 = vector.load %arg7[%c0_74, %c0_75, %c0_76] : memref<10x10x128xf32, #tpu.memory_space<vmem>>, vector<8x8x128xf32>
    %84 = vector.shape_cast %83 : vector<8x8x128xf32> to vector<64x128xf32>
    %85 = arith.truncf %84 : vector<64x128xf32> to vector<64x128xbf16>
    %c0_77 = arith.constant 0 : index
    %c0_78 = arith.constant 0 : index
    %c0_79 = arith.constant 0 : index
    %86 = vector.load %arg4[%c0_77, %c0_78, %c0_79] : memref<9x128x128xbf16, #tpu.memory_space<vmem>>, vector<1x128x128xbf16>
    %87 = vector.shape_cast %86 : vector<1x128x128xbf16> to vector<128x128xbf16>
    %cst_80 = arith.constant dense<0.000000e+00> : vector<64x128xf32>
    %88 = tpu.matmul %85, %87, %cst_80 {dimension_numbers = #tpu.dot_dimension_numbers<[1], [0], [0], [1], [0, 0, 1, 1], [], []>} : vector<64x128xbf16>, vector<128x128xbf16>, vector<64x128xf32> -> vector<64x128xf32>
    %89 = arith.addf %82, %88 : vector<64x128xf32>
    %c0_81 = arith.constant 0 : index
    %c1_82 = arith.constant 1 : index
    %c0_83 = arith.constant 0 : index
    %90 = vector.load %arg7[%c0_81, %c1_82, %c0_83] : memref<10x10x128xf32, #tpu.memory_space<vmem>>, vector<8x8x128xf32>
    %91 = vector.shape_cast %90 : vector<8x8x128xf32> to vector<64x128xf32>
    %92 = arith.truncf %91 : vector<64x128xf32> to vector<64x128xbf16>
    %c1_84 = arith.constant 1 : index
    %c0_85 = arith.constant 0 : index
    %c0_86 = arith.constant 0 : index
    %93 = vector.load %arg4[%c1_84, %c0_85, %c0_86] : memref<9x128x128xbf16, #tpu.memory_space<vmem>>, vector<1x128x128xbf16>
    %94 = vector.shape_cast %93 : vector<1x128x128xbf16> to vector<128x128xbf16>
    %cst_87 = arith.constant dense<0.000000e+00> : vector<64x128xf32>
    %95 = tpu.matmul %92, %94, %cst_87 {dimension_numbers = #tpu.dot_dimension_numbers<[1], [0], [0], [1], [0, 0, 1, 1], [], []>} : vector<64x128xbf16>, vector<128x128xbf16>, vector<64x128xf32> -> vector<64x128xf32>
    %96 = arith.addf %89, %95 : vector<64x128xf32>
    %c0_88 = arith.constant 0 : index
    %c2_89 = arith.constant 2 : index
    %c0_90 = arith.constant 0 : index
    %97 = vector.load %arg7[%c0_88, %c2_89, %c0_90] : memref<10x10x128xf32, #tpu.memory_space<vmem>>, vector<8x8x128xf32>
    %98 = vector.shape_cast %97 : vector<8x8x128xf32> to vector<64x128xf32>
    %99 = arith.truncf %98 : vector<64x128xf32> to vector<64x128xbf16>
    %c2_91 = arith.constant 2 : index
    %c0_92 = arith.constant 0 : index
    %c0_93 = arith.constant 0 : index
    %100 = vector.load %arg4[%c2_91, %c0_92, %c0_93] : memref<9x128x128xbf16, #tpu.memory_space<vmem>>, vector<1x128x128xbf16>
    %101 = vector.shape_cast %100 : vector<1x128x128xbf16> to vector<128x128xbf16>
    %cst_94 = arith.constant dense<0.000000e+00> : vector<64x128xf32>
    %102 = tpu.matmul %99, %101, %cst_94 {dimension_numbers = #tpu.dot_dimension_numbers<[1], [0], [0], [1], [0, 0, 1, 1], [], []>} : vector<64x128xbf16>, vector<128x128xbf16>, vector<64x128xf32> -> vector<64x128xf32>
    %103 = arith.addf %96, %102 : vector<64x128xf32>
    %c1_95 = arith.constant 1 : index
    %c0_96 = arith.constant 0 : index
    %c0_97 = arith.constant 0 : index
    %104 = vector.load %arg7[%c1_95, %c0_96, %c0_97] : memref<10x10x128xf32, #tpu.memory_space<vmem>>, vector<8x8x128xf32>
    %105 = vector.shape_cast %104 : vector<8x8x128xf32> to vector<64x128xf32>
    %106 = arith.truncf %105 : vector<64x128xf32> to vector<64x128xbf16>
    %c3_98 = arith.constant 3 : index
    %c0_99 = arith.constant 0 : index
    %c0_100 = arith.constant 0 : index
    %107 = vector.load %arg4[%c3_98, %c0_99, %c0_100] : memref<9x128x128xbf16, #tpu.memory_space<vmem>>, vector<1x128x128xbf16>
    %108 = vector.shape_cast %107 : vector<1x128x128xbf16> to vector<128x128xbf16>
    %cst_101 = arith.constant dense<0.000000e+00> : vector<64x128xf32>
    %109 = tpu.matmul %106, %108, %cst_101 {dimension_numbers = #tpu.dot_dimension_numbers<[1], [0], [0], [1], [0, 0, 1, 1], [], []>} : vector<64x128xbf16>, vector<128x128xbf16>, vector<64x128xf32> -> vector<64x128xf32>
    %110 = arith.addf %103, %109 : vector<64x128xf32>
    %c1_102 = arith.constant 1 : index
    %c1_103 = arith.constant 1 : index
    %c0_104 = arith.constant 0 : index
    %111 = vector.load %arg7[%c1_102, %c1_103, %c0_104] : memref<10x10x128xf32, #tpu.memory_space<vmem>>, vector<8x8x128xf32>
    %112 = vector.shape_cast %111 : vector<8x8x128xf32> to vector<64x128xf32>
    %113 = arith.truncf %112 : vector<64x128xf32> to vector<64x128xbf16>
    %c4_105 = arith.constant 4 : index
    %c0_106 = arith.constant 0 : index
    %c0_107 = arith.constant 0 : index
    %114 = vector.load %arg4[%c4_105, %c0_106, %c0_107] : memref<9x128x128xbf16, #tpu.memory_space<vmem>>, vector<1x128x128xbf16>
    %115 = vector.shape_cast %114 : vector<1x128x128xbf16> to vector<128x128xbf16>
    %cst_108 = arith.constant dense<0.000000e+00> : vector<64x128xf32>
    %116 = tpu.matmul %113, %115, %cst_108 {dimension_numbers = #tpu.dot_dimension_numbers<[1], [0], [0], [1], [0, 0, 1, 1], [], []>} : vector<64x128xbf16>, vector<128x128xbf16>, vector<64x128xf32> -> vector<64x128xf32>
    %117 = arith.addf %110, %116 : vector<64x128xf32>
    %c1_109 = arith.constant 1 : index
    %c2_110 = arith.constant 2 : index
    %c0_111 = arith.constant 0 : index
    %118 = vector.load %arg7[%c1_109, %c2_110, %c0_111] : memref<10x10x128xf32, #tpu.memory_space<vmem>>, vector<8x8x128xf32>
    %119 = vector.shape_cast %118 : vector<8x8x128xf32> to vector<64x128xf32>
    %120 = arith.truncf %119 : vector<64x128xf32> to vector<64x128xbf16>
    %c5_112 = arith.constant 5 : index
    %c0_113 = arith.constant 0 : index
    %c0_114 = arith.constant 0 : index
    %121 = vector.load %arg4[%c5_112, %c0_113, %c0_114] : memref<9x128x128xbf16, #tpu.memory_space<vmem>>, vector<1x128x128xbf16>
    %122 = vector.shape_cast %121 : vector<1x128x128xbf16> to vector<128x128xbf16>
    %cst_115 = arith.constant dense<0.000000e+00> : vector<64x128xf32>
    %123 = tpu.matmul %120, %122, %cst_115 {dimension_numbers = #tpu.dot_dimension_numbers<[1], [0], [0], [1], [0, 0, 1, 1], [], []>} : vector<64x128xbf16>, vector<128x128xbf16>, vector<64x128xf32> -> vector<64x128xf32>
    %124 = arith.addf %117, %123 : vector<64x128xf32>
    %c2_116 = arith.constant 2 : index
    %c0_117 = arith.constant 0 : index
    %c0_118 = arith.constant 0 : index
    %125 = vector.load %arg7[%c2_116, %c0_117, %c0_118] : memref<10x10x128xf32, #tpu.memory_space<vmem>>, vector<8x8x128xf32>
    %126 = vector.shape_cast %125 : vector<8x8x128xf32> to vector<64x128xf32>
    %127 = arith.truncf %126 : vector<64x128xf32> to vector<64x128xbf16>
    %c6_119 = arith.constant 6 : index
    %c0_120 = arith.constant 0 : index
    %c0_121 = arith.constant 0 : index
    %128 = vector.load %arg4[%c6_119, %c0_120, %c0_121] : memref<9x128x128xbf16, #tpu.memory_space<vmem>>, vector<1x128x128xbf16>
    %129 = vector.shape_cast %128 : vector<1x128x128xbf16> to vector<128x128xbf16>
    %cst_122 = arith.constant dense<0.000000e+00> : vector<64x128xf32>
    %130 = tpu.matmul %127, %129, %cst_122 {dimension_numbers = #tpu.dot_dimension_numbers<[1], [0], [0], [1], [0, 0, 1, 1], [], []>} : vector<64x128xbf16>, vector<128x128xbf16>, vector<64x128xf32> -> vector<64x128xf32>
    %131 = arith.addf %124, %130 : vector<64x128xf32>
    %c2_123 = arith.constant 2 : index
    %c1_124 = arith.constant 1 : index
    %c0_125 = arith.constant 0 : index
    %132 = vector.load %arg7[%c2_123, %c1_124, %c0_125] : memref<10x10x128xf32, #tpu.memory_space<vmem>>, vector<8x8x128xf32>
    %133 = vector.shape_cast %132 : vector<8x8x128xf32> to vector<64x128xf32>
    %134 = arith.truncf %133 : vector<64x128xf32> to vector<64x128xbf16>
    %c7_126 = arith.constant 7 : index
    %c0_127 = arith.constant 0 : index
    %c0_128 = arith.constant 0 : index
    %135 = vector.load %arg4[%c7_126, %c0_127, %c0_128] : memref<9x128x128xbf16, #tpu.memory_space<vmem>>, vector<1x128x128xbf16>
    %136 = vector.shape_cast %135 : vector<1x128x128xbf16> to vector<128x128xbf16>
    %cst_129 = arith.constant dense<0.000000e+00> : vector<64x128xf32>
    %137 = tpu.matmul %134, %136, %cst_129 {dimension_numbers = #tpu.dot_dimension_numbers<[1], [0], [0], [1], [0, 0, 1, 1], [], []>} : vector<64x128xbf16>, vector<128x128xbf16>, vector<64x128xf32> -> vector<64x128xf32>
    %138 = arith.addf %131, %137 : vector<64x128xf32>
    %c2_130 = arith.constant 2 : index
    %c2_131 = arith.constant 2 : index
    %c0_132 = arith.constant 0 : index
    %139 = vector.load %arg7[%c2_130, %c2_131, %c0_132] : memref<10x10x128xf32, #tpu.memory_space<vmem>>, vector<8x8x128xf32>
    %140 = vector.shape_cast %139 : vector<8x8x128xf32> to vector<64x128xf32>
    %141 = arith.truncf %140 : vector<64x128xf32> to vector<64x128xbf16>
    %c8_133 = arith.constant 8 : index
    %c0_134 = arith.constant 0 : index
    %c0_135 = arith.constant 0 : index
    %142 = vector.load %arg4[%c8_133, %c0_134, %c0_135] : memref<9x128x128xbf16, #tpu.memory_space<vmem>>, vector<1x128x128xbf16>
    %143 = vector.shape_cast %142 : vector<1x128x128xbf16> to vector<128x128xbf16>
    %cst_136 = arith.constant dense<0.000000e+00> : vector<64x128xf32>
    %144 = tpu.matmul %141, %143, %cst_136 {dimension_numbers = #tpu.dot_dimension_numbers<[1], [0], [0], [1], [0, 0, 1, 1], [], []>} : vector<64x128xbf16>, vector<128x128xbf16>, vector<64x128xf32> -> vector<64x128xf32>
    %145 = arith.addf %138, %144 : vector<64x128xf32>
    %c0_137 = arith.constant 0 : index
    %c0_138 = arith.constant 0 : index
    %146 = vector.load %arg5[%c0_137, %c0_138] : memref<1x128xf32, #tpu.memory_space<vmem>>, vector<1x128xf32>
    %147 = vector.broadcast %146 : vector<1x128xf32> to vector<64x128xf32>
    %148 = arith.addf %145, %147 : vector<64x128xf32>
    %c0_139 = arith.constant 0 : index
    %c1_140 = arith.constant 1 : index
    %c1_141 = arith.constant 1 : index
    %c0_142 = arith.constant 0 : index
    %149 = vector.load %arg1[%c0_139, %c1_140, %c1_141, %c0_142] : memref<1x10x10x128xf32, #tpu.memory_space<vmem>>, vector<1x8x8x128xf32>
    %150 = vector.shape_cast %149 : vector<1x8x8x128xf32> to vector<8x8x128xf32>
    %151 = vector.shape_cast %150 : vector<8x8x128xf32> to vector<64x128xf32>
    %152 = arith.addf %148, %151 : vector<64x128xf32>
    %cst_143 = arith.constant 0.000000e+00 : f32
    %153 = vector.broadcast %cst_143 : f32 to vector<64x128xf32>
    %154 = arith.maximumf %152, %153 : vector<64x128xf32>
    %155 = vector.shape_cast %154 : vector<64x128xf32> to vector<8x8x128xf32>
    %c0_144 = arith.constant 0 : index
    %c0_145 = arith.constant 0 : index
    %c0_146 = arith.constant 0 : index
    %c0_147 = arith.constant 0 : index
    %156 = vector.load %arg6[%c0_144, %c0_145, %c0_146, %c0_147] : memref<1x8x8x128xf32, #tpu.memory_space<vmem>>, vector<1x8x8x128xf32>
    %157 = vector.shape_cast %156 : vector<1x8x8x128xf32> to vector<8x8x128xf32>
    %158 = vector.shape_cast %155 : vector<8x8x128xf32> to vector<1x8x8x128xf32>
    tpu.vector_store %arg6[%c0_144, %c0_145, %c0_146, %c0_147], %158 {strides = array<i32>} : memref<1x8x8x128xf32, #tpu.memory_space<vmem>>, vector<1x8x8x128xf32>,
    return
  }
  func.func @transform_0(%arg0: i32) -> (i32, i32, i32, i32) {
    %c0_i32 = arith.constant 0 : i32
    %c0_i32_0 = arith.constant 0 : i32
    %c0_i32_1 = arith.constant 0 : i32
    %c0_i32_2 = arith.constant 0 : i32
    return %arg0, %c0_i32, %c0_i32_0, %c0_i32_1 : i32, i32, i32, i32
  }
  func.func @transform_1(%arg0: i32) -> (i32, i32, i32) {
    %c0_i32 = arith.constant 0 : i32
    %c0_i32_0 = arith.constant 0 : i32
    %c0_i32_1 = arith.constant 0 : i32
    %c0_i32_2 = arith.constant 0 : i32
    return %c0_i32, %c0_i32_0, %c0_i32_1 : i32, i32, i32
  }
  func.func @transform_2(%arg0: i32) -> (i32, i32) {
    %c0_i32 = arith.constant 0 : i32
    %c0_i32_0 = arith.constant 0 : i32
    %c0_i32_1 = arith.constant 0 : i32
    return %c0_i32, %c0_i32_0 : i32, i32
  }
  func.func @transform_3(%arg0: i32) -> (i32, i32, i32) {
    %c0_i32 = arith.constant 0 : i32
    %c0_i32_0 = arith.constant 0 : i32
    %c0_i32_1 = arith.constant 0 : i32
    %c0_i32_2 = arith.constant 0 : i32
    return %c0_i32, %c0_i32_0, %c0_i32_1 : i32, i32, i32
  }
  func.func @transform_4(%arg0: i32) -> (i32, i32) {
    %c0_i32 = arith.constant 0 : i32
    %c0_i32_0 = arith.constant 0 : i32
    %c0_i32_1 = arith.constant 0 : i32
    return %c0_i32, %c0_i32_0 : i32, i32
  }
  func.func @transform_5(%arg0: i32) -> (i32, i32, i32, i32) {
    %c0_i32 = arith.constant 0 : i32
    %c0_i32_0 = arith.constant 0 : i32
    %c0_i32_1 = arith.constant 0 : i32
    %c0_i32_2 = arith.constant 0 : i32
    return %arg0, %c0_i32, %c0_i32_0, %c0_i32_1 : i32, i32, i32, i32
  }
}

</mosaic_0001>

<bundles_post_ra>
// kernel: _lambda_.2
= control target key start
LH: loop header
LB: loop body
LE: loop exit
PB: predicated region body
PF: predicated region fallthrough
CT: control target
= control target key end

     0   :  { %s4649_s24 = smov 0   ;;  %s5619_s0 = inlined_call_operand.vmem [shape: f32[8,9,9,128], index: 0, kind: input, shape index: {}]   ;;  %s5620_s1 = inlined_call_operand.vmem [shape: bf16[9,128,128], index: 1, kind: input, shape index: {}]   ;;  %s5621_s2 = inlined_call_operand.vmem [shape: f32[1,128], index: 2, kind: input, shape index: {}]   ;;  %s5622_s3 = inlined_call_operand.vmem [shape: bf16[9,128,128], index: 3, kind: input, shape index: {}]   ;;  %s5623_s4 = inlined_call_operand.vmem [shape: f32[1,128], index: 4, kind: input, shape index: {}]   ;;  %s5624_s5 = inlined_call_operand.vmem [shape: bf16[128,128], index: 5, kind: input, shape index: {}]   ;;  %s5625_s6 = inlined_call_operand.vmem [shape: f32[1,128], index: 6, kind: input, shape index: {}]   ;;  %s5626_s7 = inlined_call_operand.vmem [shape: f32[2,8,8,128], index: 7, kind: output, shape index: {}]  }
   0x1 LB: > { %s4655_s25 = sadd.s32 4294967295, %s4606_s24   ;;  %p3255_p0 = scmp.ge.s32.totalorder %s4606_s24, 1  ;;  %s4606_s24 = sphi %s4649_s24, %s17_s24  }
   0x2   : > { %p239_p1 = scmp.lt.s32.totalorder %s4606_s24, 3 }
   0x4   : > { %p240_p2 = pnand %p3255_p0, %p239_p1 }
   0x6   : > { %243 = sbr.rel (%p240_p2) target bundleno = 747 (0x2eb), region = 48 }
   0xb   : > { %v4448_v0 = vld [vmem:[%s5620_s1 + $0x78] sm:$0xff]   ;;  %s3256_s28 = sshll.u32 %s4655_s25, 2  ;;  %v4450_v2 = vld [vmem:[%s5620_s1 + $0x70] sm:$0xff]   ;;  %v4452_v4 = vld [vmem:[%s5620_s1 + $0x68] sm:$0xff]   ;;  %p279_p4 = scmp.lt.s32.totalorder %s4655_s25, 1 }
   0xc   : > { %v4449_v1 = vld [vmem:[%s5620_s1 + $0x38] sm:$0xff]   ;;  %p273_p3 = scmp.lt.s32.totalorder %s3256_s28, 7  ;;  %3966 = vmatprep.subr.bf16.mxu0 %v4448_v0  ;;  %v4451_v3 = vld [vmem:[%s5620_s1 + $0x30] sm:$0xff]   ;;  %v4453_v5 = vld [vmem:[%s5620_s1 + $0x28] sm:$0xff]  }
   0xd   : > { %3990 = vmatprep.subr.bf16.mxu1 %v4449_v1  ;;  %3967 = vmatpush3.bf16.msra.mxu0 %v4448_v0  ;;  %v4454_v6 = vld [vmem:[%s5620_s1 + $0x60] sm:$0xff]   ;;  %v4456_v8 = vld [vmem:[%s5620_s1 + $0x58] sm:$0xff]   ;;  %v4458_v10 = vld [vmem:[%s5620_s1 + $0x50] sm:$0xff]   ;;  %s5657_s25 = smov (!%p279_p4, %s4655_s25), 1 }
   0xe   : > { %3991 = vmatpush3.bf16.msra.mxu1 %v4449_v1  ;;  %3968 = vmatprep.subr.bf16.mxu0 %v4450_v2  ;;  %s5655_s28 = smov (!%p273_p3, %s3256_s28), 7  ;;  %v4455_v7 = vld [vmem:[%s5620_s1 + $0x20] sm:$0xff]   ;;  %v4457_v9 = vld [vmem:[%s5620_s1 + $0x18] sm:$0xff]   ;;  %v4459_v14 = vld [vmem:[%s5620_s1 + $0x10] sm:$0xff]   ;;  %s3737_s16 = sshll.u32 %s5657_s25, 6 }
   0xf   : > { %3992 = vmatprep.subr.bf16.mxu1 %v4451_v3  ;;  %s4438_s20 = smul.u32 144, %s5655_s28  ;;  %v4460_v22 = vld [vmem:[%s5620_s1 + $0x48] sm:$0xff]   ;;  %v4462_v24 = vld [vmem:[%s5620_s1 + $0x40] sm:$0xff]   ;;  %v4464_v29 = vld [vmem:[%s5620_s1 + $0xb8] sm:$0xff]   ;;  %s5566_s19 = scalar_lea.vmem %s5626_s7, %s3737_s16 }
  0x10   : > { %v4461_v23 = vld [vmem:[%s5620_s1 + $0x8] sm:$0xff]   ;;  %v4463_v25 = vld [vmem:[%s5620_s1] sm:$0xff]   ;;  %v4465_v30 = vld [vmem:[%s5620_s1 + $0xf8] sm:$0xff]  }
  0x11   : > { %3969 = vmatpush3.bf16.msra.mxu0 %v4450_v2  ;;  %s4693_s30 = scalar_lea.vmem %s5619_s0, %s4438_s20  ;;  %v4466_v42 = vld [vmem:[%s5620_s1 + $0xb0] sm:$0xff]   ;;  %v4468_v45 = vld [vmem:[%s5620_s1 + $0xa8] sm:$0xff]   ;;  %v4470_v57 = vld [vmem:[%s5620_s1 + $0xa0] sm:$0xff]  }
  0x12   : > { %3993 = vmatpush3.bf16.msra.mxu1 %v4451_v3  ;;  %3970 = vmatprep.subr.bf16.mxu0 %v4452_v4  ;;  %v3260_v11 = vld [vmem:[%s4693_s30 + $0x90] sm:$0xff]  ;;  %v4700_v12 = vld [vmem:[%s4693_s30 + $0xa0] sm:$0xff]  ;;  %v4469_v49 = vld [vmem:[%s5620_s1 + $0xe8] sm:$0xff]  }
  0x13   : > { %3994 = vmatprep.subr.bf16.mxu1 %v4453_v5  ;;  %v285_v13 = vld [vmem:[%s4693_s30] sm:$0xff]  ;;  %v322_v15 = vpack.c.bf16 %v4700_v12, %v3260_v11  ;;  %v4708_v16 = vld [vmem:[%s4693_s30 + $0x10] sm:$0xff]  ;;  %v4472_v61 = vld [vmem:[%s5620_s1 + $0x98] sm:$0xff]  }
  0x14   : > { %v4711_v17 = vld [vmem:[%s4693_s30 + $0xb0] sm:$0xff]  ;;  %v293_v18 = vpack.c.bf16 %v4708_v16, %v285_v13  ;;  %v4715_v19 = vld [vmem:[%s4693_s30 + $0x20] sm:$0xff]  ;;  %v4473_v3 = vld [vmem:[%s5620_s1 + $0xd8] sm:$0xff]  }
  0x15   : > { %3971 = vmatpush3.bf16.msra.mxu0 %v4452_v4  ;;  %v1331_v20 = vpack.c.bf16 %v4711_v17, %v4700_v12  ;;  %3982 = vmatprep.mubr.bf16.mxu0 %v322_v15  ;;  %v1180_v21 = vpack.c.bf16 %v4715_v19, %v4708_v16  ;;  %v4734_v26 = vld [vmem:[%s4693_s30 + $0xc0] sm:$0xff]  ;;  %v4737_v27 = vld [vmem:[%s4693_s30 + $0x30] sm:$0xff]  ;;  %v4480_v13 = vld [vmem:[%s5620_s1 + $0x138] sm:$0xff]  }
  0x16   : > { %3995 = vmatpush3.bf16.msra.mxu1 %v4453_v5  ;;  %3972 = vmatprep.subr.bf16.mxu0 %v4454_v6  ;;  %v4740_v28 = vld [vmem:[%s4693_s30 + $0xd0] sm:$0xff]  ;;  %v4749_v31 = vld [vmem:[%s4693_s30 + $0x40] sm:$0xff]  ;;  %v323_v35 = vpack.c.bf16 %v4734_v26, %v4711_v17  ;;  %v294_v39 = vpack.c.bf16 %v4737_v27, %v4715_v19  ;;  %v4508_v16 = vld [vmem:[%s5620_s1 + $0x188] sm:$0xff]  }
  0x17   : > { %3996 = vmatprep.subr.bf16.mxu1 %v4455_v7  ;;  %4006 = vmatprep.mubr.bf16.mxu1 %v293_v18  ;;  %v1332_v32 = vpack.c.bf16 %v4740_v28, %v4734_v26  ;;  %v4754_v33 = vld [vmem:[%s4693_s30 + $0xe0] sm:$0xff]  ;;  %v1181_v34 = vpack.c.bf16 %v4749_v31, %v4737_v27  ;;  %v4761_v36 = vld [vmem:[%s4693_s30 + $0x50] sm:$0xff]  ;;  %v4481_v18 = vld [vmem:[%s5620_s1 + $0x178] sm:$0xff]  }
  0x18   : > { %v4764_v37 = vld [vmem:[%s4693_s30 + $0xf0] sm:$0xff]  ;;  %v4767_v38 = vld [vmem:[%s4693_s30 + $0x60] sm:$0xff]  ;;  %v324_v44 = vpack.c.bf16 %v4754_v33, %v4740_v28  ;;  %v295_v46 = vpack.c.bf16 %v4761_v36, %v4749_v31  ;;  %v4509_v19 = vld [vmem:[%s5620_s1 + $0x1c8] sm:$0xff]  }
  0x19   : > { %3973 = vmatpush3.bf16.msra.mxu0 %v4454_v6  ;;  %v1182_v40 = vpack.c.bf16 %v4767_v38, %v4761_v36  ;;  %v1333_v41 = vpack.c.bf16 %v4764_v37, %v4754_v33  ;;  %v4467_v43 = vld [vmem:[%s5620_s1 + $0xf0] sm:$0xff]   ;;  %v4789_v47 = vld [vmem:[%s4693_s30 + $0x100] sm:$0xff]  ;;  %v4516_v26 = vld [vmem:[%s5620_s1 + $0x218] sm:$0xff]  }
  0x1a   : > { %3997 = vmatpush3.bf16.msra.mxu1 %v4455_v7  ;;  %3974 = vmatprep.subr.bf16.mxu0 %v4456_v8  ;;  %v4792_v48 = vld [vmem:[%s4693_s30 + $0x70] sm:$0xff]  ;;  %v569_v50 = vld [vmem:[%s4693_s30 + $0x1] sm:$0xff]  ;;  %v325_v51 = vpack.c.bf16 %v4789_v47, %v4764_v37 }
  0x1b   : > { %3998 = vmatprep.subr.bf16.mxu1 %v4457_v9  ;;  %v4801_v52 = vld [vmem:[%s4693_s30 + $0x11] sm:$0xff]  ;;  %v4804_v53 = vld [vmem:[%s4693_s30 + $0x21] sm:$0xff]  ;;  %v296_v54 = vpack.c.bf16 %v4792_v48, %v4767_v38 }
  0x1c   : > { %v3324_v55 = vld [vmem:[%s4693_s30 + $0x120] sm:$0xff]  ;;  %v1481_v56 = vpack.c.bf16 %v4804_v53, %v4801_v52  ;;  %v3325_v58 = vld [vmem:[%s4693_s30 + $0x130] sm:$0xff]  ;;  %v577_v60 = vpack.c.bf16 %v4801_v52, %v569_v50  ;;  %v4520_v38 = vld [vmem:[%s5622_s3 + $0x78] sm:$0xff]  }
  0x1d   : > { %3975 = vmatpush3.bf16.msra.mxu0 %v4456_v8  ;;  %v4471_v59 = vld [vmem:[%s5620_s1 + $0xe0] sm:$0xff]   ;;  %v728_v62 = vpack.c.bf16 %v3325_v58, %v3324_v55  ;;  %v4823_v63 = vld [vmem:[%s4693_s30 + $0x31] sm:$0xff]  ;;  %v4476_v8 = vld [vmem:[%s5620_s1 + $0x88] sm:$0xff]  }
  0x1e   : > { %3999 = vmatpush3.bf16.msra.mxu1 %v4457_v9  ;;  %3976 = vmatprep.subr.bf16.mxu0 %v4458_v10  ;;  %v4826_v0 = vld [vmem:[%s4693_s30 + $0x41] sm:$0xff]  ;;  %v4829_v1 = vld [vmem:[%s4693_s30 + $0x51] sm:$0xff] }
  0x1f   : > { %4000 = vmatprep.subr.bf16.mxu1 %v4459_v14  ;;  %v4832_v2 = vld [vmem:[%s4693_s30 + $0x61] sm:$0xff]  ;;  %v1482_v4 = vpack.c.bf16 %v4826_v0, %v4823_v63  ;;  %v4474_v6 = vld [vmem:[%s5620_s1 + $0x90] sm:$0xff]  }
  0x20   : > { %v1483_v5 = vpack.c.bf16 %v4832_v2, %v4829_v1  ;;  %v4475_v7 = vld [vmem:[%s5620_s1 + $0xd0] sm:$0xff]   ;;  %v4477_v9 = vld [vmem:[%s5620_s1 + $0xc8] sm:$0xff]   ;;  %v4479_v11 = vld [vmem:[%s5620_s1 + $0xc0] sm:$0xff]  }
  0x21   : > { %3977 = vmatpush3.bf16.msra.mxu0 %v4458_v10  ;;  %v4478_v10 = vld [vmem:[%s5620_s1 + $0x80] sm:$0xff]   ;;  %v3327_v15 = vld [vmem:[%s4693_s30 + $0x150] sm:$0xff]  ;;  %v4525_v52 = vld [vmem:[%s5622_s3 + $0x28] sm:$0xff]  }
  0x22   : > { %4001 = vmatpush3.bf16.msra.mxu1 %v4459_v14  ;;  %3978 = vmatprep.subr.bf16.mxu0 %v4460_v22  ;;  %v3326_v14 = vld [vmem:[%s4693_s30 + $0x140] sm:$0xff]  ;;  %v4517_v28 = vld [vmem:[%s5620_s1 + $0x210] sm:$0xff]  }
  0x23   : > { %4002 = vmatprep.subr.bf16.mxu1 %v4461_v23  ;;  %v3357_v50 = vld [vmem:[%s4693_s30 + $0x1c0] sm:$0xff] }
  0x24   : > { %v4486_v58 = vld [vmem:[%s5620_s1 + $0x120] sm:$0xff]  }
  0x25   : > { %3979 = vmatpush3.bf16.msra.mxu0 %v4460_v22  ;;  %v578_v22 = vpack.c.bf16 %v4823_v63, %v4804_v53  ;;  %v4510_v12 = vld [vmem:[%s5620_s1 + $0x180] sm:$0xff]  }
  0x26   : > { %4003 = vmatpush3.bf16.msra.mxu1 %v4461_v23  ;;  %3980 = vmatprep.subr.bf16.mxu0 %v4462_v24  ;;  %v3328_v23 = vld [vmem:[%s4693_s30 + $0x160] sm:$0xff] }
  0x27   : > { %4004 = vmatprep.subr.bf16.mxu1 %v4463_v25  ;;  %v4511_v17 = vld [vmem:[%s5620_s1 + $0x1c0] sm:$0xff]  }
  0x28   : > { %v4515_v31 = vld [vmem:[%s5620_s1 + $0x220] sm:$0xff]  }
  0x29   : > { %3981 = vmatpush3.bf16.msra.mxu0 %v4462_v24  ;;  %v729_v24 = vpack.c.bf16 %v3327_v15, %v3326_v14  ;;  %v3359_v14 = vld [vmem:[%s4693_s30 + $0x1e0] sm:$0xff]  ;;  %v4496_v15 = vld [vmem:[%s5620_s1 + $0x1b8] sm:$0xff]  }
  0x2a   : > { %4005 = vmatpush3.bf16.msra.mxu1 %v4463_v25  ;;  %4014 = vmatprep.subr.bf16.mxu0 %v4464_v29  ;;  %v3329_v25 = vld [vmem:[%s4693_s30 + $0x170] sm:$0xff]  ;;  %v4519_v33 = vld [vmem:[%s5620_s1 + $0x200] sm:$0xff]  }
  0x2b   : > { %4038 = vmatprep.subr.bf16.mxu1 %v4465_v30  ;;  %v3491_v36 = vld [vmem:[%s4693_s30 + $0x81] sm:$0xff] }
  0x2c   : > { %3983 = vmatmul.mubr.bf16.vlgmr.msra.gmra.mxu0 %v323_v35  ;;  %v579_v35 = vpack.c.bf16 %v4829_v1, %v4826_v0  ;;  %v4526_v53 = vld [vmem:[%s5622_s3 + $0x60] sm:$0xff]   ;;  %v4530_v0 = vld [vmem:[%s5622_s3 + $0x50] sm:$0xff]   ;;  %v5627_v1 = vmov 0.0  }
  0x2d   : > { %4007 = vmatmul.mubr.bf16.vlgmr.msra.gmra.mxu1 %v294_v39  ;;  %4015 = vmatpush3.bf16.msra.mxu0 %v4464_v29  ;;  %v4482_v29 = vld [vmem:[%s5620_s1 + $0x130] sm:$0xff]   ;;  %v4527_v63 = vld [vmem:[%s5622_s3 + $0x20] sm:$0xff]   ;;  %1652 = vst [vmem:[#allocation2 + $0x30] sm:$0xff] %v5627_v1  ;;  %1653 = vst [vmem:[#allocation2 + $0x38] sm:$0x3] %v5627_v1 }
  0x2e   : > { %4039 = vmatpush3.bf16.msra.mxu1 %v4465_v30  ;;  %4016 = vmatprep.subr.bf16.mxu0 %v4466_v42  ;;  %v4483_v30 = vld [vmem:[%s5620_s1 + $0x170] sm:$0xff]   ;;  %1646 = vst [vmem:[#allocation2] sm:$0xff] %v5627_v1  ;;  %1647 = vst [vmem:[#allocation2 + $0x8] sm:$0x3] %v5627_v1 }
  0x2f   : > { %4040 = vmatprep.subr.bf16.mxu1 %v4467_v43  ;;  %3986 = vmatprep.mubr.bf16.mxu0 %v324_v44  ;;  %v4880_v39 = vld [vmem:[%s4693_s30 + $0x71] sm:$0xff]  ;;  %v3330_v44 = vld [vmem:[%s4693_s30 + $0x180] sm:$0xff]  ;;  %1648 = vst [vmem:[#allocation2 + $0x10] sm:$0xff] %v5627_v1  ;;  %1649 = vst [vmem:[#allocation2 + $0x18] sm:$0x3] %v5627_v1 }
  0x30   : > { %4010 = vmatprep.mubr.bf16.mxu1 %v295_v46  ;;  %v4485_v46 = vld [vmem:[%s5620_s1 + $0x168] sm:$0xff]   ;;  %v1484_v37 = vpack.c.bf16 %v3491_v36, %v4880_v39  ;;  %1650 = vst [vmem:[#allocation2 + $0x20] sm:$0xff] %v5627_v1  ;;  %1651 = vst [vmem:[#allocation2 + $0x28] sm:$0x3] %v5627_v1 }
  0x31   : > { %4017 = vmatpush3.bf16.msra.mxu0 %v4466_v42  ;;  %v730_v42 = vpack.c.bf16 %v3329_v25, %v3328_v23  ;;  %v4497_v23 = vld [vmem:[%s5620_s1 + $0x1f8] sm:$0xff]   ;;  %v3361_v25 = vld [vmem:[%s4693_s30 + $0x200] sm:$0xff]  ;;  %1654 = vst [vmem:[#allocation2 + $0x40] sm:$0xff] %v5627_v1  ;;  %1655 = vst [vmem:[#allocation2 + $0x48] sm:$0x3] %v5627_v1 }
  0x32   : > { %4041 = vmatpush3.bf16.msra.mxu1 %v4467_v43  ;;  %4018 = vmatprep.subr.bf16.mxu0 %v4468_v45  ;;  %v4484_v43 = vld [vmem:[%s5620_s1 + $0x128] sm:$0xff]   ;;  %1656 = vst [vmem:[#allocation2 + $0x50] sm:$0xff] %v5627_v1  ;;  %1657 = vst [vmem:[#allocation2 + $0x58] sm:$0x3] %v5627_v1 }
  0x33   : > { %4042 = vmatprep.subr.bf16.mxu1 %v4469_v49  ;;  %1658 = vst [vmem:[#allocation2 + $0x60] sm:$0xff] %v5627_v1  ;;  %1659 = vst [vmem:[#allocation2 + $0x68] sm:$0x3] %v5627_v1 }
  0x34   : > { %3987 = vmatmul.mubr.bf16.gmra.mxu0 %v325_v51  ;;  %v580_v51 = vpack.c.bf16 %v4880_v39, %v4832_v2  ;;  %1660 = vst [vmem:[#allocation2 + $0x70] sm:$0xff] %v5627_v1  ;;  %1661 = vst [vmem:[#allocation2 + $0x78] sm:$0x3] %v5627_v1  ;;  %v4529_v2 = vld [vmem:[%s5622_s3 + $0x18] sm:$0xff]   ;;  %v4534_v39 = vld [vmem:[%s5622_s3 + $0x40] sm:$0xff]  }
  0x35   : > { %4019 = vmatpush3.bf16.msra.mxu0 %v4468_v45  ;;  %4011 = vmatmul.mubr.bf16.gmra.mxu1 %v296_v54  ;;  %v3331_v45 = vld [vmem:[%s4693_s30 + $0x190] sm:$0xff]  ;;  %v3388_v54 = vld [vmem:[%s4693_s30 + $0x121] sm:$0xff]  ;;  %1662 = vst [vmem:[#allocation2 + $0x80] sm:$0xff] %v5627_v1  ;;  %1663 = vst [vmem:[#allocation2 + $0x88] sm:$0x3] %v5627_v1 }
  0x36   : > { %4043 = vmatpush3.bf16.msra.mxu1 %v4469_v49  ;;  %4020 = vmatprep.subr.bf16.mxu0 %v4470_v57  ;;  %v3356_v49 = vld [vmem:[%s4693_s30 + $0x1b0] sm:$0xff]  ;;  %v731_v55 = vpack.c.bf16 %v3331_v45, %v3330_v44  ;;  %1664 = vst [vmem:[#allocation2 + $0x90] sm:$0xff] %v5627_v1  ;;  %1665 = vst [vmem:[#allocation2 + $0x98] sm:$0x3] %v5627_v1 }
  0x37   : > { %4044 = vmatprep.subr.bf16.mxu1 %v4471_v59  ;;  %4030 = vmatprep.mubr.bf16.mxu0 %v577_v60  ;;  %v879_v60 = vpack.c.bf16 %v3357_v50, %v3356_v49  ;;  %v4499_v44 = vld [vmem:[%s5620_s1 + $0x1f0] sm:$0xff]   ;;  %v3363_v49 = vld [vmem:[%s4693_s30 + $0x220] sm:$0xff]  ;;  %v4500_v50 = vld [vmem:[%s5620_s1 + $0x1a8] sm:$0xff]  }
  0x38   : > { %4054 = vmatprep.mubr.bf16.mxu1 %v728_v62  ;;  %v4488_v62 = vld [vmem:[%s5620_s1 + $0x118] sm:$0xff]  }
  0x39   : > { %4021 = vmatpush3.bf16.msra.mxu0 %v4470_v57  ;;  %v3389_v57 = vld [vmem:[%s4693_s30 + $0x131] sm:$0xff] }
  0x3a   : > { %4045 = vmatpush3.bf16.msra.mxu1 %v4471_v59  ;;  %4022 = vmatprep.subr.bf16.mxu0 %v4472_v61  ;;  %v4487_v59 = vld [vmem:[%s5620_s1 + $0x160] sm:$0xff]  }
  0x3b   : > { %4046 = vmatprep.subr.bf16.mxu1 %v4473_v3 }
  0x3d   : > { %4023 = vmatpush3.bf16.msra.mxu0 %v4472_v61  ;;  %v1029_v61 = vpack.c.bf16 %v3389_v57, %v3388_v54  ;;  %v3394_v54 = vld [vmem:[%s4693_s30 + $0x181] sm:$0xff] }
  0x3e   : > { %4047 = vmatpush3.bf16.msra.mxu1 %v4473_v3  ;;  %4024 = vmatprep.subr.bf16.mxu0 %v4474_v6  ;;  %v4489_v3 = vld [vmem:[%s5620_s1 + $0x158] sm:$0xff]   ;;  %v4501_v57 = vld [vmem:[%s5620_s1 + $0x1e8] sm:$0xff]  }
  0x3f   : > { %4048 = vmatprep.subr.bf16.mxu1 %v4475_v7 }
  0x41   : > { %4025 = vmatpush3.bf16.msra.mxu0 %v4474_v6  ;;  %v4490_v6 = vld [vmem:[%s5620_s1 + $0x110] sm:$0xff]  }
  0x42   : > { %4049 = vmatpush3.bf16.msra.mxu1 %v4475_v7  ;;  %4026 = vmatprep.subr.bf16.mxu0 %v4476_v8  ;;  %v4491_v7 = vld [vmem:[%s5620_s1 + $0x150] sm:$0xff]  }
  0x43   : > { %4050 = vmatprep.subr.bf16.mxu1 %v4477_v9 }
  0x45   : > { %4027 = vmatpush3.bf16.msra.mxu0 %v4476_v8  ;;  %v4492_v8 = vld [vmem:[%s5620_s1 + $0x108] sm:$0xff]  }
  0x46   : > { %4051 = vmatpush3.bf16.msra.mxu1 %v4477_v9  ;;  %4028 = vmatprep.subr.bf16.mxu0 %v4478_v10  ;;  %v4493_v9 = vld [vmem:[%s5620_s1 + $0x148] sm:$0xff]  }
  0x47   : > { %4052 = vmatprep.subr.bf16.mxu1 %v4479_v11 }
  0x49   : > { %4029 = vmatpush3.bf16.msra.mxu0 %v4478_v10  ;;  %v4494_v10 = vld [vmem:[%s5620_s1 + $0x100] sm:$0xff]  }
  0x4a   : > { %4053 = vmatpush3.bf16.msra.mxu1 %v4479_v11  ;;  %4062 = vmatprep.subr.bf16.mxu0 %v4480_v13  ;;  %v4495_v11 = vld [vmem:[%s5620_s1 + $0x140] sm:$0xff]  }
  0x4b   : > { %4086 = vmatprep.subr.bf16.mxu1 %v4481_v18 }
  0x4c   : > { %4031 = vmatmul.mubr.bf16.vlgmr.msra.gmra.mxu0 %v578_v22  ;;  %v3391_v22 = vld [vmem:[%s4693_s30 + $0x151] sm:$0xff] }
  0x4d   : > { %4063 = vmatpush3.bf16.msra.mxu0 %v4480_v13  ;;  %4055 = vmatmul.mubr.bf16.vlgmr.msra.gmra.mxu1 %v729_v24  ;;  %v3358_v13 = vld [vmem:[%s4693_s30 + $0x1d0] sm:$0xff] }
  0x4e   : > { %4087 = vmatpush3.bf16.msra.mxu1 %v4481_v18  ;;  %4064 = vmatprep.subr.bf16.mxu0 %v4482_v29  ;;  %v3390_v18 = vld [vmem:[%s4693_s30 + $0x141] sm:$0xff]  ;;  %v3360_v24 = vld [vmem:[%s4693_s30 + $0x1f0] sm:$0xff] }
  0x4f   : > { %4088 = vmatprep.subr.bf16.mxu1 %v4483_v30  ;;  %4034 = vmatprep.mubr.bf16.mxu0 %v579_v35  ;;  %v880_v35 = vpack.c.bf16 %v3359_v14, %v3358_v13  ;;  %v881_v45 = vpack.c.bf16 %v3361_v25, %v3360_v24  ;;  %v4533_v13 = vld [vmem:[%s5622_s3 + $0x8] sm:$0xff]   ;;  %v5113_v14 = vld [vmem:[%s5622_s3 + $0xb8] sm:$0xff]  }
  0x50   : > { %4058 = vmatprep.mubr.bf16.mxu1 %v730_v42  ;;  %v4498_v42 = vld [vmem:[%s5620_s1 + $0x1b0] sm:$0xff]   ;;  %5631 = vst [vmem:[#allocation3_spill] sm:$0xff] %v5113_v14  ;;  %v5122_v24 = vld [vmem:[%s5622_s3 + $0xf8] sm:$0xff]  }
  0x51   : > { %4065 = vmatpush3.bf16.msra.mxu0 %v4482_v29  ;;  %v3392_v29 = vld [vmem:[%s4693_s30 + $0x161] sm:$0xff]  ;;  %5632 = vst [vmem:[#allocation4_spill] sm:$0xff] %v5122_v24 }
  0x52   : > { %4089 = vmatpush3.bf16.msra.mxu1 %v4483_v30  ;;  %4066 = vmatprep.subr.bf16.mxu0 %v4484_v43  ;;  %v3393_v30 = vld [vmem:[%s4693_s30 + $0x171] sm:$0xff] }
  0x53   : > { %4090 = vmatprep.subr.bf16.mxu1 %v4485_v46 }
  0x54   : > { %4035 = vmatmul.mubr.bf16.gmra.mxu0 %v580_v51  ;;  %v1031_v51 = vpack.c.bf16 %v3393_v30, %v3392_v29 }
  0x55   : > { %4067 = vmatpush3.bf16.msra.mxu0 %v4484_v43  ;;  %4059 = vmatmul.mubr.bf16.gmra.mxu1 %v731_v55  ;;  %v1030_v43 = vpack.c.bf16 %v3391_v22, %v3390_v18  ;;  %v3395_v55 = vld [vmem:[%s4693_s30 + $0x191] sm:$0xff]  ;;  %v4535_v18 = vld [vmem:[%s5622_s3] sm:$0xff]  }
  0x56   : > { %4091 = vmatpush3.bf16.msra.mxu1 %v4485_v46  ;;  %4068 = vmatprep.subr.bf16.mxu0 %v4486_v58  ;;  %v3362_v46 = vld [vmem:[%s4693_s30 + $0x210] sm:$0xff] }
  0x57   : > { %4092 = vmatprep.subr.bf16.mxu1 %v4487_v59  ;;  %4078 = vmatprep.mubr.bf16.mxu0 %v879_v60  ;;  %v1032_v60 = vpack.c.bf16 %v3395_v55, %v3394_v54 }
  0x58   : > { %4102 = vmatprep.mubr.bf16.mxu1 %v1029_v61  ;;  %v4503_v61 = vld [vmem:[%s5620_s1 + $0x1e0] sm:$0xff]  }
  0x59   : > { %4069 = vmatpush3.bf16.msra.mxu0 %v4486_v58  ;;  %v882_v58 = vpack.c.bf16 %v3363_v49, %v3362_v46 }
  0x5a   : > { %4093 = vmatpush3.bf16.msra.mxu1 %v4487_v59  ;;  %4070 = vmatprep.subr.bf16.mxu0 %v4488_v62  ;;  %v4502_v59 = vld [vmem:[%s5620_s1 + $0x1a0] sm:$0xff]  }
  0x5b   : > { %4094 = vmatprep.subr.bf16.mxu1 %v4489_v3 }
  0x5d   : > { %4071 = vmatpush3.bf16.msra.mxu0 %v4488_v62  ;;  %v4504_v62 = vld [vmem:[%s5620_s1 + $0x198] sm:$0xff]  }
  0x5e   : > { %4095 = vmatpush3.bf16.msra.mxu1 %v4489_v3  ;;  %4072 = vmatprep.subr.bf16.mxu0 %v4490_v6  ;;  %v4505_v3 = vld [vmem:[%s5620_s1 + $0x1d8] sm:$0xff]  }
  0x5f   : > { %4096 = vmatprep.subr.bf16.mxu1 %v4491_v7 }
  0x61   : > { %4073 = vmatpush3.bf16.msra.mxu0 %v4490_v6  ;;  %v4506_v6 = vld [vmem:[%s5620_s1 + $0x190] sm:$0xff]  }
  0x62   : > { %4097 = vmatpush3.bf16.msra.mxu1 %v4491_v7  ;;  %4074 = vmatprep.subr.bf16.mxu0 %v4492_v8  ;;  %v4507_v7 = vld [vmem:[%s5620_s1 + $0x1d0] sm:$0xff]  }
  0x63   : > { %4098 = vmatprep.subr.bf16.mxu1 %v4493_v9 }
  0x65   : > { %4075 = vmatpush3.bf16.msra.mxu0 %v4492_v8  ;;  %v3427_v8 = vld [vmem:[%s4693_s30 + $0x80] sm:$0xff] }
  0x66   : > { %4099 = vmatpush3.bf16.msra.mxu1 %v4493_v9  ;;  %4076 = vmatprep.subr.bf16.mxu0 %v4494_v10  ;;  %v4514_v9 = vld [vmem:[%s5620_s1 + $0x228] sm:$0xff]   ;;  %v1183_v27 = vpack.c.bf16 %v3427_v8, %v4792_v48 }
  0x67   : > { %4100 = vmatprep.subr.bf16.mxu1 %v4495_v11  ;;  %v4524_v48 = vld [vmem:[%s5622_s3 + $0x68] sm:$0xff]  }
  0x69   : > { %4077 = vmatpush3.bf16.msra.mxu0 %v4494_v10  ;;  %v3459_v10 = vld [vmem:[%s4693_s30 + $0x110] sm:$0xff] }
  0x6a   : > { %4101 = vmatpush3.bf16.msra.mxu1 %v4495_v11  ;;  %4110 = vmatprep.subr.bf16.mxu0 %v4496_v15 }
  0x6b   : > { %4134 = vmatprep.subr.bf16.mxu1 %v4497_v23 }
  0x6c   : > { %4079 = vmatmul.mubr.bf16.vlgmr.msra.gmra.mxu0 %v880_v35 }
  0x6d   : > { %4111 = vmatpush3.bf16.msra.mxu0 %v4496_v15  ;;  %4103 = vmatmul.mubr.bf16.vlgmr.msra.gmra.mxu1 %v1030_v43 }
  0x6e   : > { %4135 = vmatpush3.bf16.msra.mxu1 %v4497_v23  ;;  %4112 = vmatprep.subr.bf16.mxu0 %v4498_v42 }
  0x6f   : > { %4136 = vmatprep.subr.bf16.mxu1 %v4499_v44  ;;  %4082 = vmatprep.mubr.bf16.mxu0 %v881_v45 }
  0x70   : > { %4106 = vmatprep.mubr.bf16.mxu1 %v1031_v51 }
  0x71   : > { %4113 = vmatpush3.bf16.msra.mxu0 %v4498_v42 }
  0x72   : > { %4137 = vmatpush3.bf16.msra.mxu1 %v4499_v44  ;;  %4114 = vmatprep.subr.bf16.mxu0 %v4500_v50 }
  0x73   : > { %4138 = vmatprep.subr.bf16.mxu1 %v4501_v57 }
  0x74   : > { %4083 = vmatmul.mubr.bf16.gmra.mxu0 %v882_v58 }
  0x75   : > { %4115 = vmatpush3.bf16.msra.mxu0 %v4500_v50  ;;  %4107 = vmatmul.mubr.bf16.gmra.mxu1 %v1032_v60 }
  0x76   : > { %4139 = vmatpush3.bf16.msra.mxu1 %v4501_v57  ;;  %4116 = vmatprep.subr.bf16.mxu0 %v4502_v59 }
  0x77   : > { %4140 = vmatprep.subr.bf16.mxu1 %v4503_v61  ;;  %4126 = vmatprep.mubr.bf16.mxu0 %v1180_v21  ;;  %v4513_v21 = vld [vmem:[%s5620_s1 + $0x230] sm:$0xff]  }
  0x78   : > { %4150 = vmatprep.mubr.bf16.mxu1 %v1331_v20  ;;  %v4512_v20 = vld [vmem:[%s5620_s1 + $0x238] sm:$0xff]  }
  0x79   : > { %4117 = vmatpush3.bf16.msra.mxu0 %v4502_v59 }
  0x7a   : > { %4141 = vmatpush3.bf16.msra.mxu1 %v4503_v61  ;;  %4118 = vmatprep.subr.bf16.mxu0 %v4504_v62 }
  0x7b   : > { %4142 = vmatprep.subr.bf16.mxu1 %v4505_v3 }
  0x7d   : > { %4119 = vmatpush3.bf16.msra.mxu0 %v4504_v62 }
  0x7e   : > { %4143 = vmatpush3.bf16.msra.mxu1 %v4505_v3  ;;  %4120 = vmatprep.subr.bf16.mxu0 %v4506_v6 }
  0x7f   : > { %4144 = vmatprep.subr.bf16.mxu1 %v4507_v7 }
  0x81   : > { %4121 = vmatpush3.bf16.msra.mxu0 %v4506_v6 }
  0x82   : > { %4145 = vmatpush3.bf16.msra.mxu1 %v4507_v7  ;;  %4122 = vmatprep.subr.bf16.mxu0 %v4508_v16 }
  0x83   : > { %4146 = vmatprep.subr.bf16.mxu1 %v4509_v19 }
  0x85   : > { %4123 = vmatpush3.bf16.msra.mxu0 %v4508_v16 }
  0x86   : > { %4147 = vmatpush3.bf16.msra.mxu1 %v4509_v19  ;;  %4124 = vmatprep.subr.bf16.mxu0 %v4510_v12 }
  0x87   : > { %4148 = vmatprep.subr.bf16.mxu1 %v4511_v17 }
  0x89   : > { %4125 = vmatpush3.bf16.msra.mxu0 %v4510_v12 }
  0x8a   : > { %4149 = vmatpush3.bf16.msra.mxu1 %v4511_v17  ;;  %4158 = vmatprep.subr.bf16.mxu0 %v4512_v20 }
  0x8b   : > { %4182 = vmatprep.subr.bf16.mxu1 %v4520_v38 }
  0x8c   : > { %4127 = vmatmul.mubr.bf16.vlgmr.msra.gmra.mxu0 %v1181_v34  ;;  %v1334_v34 = vpack.c.bf16 %v3459_v10, %v4789_v47  ;;  %v4523_v47 = vld [vmem:[%s5622_s3 + $0x30] sm:$0xff]  }
  0x8d   : > { %4159 = vmatpush3.bf16.msra.mxu0 %v4512_v20  ;;  %4151 = vmatmul.mubr.bf16.vlgmr.msra.gmra.mxu1 %v1332_v32  ;;  %v4518_v32 = vld [vmem:[%s5620_s1 + $0x208] sm:$0xff]  }
  0x8e   : > { %4160 = vmatprep.subr.bf16.mxu0 %v4513_v21  ;;  %4130 = vmatprep.mubr.bf16.mxu0 %v1182_v40  ;;  %v4521_v40 = vld [vmem:[%s5622_s3 + $0x38] sm:$0xff]  }
  0x8f   : > { %4154 = vmatprep.mubr.bf16.mxu1 %v1333_v41  ;;  %4183 = vmatpush3.bf16.msra.mxu1 %v4520_v38  ;;  %v4522_v41 = vld [vmem:[%s5622_s3 + $0x70] sm:$0xff]  }
  0x90   : > { %4184 = vmatprep.subr.bf16.mxu1 %v4522_v41 }
  0x91   : > { %4161 = vmatpush3.bf16.msra.mxu0 %v4513_v21 }
  0x92   : > { %4162 = vmatprep.subr.bf16.mxu0 %v4514_v9 }
  0x93   : > { %4185 = vmatpush3.bf16.msra.mxu1 %v4522_v41 }
  0x94   : > { %4131 = vmatmul.mubr.bf16.gmra.mxu0 %v1183_v27  ;;  %4186 = vmatprep.subr.bf16.mxu1 %v4524_v48 }
  0x95   : > { %4163 = vmatpush3.bf16.msra.mxu0 %v4514_v9  ;;  %4155 = vmatmul.mubr.bf16.gmra.mxu1 %v1334_v34 }
  0x96   : > { %4164 = vmatprep.subr.bf16.mxu0 %v4515_v31  ;;  %4174 = vmatprep.mubr.bf16.mxu0 %v1481_v56  ;;  %v4528_v56 = vld [vmem:[%s5622_s3 + $0x58] sm:$0xff]  }
  0x97   : > { %4187 = vmatpush3.bf16.msra.mxu1 %v4524_v48 }
  0x98   : > { %4188 = vmatprep.subr.bf16.mxu1 %v4526_v53 }
  0x99   : > { %4165 = vmatpush3.bf16.msra.mxu0 %v4515_v31 }
  0x9a   : > { %4166 = vmatprep.subr.bf16.mxu0 %v4516_v26 }
  0x9b   : > { %4189 = vmatpush3.bf16.msra.mxu1 %v4526_v53 }
  0x9c   : > { %4190 = vmatprep.subr.bf16.mxu1 %v4528_v56 }
  0x9d   : > { %4167 = vmatpush3.bf16.msra.mxu0 %v4516_v26 }
  0x9e   : > { %4168 = vmatprep.subr.bf16.mxu0 %v4517_v28 }
  0x9f   : > { %4191 = vmatpush3.bf16.msra.mxu1 %v4528_v56 }
  0xa0   : > { %4192 = vmatprep.subr.bf16.mxu1 %v4530_v0 }
  0xa1   : > { %4169 = vmatpush3.bf16.msra.mxu0 %v4517_v28 }
  0xa2   : > { %4170 = vmatprep.subr.bf16.mxu0 %v4518_v32 }
  0xa3   : > { %4193 = vmatpush3.bf16.msra.mxu1 %v4530_v0 }
  0xa5   : > { %4171 = vmatpush3.bf16.msra.mxu0 %v4518_v32 }
  0xa6   : > { %4172 = vmatprep.subr.bf16.mxu0 %v4519_v33 }
  0xa9   : > { %4173 = vmatpush3.bf16.msra.mxu0 %v4519_v33 }
  0xaa   : > { %4206 = vmatprep.subr.bf16.mxu0 %v4521_v40 }
  0xac   : > { %4175 = vmatmul.mubr.bf16.vlgmr.msra.gmra.mxu0 %v1482_v4  ;;  %v4532_v4 = vld [vmem:[%s5622_s3 + $0x48] sm:$0xff]  }
  0xad   : > { %4178 = vmatprep.mubr.bf16.mxu0 %v1483_v5  ;;  %4207 = vmatpush3.bf16.msra.mxu0 %v4521_v40  ;;  %v4531_v5 = vld [vmem:[%s5622_s3 + $0x10] sm:$0xff]  }
  0xae   : > { %4208 = vmatprep.subr.bf16.mxu0 %v4523_v47  ;;  %4194 = vmatprep.subr.bf16.mxu1 %v4532_v4 }
  0xaf   : > { %4195 = vmatpush3.bf16.msra.mxu1 %v4532_v4 }
  0xb0   : > { %4196 = vmatprep.subr.bf16.mxu1 %v4534_v39 }
  0xb1   : > { %4209 = vmatpush3.bf16.msra.mxu0 %v4523_v47 }
  0xb2   : > { %4210 = vmatprep.subr.bf16.mxu0 %v4525_v52 }
  0xb3   : > { %4197 = vmatpush3.bf16.msra.mxu1 %v4534_v39 }
  0xb4   : > { %4179 = vmatmul.mubr.bf16.gmra.mxu0 %v1484_v37  ;;  %4230 = vmatprep.subr.bf16.mxu1 %v5113_v14 }
  0xb5   : > { %4211 = vmatpush3.bf16.msra.mxu0 %v4525_v52 }
  0xb6   : > { %4212 = vmatprep.subr.bf16.mxu0 %v4527_v63 }
  0xb9   : > { %4213 = vmatpush3.bf16.msra.mxu0 %v4527_v63 }
  0xba   : > { %4214 = vmatprep.subr.bf16.mxu0 %v4529_v2 }
  0xbd   : > { %4215 = vmatpush3.bf16.msra.mxu0 %v4529_v2 }
  0xbe   : > { %4216 = vmatprep.subr.bf16.mxu0 %v4531_v5 }
  0xc1   : > { %4217 = vmatpush3.bf16.msra.mxu0 %v4531_v5 }
  0xc2   : > { %4218 = vmatprep.subr.bf16.mxu0 %v4533_v13 }
  0xc5   : > { %4219 = vmatpush3.bf16.msra.mxu0 %v4533_v13 }
  0xc6   : > { %4220 = vmatprep.subr.bf16.mxu0 %v4535_v18 }
  0xc9   : > { %4221 = vmatpush3.bf16.msra.mxu0 %v4535_v18 }
  0xca   : > { %4254 = vmatprep.subr.bf16.mxu0 %v5122_v24 }
  0xec   : > { %v5105_v11 = vpop.f32.mrf.mxu0 }
  0xed   : > { %v4008_v23 = vpop.f32.mrf.mxu1 }
  0xee   : > { %v425_v15 = vpop.f32.mrf.mxu0  ;;  %v547_v53 = vadd.f32 %v4008_v23, %v5105_v11 }
  0xef   : > { %v538_v30 = vpop.f32.mrf.mxu1 }
  0xf0   : > { %v3985_v22 = vpop.f32.mrf.mxu0  ;;  %v539_v0 = vadd.f32 %v538_v30, %v425_v15 }
  0xf1   : > { %v4009_v42 = vpop.f32.mrf.mxu1 }
  0xf2   : > { %v428_v25 = vpop.f32.mrf.mxu0  ;;  %v550_v4 = vadd.f32 %v4009_v42, %v3985_v22 }
  0xf3   : > { %v541_v44 = vpop.f32.mrf.mxu1 }
  0xf4   : > { %v3988_v29 = vpop.f32.mrf.mxu0  ;;  %v542_v18 = vadd.f32 %v541_v44, %v428_v25 }
  0xf5   : > { %v4012_v45 = vpop.f32.mrf.mxu1 }
  0xf6   : > { %v441_v35 = vpop.f32.mrf.mxu0  ;;  %v563_v14 = vadd.f32 %v4012_v45, %v3988_v29 }
  0xf7   : > { %v554_v50 = vpop.f32.mrf.mxu1 }
  0xf8   : > { %v5125_v43 = vpop.f32.mrf.mxu0 }
  0xf9   : > { %5633 = vst [vmem:[#allocation5_spill] sm:$0xff] %v5125_v43  ;;  %v4013_v54 = vpop.f32.mrf.mxu1  ;;  %v555_v43 = vadd.f32 %v554_v50, %v441_v35 }
  0xfa   : > { %v5127_v46 = vpop.f32.mrf.mxu0 }
  0xfb   : > { %5634 = vst [vmem:[#allocation6_spill] sm:$0xff] %v5127_v46  ;;  %v557_v57 = vpop.f32.mrf.mxu1 }
 0x100   : > { %v5639_v30 = vld [vmem:[#allocation5_spill] sm:$0xff] }
 0x102   : > { %v5640_v25 = vld [vmem:[#allocation6_spill] sm:$0xff] }
 0x103   : > { %v558_v44 = vadd.f32 %v557_v57, %v5640_v25 }
 0x10c   : > { %v4032_v49 = vpop.f32.mrf.mxu0 }
 0x10d   : > { %v4056_v58 = vpop.f32.mrf.mxu1  ;;  %v713_v2 = vadd.f32 %v4032_v49, %v547_v53  ;;  %v566_v49 = vadd.f32 %v4013_v54, %v5639_v30 }
 0x10e   : > { %v680_v51 = vpop.f32.mrf.mxu0 }
 0x10f   : > { %v831_v60 = vpop.f32.mrf.mxu1  ;;  %v711_v5 = vadd.f32 %v680_v51, %v539_v0  ;;  %v864_v1 = vadd.f32 %v4056_v58, %v713_v2 }
 0x110   : > { %v4033_v55 = vpop.f32.mrf.mxu0 }
 0x111   : > { %v4057_v62 = vpop.f32.mrf.mxu1  ;;  %v714_v24 = vadd.f32 %v4033_v55, %v550_v4 }
 0x112   : > { %v683_v59 = vpop.f32.mrf.mxu0 }
 0x113   : > { %v834_v6 = vpop.f32.mrf.mxu1  ;;  %v865_v11 = vadd.f32 %v4057_v62, %v714_v24 }
 0x114   : > { %v4036_v61 = vpop.f32.mrf.mxu0 }
 0x115   : > { %v4060_v16 = vpop.f32.mrf.mxu1  ;;  %v717_v23 = vadd.f32 %v4036_v61, %v563_v14 }
 0x116   : > { %v696_v3 = vpop.f32.mrf.mxu0 }
 0x117   : > { %v847_v17 = vpop.f32.mrf.mxu1  ;;  %v715_v53 = vadd.f32 %v696_v3, %v555_v43  ;;  %v868_v45 = vadd.f32 %v4060_v16, %v717_v23  ;;  %v5144_v16 = vld [vmem:[%s5621_s2] ss:$0 sm:$0xff] }
 0x118   : > { %v4037_v7 = vpop.f32.mrf.mxu0 }
 0x119   : > { %v4061_v21 = vpop.f32.mrf.mxu1  ;;  %v718_v55 = vadd.f32 %v4037_v7, %v566_v49  ;;  %v866_v35 = vadd.f32 %v847_v17, %v715_v53 }
 0x11a   : > { %v699_v19 = vpop.f32.mrf.mxu0 }
 0x11b   : > { %v5129_v9 = vpop.f32.mrf.mxu1  ;;  %v716_v50 = vadd.f32 %v699_v19, %v558_v44  ;;  %v869_v54 = vadd.f32 %v4061_v21, %v718_v55 }
 0x11c   : > { %5635 = vst [vmem:[#allocation7_spill] sm:$0xff] %v5129_v9  ;;  %v712_v9 = vadd.f32 %v683_v59, %v542_v18 }
 0x11e   : > { %v863_v22 = vadd.f32 %v834_v6, %v712_v9 }
 0x12c   : > { %v4080_v12 = vpop.f32.mrf.mxu0 }
 0x12d   : > { %v4104_v10 = vpop.f32.mrf.mxu1 }
 0x12e   : > { %v982_v20 = vpop.f32.mrf.mxu0 }
 0x12f   : > { %v1132_v31 = vpop.f32.mrf.mxu1 }
 0x130   : > { %v4081_v8 = vpop.f32.mrf.mxu0 }
 0x131   : > { %v4105_v26 = vpop.f32.mrf.mxu1  ;;  %v1016_v51 = vadd.f32 %v4081_v8, %v865_v11 }
 0x132   : > { %v985_v27 = vpop.f32.mrf.mxu0 }
 0x133   : > { %v1135_v32 = vpop.f32.mrf.mxu1  ;;  %v1166_v24 = vadd.f32 %v4105_v26, %v1016_v51 }
 0x134   : > { %v4084_v34 = vpop.f32.mrf.mxu0 }
 0x135   : > { %v4108_v36 = vpop.f32.mrf.mxu1  ;;  %v1019_v14 = vadd.f32 %v4084_v34, %v868_v45 }
 0x136   : > { %v998_v28 = vpop.f32.mrf.mxu0 }
 0x137   : > { %v1148_v40 = vpop.f32.mrf.mxu1  ;;  %v1017_v43 = vadd.f32 %v998_v28, %v866_v35  ;;  %v1169_v19 = vadd.f32 %v4108_v36, %v1019_v14 }
 0x138   : > { %v4085_v33 = vpop.f32.mrf.mxu0 }
 0x139   : > { %v5133_v47 = vpop.f32.mrf.mxu1  ;;  %v1020_v7 = vadd.f32 %v4085_v33, %v869_v54  ;;  %v1167_v21 = vadd.f32 %v1148_v40, %v1017_v43 }
 0x13a   : > { %v5131_v37 = vpop.f32.mrf.mxu0  ;;  %5637 = vst [vmem:[#allocation9_spill] sm:$0xff] %v5133_v47  ;;  %v1015_v47 = vadd.f32 %v4080_v12, %v864_v1  ;;  %v1014_v1 = vadd.f32 %v985_v27, %v863_v22 }
 0x13b   : > { %5636 = vst [vmem:[#allocation8_spill] sm:$0xff] %v5131_v37  ;;  %v5135_v52 = vpop.f32.mrf.mxu1  ;;  %v862_v37 = vadd.f32 %v831_v60, %v711_v5 }
 0x13c   : > { %5638 = vst [vmem:[#allocation10_spill] sm:$0xff] %v5135_v52  ;;  %v1165_v42 = vadd.f32 %v4104_v10, %v1015_v47  ;;  %v1164_v3 = vadd.f32 %v1135_v32, %v1014_v1 }
 0x13d   : > { %v1013_v15 = vadd.f32 %v982_v20, %v862_v37  ;;  %v5641_v20 = vld [vmem:[#allocation7_spill] sm:$0xff] }
 0x13e   : > { %v867_v57 = vadd.f32 %v5641_v20, %v716_v50 }
 0x13f   : > { %v1163_v58 = vadd.f32 %v1132_v31, %v1013_v15 }
 0x142   : > { %v5642_v31 = vld [vmem:[#allocation8_spill] sm:$0xff] }
 0x143   : > { %v1018_v34 = vadd.f32 %v5642_v31, %v867_v57  ;;  %v5644_v40 = vld [vmem:[#allocation10_spill] sm:$0xff]  ;;  %v5646_v57 = vmov 0.0  }
 0x145   : > { %v1168_v5 = vadd.f32 %v5644_v40, %v1018_v34  ;;  %v4539_v34 = vld [vmem:[%s5622_s3 + $0xf0] sm:$0xff]  }
 0x14c   : > { %v4128_v38 = vpop.f32.mrf.mxu0 }
 0x14d   : > { %v4152_v56 = vpop.f32.mrf.mxu1  ;;  %v1316_v59 = vadd.f32 %v4128_v38, %v1165_v42  ;;  %v5643_v38 = vld [vmem:[#allocation9_spill] sm:$0xff] }
 0x14e   : > { %v1283_v41 = vpop.f32.mrf.mxu0 }
 0x14f   : > { %v1434_v39 = vpop.f32.mrf.mxu1  ;;  %v1314_v60 = vadd.f32 %v1283_v41, %v1163_v58  ;;  %v1467_v6 = vadd.f32 %v4152_v56, %v1316_v59  ;;  %v1170_v41 = vadd.f32 %v5643_v38, %v1020_v7 }
 0x150   : > { %v4129_v48 = vpop.f32.mrf.mxu0 }
 0x151   : > { %v4153_v46 = vpop.f32.mrf.mxu1  ;;  %v1317_v12 = vadd.f32 %v4129_v48, %v1166_v24  ;;  %v1465_v17 = vadd.f32 %v1434_v39, %v1314_v60  ;;  %v4538_v60 = vld [vmem:[%s5622_s3 + $0xb0] sm:$0xff]  }
 0x152   : > { %v1286_v63 = vpop.f32.mrf.mxu0 }
 0x153   : > { %v1437_v0 = vpop.f32.mrf.mxu1  ;;  %v1315_v9 = vadd.f32 %v1286_v63, %v1164_v3  ;;  %v1468_v28 = vadd.f32 %v4153_v46, %v1317_v12  ;;  %v1703_v46 = vld [vmem:[#allocation2 + $0x1] sm:$0xff] }
 0x154   : > { %v4132_v13 = vpop.f32.mrf.mxu0 }
 0x155   : > { %v4156_v61 = vpop.f32.mrf.mxu1  ;;  %v1320_v32 = vadd.f32 %v4132_v13, %v1169_v19  ;;  %v1466_v56 = vadd.f32 %v1437_v0, %v1315_v9  ;;  %v4540_v19 = vld [vmem:[%s5622_s3 + $0xa8] sm:$0xff]  }
 0x156   : > { %v1299_v52 = vpop.f32.mrf.mxu0  ;;  %v1958_v9 = vld [vmem:[#allocation2 + $0x2] sm:$0xff] }
 0x157   : > { %v1450_v10 = vpop.f32.mrf.mxu1  ;;  %v1318_v47 = vadd.f32 %v1299_v52, %v1167_v21  ;;  %v1471_v13 = vadd.f32 %v4156_v61, %v1320_v32 }
 0x158   : > { %v4133_v29 = vpop.f32.mrf.mxu0 }
 0x159   : > { %v4157_v2 = vpop.f32.mrf.mxu1  ;;  %v1321_v39 = vadd.f32 %v4133_v29, %v1170_v41  ;;  %v1469_v15 = vadd.f32 %v1450_v10, %v1318_v47  ;;  %v4541_v47 = vld [vmem:[%s5622_s3 + $0xe8] sm:$0xff]  }
 0x15a   : > { %v1302_v62 = vpop.f32.mrf.mxu0 }
 0x15b   : > { %v1319_v30 = vadd.f32 %v1302_v62, %v1168_v5  ;;  %v1453_v53 = vpop.f32.mrf.mxu1  ;;  %v1472_v25 = vadd.f32 %v4157_v2, %v1321_v39  ;;  %v4546_v5 = vld [vmem:[%s5622_s3 + $0x90] sm:$0xff]   ;;  %v4545_v39 = vld [vmem:[%s5622_s3 + $0xd8] sm:$0xff]  }
 0x15d   : > { %v1470_v1 = vadd.f32 %v1453_v53, %v1319_v30 }
 0x16c   : > { %v4176_v8 = vpop.f32.mrf.mxu0 }
 0x16d   : > { %v1617_v27 = vadd.f32 %v4176_v8, %v1467_v6  ;;  %v5645_v6 = vld [vmem:[#allocation3_spill] sm:$0xff] }
 0x16e   : > { %v1584_v26 = vpop.f32.mrf.mxu0 }
 0x16f   : > { %v1632_v37 = vadd.f32 %v5144_v16, %v1617_v27  ;;  %v1615_v33 = vadd.f32 %v1584_v26, %v1465_v17 }
 0x170   : > { %v4177_v48 = vpop.f32.mrf.mxu0 }
 0x171   : > { %v5149_v36 = vmax.f32 %v1632_v37, 0.0  ;;  %v1630_v63 = vadd.f32 %v5144_v16, %v1615_v33  ;;  %v1618_v4 = vadd.f32 %v4177_v48, %v1468_v28  ;;  %v4542_v28 = vld [vmem:[%s5622_s3 + $0xa0] sm:$0xff]   ;;  %v5647_v37 = vld [vmem:[#allocation4_spill] sm:$0xff]  ;;  %v4544_v48 = vld [vmem:[%s5622_s3 + $0x98] sm:$0xff]  }
 0x172   : > { %v1587_v18 = vpop.f32.mrf.mxu0 }
 0x173   : > { %1669 = vst [vmem:[#allocation2 + $0x31] sm:$0xff] %v5149_v36  ;;  %v5154_v11 = vmax.f32 %v1630_v63, 0.0  ;;  %v1633_v52 = vadd.f32 %v5144_v16, %v1618_v4  ;;  %v1616_v23 = vadd.f32 %v1587_v18, %v1466_v56  ;;  %v4543_v4 = vld [vmem:[%s5622_s3 + $0xe0] sm:$0xff]   ;;  %v4548_v18 = vld [vmem:[%s5622_s3 + $0x88] sm:$0xff]  }
 0x174   : > { %v4180_v49 = vpop.f32.mrf.mxu0 }
 0x175   : > { %1667 = vst [vmem:[#allocation2 + $0x11] sm:$0xff] %v5154_v11  ;;  %v5158_v22 = vmax.f32 %v1633_v52, 0.0  ;;  %v1631_v42 = vadd.f32 %v5144_v16, %v1616_v23  ;;  %v1621_v51 = vadd.f32 %v4180_v49, %v1471_v13  ;;  %v1711_v0 = vpack.c.bf16 %v5154_v11, %v1703_v46  ;;  %v4547_v46 = vld [vmem:[%s5622_s3 + $0xd0] sm:$0xff]   ;;  %v4550_v13 = vld [vmem:[%s5622_s3 + $0x80] sm:$0xff]   ;;  %v4549_v52 = vld [vmem:[%s5622_s3 + $0xc8] sm:$0xff]  }
 0x176   : > { %v1600_v44 = vpop.f32.mrf.mxu0  ;;  %v4552_v23 = vld [vmem:[%s5622_s3 + $0x138] sm:$0xff]   ;;  %v4551_v49 = vld [vmem:[%s5622_s3 + $0xc0] sm:$0xff]  }
 0x177   : > { %1670 = vst [vmem:[#allocation2 + $0x41] sm:$0xff] %v5158_v22  ;;  %v5163_v55 = vmax.f32 %v1631_v42, 0.0  ;;  %v1636_v29 = vadd.f32 %v5144_v16, %v1621_v51  ;;  %v1619_v45 = vadd.f32 %v1600_v44, %v1469_v15  ;;  %4198 = vmatprep.mubr.bf16.mxu1 %v1711_v0  ;;  %v2267_v58 = vpack.c.bf16 %v5158_v22, %v5149_v36  ;;  %v4553_v44 = vld [vmem:[%s5622_s3 + $0x178] sm:$0xff]  }
 0x178   : > { %v4181_v59 = vpop.f32.mrf.mxu0 }
 0x179   : > { %1668 = vst [vmem:[#allocation2 + $0x21] sm:$0xff] %v5163_v55  ;;  %v5169_v35 = vmax.f32 %v1636_v29, 0.0  ;;  %v1634_v50 = vadd.f32 %v5144_v16, %v1619_v45  ;;  %v1622_v24 = vadd.f32 %v4181_v59, %v1472_v25  ;;  %v5174_v14 = vpack.c.bf16 %v5149_v36, %v5163_v55  ;;  %v4554_v25 = vld [vmem:[%s5622_s3 + $0x130] sm:$0xff]   ;;  %v4556_v29 = vld [vmem:[%s5622_s3 + $0x128] sm:$0xff]  }
 0x17a   : > { %v1603_v61 = vpop.f32.mrf.mxu0  ;;  %v5203_v27 = vld [vmem:[#allocation2 + $0x30] sm:$0xff] }
 0x17b   : > { %1673 = vst [vmem:[#allocation2 + $0x71] sm:$0xff] %v5169_v35  ;;  %v5180_v54 = vmax.f32 %v1634_v50, 0.0  ;;  %v1637_v43 = vadd.f32 %v5144_v16, %v1622_v24  ;;  %v1620_v62 = vadd.f32 %v1603_v61, %v1470_v1  ;;  %4199 = vmatmul.mubr.bf16.vlgmr.msra.gmra.mxu1 %v5174_v14  ;;  %v5275_v53 = vld [vmem:[#allocation2 + $0x32] sm:$0xff]  ;;  %v4558_v61 = vld [vmem:[%s5622_s3 + $0x120] sm:$0xff]  }
 0x17c   : > { %v1676_v3 = vld [vmem:[#allocation2 + $0x10] sm:$0xff]  ;;  %4231 = vmatpush3.bf16.msra.mxu1 %v5645_v6  ;;  %v4560_v6 = vld [vmem:[%s5622_s3 + $0x118] sm:$0xff]  }
 0x17d   : > { %1671 = vst [vmem:[#allocation2 + $0x51] sm:$0xff] %v5180_v54  ;;  %v5186_v12 = vmax.f32 %v1637_v43, 0.0  ;;  %v1635_v20 = vadd.f32 %v5144_v16, %v1620_v62  ;;  %v1683_v7 = vpack.c.bf16 %v1676_v3, %v5646_v57  ;;  %4232 = vmatprep.subr.bf16.mxu1 %v4538_v60  ;;  %v5192_v8 = vpack.c.bf16 %v5180_v54, %v5158_v22  ;;  %v5205_v21 = vld [vmem:[#allocation2 + $0x12] sm:$0xff]  ;;  %v4557_v62 = vld [vmem:[%s5622_s3 + $0x168] sm:$0xff]  }
 0x17e   : > { %v1966_v32 = vpack.c.bf16 %v5205_v21, %v1958_v9  ;;  %v5225_v33 = vld [vmem:[#allocation2 + $0x40] sm:$0xff]  ;;  %v4555_v59 = vld [vmem:[%s5622_s3 + $0x170] sm:$0xff]   ;;  %v2266_v43 = vpack.c.bf16 %v5163_v55, %v5154_v11  ;;  %v4564_v9 = vld [vmem:[%s5622_s3 + $0x108] sm:$0xff]  }
 0x17f   : > { %1674 = vst [vmem:[#allocation2 + $0x81] sm:$0xff] %v5186_v12  ;;  %v5198_v17 = vmax.f32 %v1635_v20, 0.0  ;;  %4222 = vmatprep.mubr.bf16.mxu0 %v1683_v7  ;;  %4202 = vmatprep.mubr.bf16.mxu1 %v5192_v8  ;;  %v2269_v16 = vpack.c.bf16 %v5186_v12, %v5169_v35  ;;  %v5280_v51 = vld [vmem:[#allocation2 + $0x42] sm:$0xff]  ;;  %v2117_v1 = vpack.c.bf16 %v5225_v33, %v5203_v27  ;;  %v4562_v7 = vld [vmem:[%s5622_s3 + $0x110] sm:$0xff]  }
 0x180   : > { %v1677_v10 = vld [vmem:[#allocation2 + $0x20] sm:$0xff]  ;;  %4233 = vmatpush3.bf16.msra.mxu1 %v4538_v60  ;;  %v4571_v36 = vld [vmem:[%s5622_s3 + $0x1f0] sm:$0xff]  }
 0x181   : > { %1672 = vst [vmem:[#allocation2 + $0x61] sm:$0xff] %v5198_v17  ;;  %v5209_v31 = vpack.c.bf16 %v5203_v27, %v1677_v10  ;;  %4234 = vmatprep.subr.bf16.mxu1 %v4540_v19  ;;  %v5216_v26 = vpack.c.bf16 %v5169_v35, %v5198_v17  ;;  %v2116_v40 = vpack.c.bf16 %v1677_v10, %v1676_v3  ;;  %v1960_v15 = vld [vmem:[#allocation2 + $0x22] sm:$0xff]  ;;  %v4563_v10 = vld [vmem:[%s5622_s3 + $0x150] sm:$0xff]  }
 0x182   : > { %v5240_v2 = vld [vmem:[#allocation2 + $0x70] sm:$0xff]  ;;  %v5278_v42 = vpack.c.bf16 %v5275_v53, %v1960_v15  ;;  %v4559_v55 = vld [vmem:[%s5622_s3 + $0x160] sm:$0xff]   ;;  %v2416_v20 = vpack.c.bf16 %v1960_v15, %v5205_v21  ;;  %v4565_v21 = vld [vmem:[%s5622_s3 + $0x148] sm:$0xff]  }
 0x183   : > { %4223 = vmatmul.mubr.bf16.vlgmr.msra.gmra.mxu0 %v5209_v31  ;;  %4203 = vmatmul.mubr.bf16.gmra.mxu1 %v5216_v26  ;;  %v5305_v24 = vld [vmem:[#allocation2 + $0x72] sm:$0xff]  ;;  %v4566_v27 = vld [vmem:[%s5622_s3 + $0x100] sm:$0xff]  }
 0x184   : > { %4255 = vmatpush3.bf16.msra.mxu0 %v5647_v37  ;;  %v5227_v38 = vld [vmem:[#allocation2 + $0x50] sm:$0xff]  ;;  %4235 = vmatpush3.bf16.msra.mxu1 %v4540_v19  ;;  %v4561_v19 = vld [vmem:[%s5622_s3 + $0x158] sm:$0xff]   ;;  %v2268_v37 = vpack.c.bf16 %v5198_v17, %v5180_v54  ;;  %v2417_v54 = vpack.c.bf16 %v5280_v51, %v5275_v53  ;;  %v4573_v17 = vld [vmem:[%s5622_s3 + $0x1e8] sm:$0xff]  }
 0x185   : > { %4256 = vmatprep.subr.bf16.mxu0 %v4539_v34  ;;  %v5231_v41 = vpack.c.bf16 %v5227_v38, %v5225_v33  ;;  %4246 = vmatprep.mubr.bf16.mxu1 %v1966_v32  ;;  %v5270_v30 = vld [vmem:[#allocation2 + $0x52] sm:$0xff]  ;;  %v4575_v35 = vld [vmem:[%s5622_s3 + $0x1e0] sm:$0xff]  }
 0x186   : > { %4236 = vmatprep.subr.bf16.mxu1 %v4542_v28  ;;  %v5284_v0 = vpack.c.bf16 %v5270_v30, %v5280_v51  ;;  %v5320_v3 = vld [vmem:[#allocation2 + $0x80] sm:$0xff]  ;;  %v4570_v32 = vld [vmem:[%s5622_s3 + $0x1b0] sm:$0xff]   ;;  %v4569_v33 = vld [vmem:[%s5622_s3 + $0x1f8] sm:$0xff]  }
 0x187   : > { %4226 = vmatprep.mubr.bf16.mxu0 %v5231_v41  ;;  %v2119_v11 = vpack.c.bf16 %v5320_v3, %v5240_v2  ;;  %v3718_v15 = vld [vmem:[%s4693_s30 + $0x1b0] sm:$0xff]  ;;  %v4591_v53 = vld [vmem:[%s5624_s5 + $0x20] sm:$0xff]   ;;  %v4593_v51 = vld [vmem:[%s5624_s5 + $0x18] sm:$0xff]  }
 0x188   : > { %4257 = vmatpush3.bf16.msra.mxu0 %v4539_v34  ;;  %v1681_v56 = vld [vmem:[#allocation2 + $0x60] sm:$0xff]  ;;  %4237 = vmatpush3.bf16.msra.mxu1 %v4542_v28  ;;  %v4568_v34 = vld [vmem:[%s5622_s3 + $0x1b8] sm:$0xff]  }
 0x189   : > { %4258 = vmatprep.subr.bf16.mxu0 %v4541_v47  ;;  %v5243_v63 = vpack.c.bf16 %v5240_v2, %v1681_v56  ;;  %4238 = vmatprep.subr.bf16.mxu1 %v4544_v48  ;;  %v5297_v45 = vld [vmem:[#allocation2 + $0x62] sm:$0xff]  ;;  %v2118_v50 = vpack.c.bf16 %v1681_v56, %v5227_v38 }
 0x18a   : > { %v5309_v60 = vpack.c.bf16 %v5305_v24, %v5297_v45  ;;  %v4567_v28 = vld [vmem:[%s5622_s3 + $0x140] sm:$0xff]   ;;  %v4572_v38 = vld [vmem:[%s5622_s3 + $0x1a8] sm:$0xff]   ;;  %v2418_v22 = vpack.c.bf16 %v5297_v45, %v5270_v30 }
 0x18b   : > { %4227 = vmatmul.mubr.bf16.gmra.mxu0 %v5243_v63  ;;  %v4580_v2 = vld [vmem:[%s5622_s3 + $0x188] sm:$0xff]   ;;  %v3719_v30 = vld [vmem:[%s4693_s30 + $0x1c0] sm:$0xff] }
 0x18c   : > { %4259 = vmatpush3.bf16.msra.mxu0 %v4541_v47  ;;  %4270 = vmatprep.mubr.bf16.mxu0 %v2116_v40  ;;  %v5385_v47 = vld [vmem:[#allocation2 + $0x82] sm:$0xff] }
 0x18d   : > { %4260 = vmatprep.subr.bf16.mxu0 %v4543_v4  ;;  %4239 = vmatpush3.bf16.msra.mxu1 %v4544_v48  ;;  %v4576_v48 = vld [vmem:[%s5622_s3 + $0x198] sm:$0xff]   ;;  %v2419_v56 = vpack.c.bf16 %v5385_v47, %v5305_v24  ;;  %v4581_v40 = vld [vmem:[%s5622_s3 + $0x1c8] sm:$0xff]   ;;  %v4599_v45 = vld [vmem:[%s5624_s5] sm:$0xff]  }
 0x18e   : > { %4240 = vmatprep.subr.bf16.mxu1 %v4546_v5  ;;  %v3722_v24 = vld [vmem:[%s4693_s30 + $0x1f0] sm:$0xff] }
 0x190   : > { %4261 = vmatpush3.bf16.msra.mxu0 %v4543_v4  ;;  %v4579_v4 = vld [vmem:[%s5622_s3 + $0x1d0] sm:$0xff]  }
 0x191   : > { %4262 = vmatprep.subr.bf16.mxu0 %v4545_v39  ;;  %4241 = vmatpush3.bf16.msra.mxu1 %v4546_v5  ;;  %v4584_v5 = vld [vmem:[%s5622_s3 + $0x238] sm:$0xff]  }
 0x192   : > { %4242 = vmatprep.subr.bf16.mxu1 %v4548_v18 }
 0x194   : > { %4263 = vmatpush3.bf16.msra.mxu0 %v4545_v39  ;;  %v4583_v39 = vld [vmem:[%s5622_s3 + $0x1c0] sm:$0xff]  }
 0x195   : > { %4264 = vmatprep.subr.bf16.mxu0 %v4547_v46  ;;  %4243 = vmatpush3.bf16.msra.mxu1 %v4548_v18  ;;  %v4586_v18 = vld [vmem:[%s5622_s3 + $0x230] sm:$0xff]  }
 0x196   : > { %4244 = vmatprep.subr.bf16.mxu1 %v4550_v13 }
 0x198   : > { %4265 = vmatpush3.bf16.msra.mxu0 %v4547_v46  ;;  %v4585_v46 = vld [vmem:[%s5624_s5 + $0x38] sm:$0xff]  }
 0x199   : > { %4266 = vmatprep.subr.bf16.mxu0 %v4549_v52  ;;  %4245 = vmatpush3.bf16.msra.mxu1 %v4550_v13  ;;  %v4588_v13 = vld [vmem:[%s5622_s3 + $0x228] sm:$0xff]  }
 0x19a   : > { %4278 = vmatprep.subr.bf16.mxu1 %v4552_v23 }
 0x19c   : > { %4267 = vmatpush3.bf16.msra.mxu0 %v4549_v52  ;;  %4247 = vmatmul.mubr.bf16.vlgmr.msra.gmra.mxu1 %v5278_v42  ;;  %v4590_v52 = vld [vmem:[%s5622_s3 + $0x220] sm:$0xff]  }
 0x19d   : > { %4268 = vmatprep.subr.bf16.mxu0 %v4551_v49  ;;  %4250 = vmatprep.mubr.bf16.mxu1 %v5284_v0 }
 0x19e   : > { %4279 = vmatpush3.bf16.msra.mxu1 %v4552_v23  ;;  %v4589_v23 = vld [vmem:[%s5624_s5 + $0x28] sm:$0xff]  }
 0x19f   : > { %4280 = vmatprep.subr.bf16.mxu1 %v4554_v25 }
 0x1a0   : > { %4269 = vmatpush3.bf16.msra.mxu0 %v4551_v49 }
 0x1a1   : > { %4302 = vmatprep.subr.bf16.mxu0 %v4553_v44 }
 0x1a2   : > { %4281 = vmatpush3.bf16.msra.mxu1 %v4554_v25  ;;  %v4595_v25 = vld [vmem:[%s5624_s5 + $0x10] sm:$0xff]  }
 0x1a3   : > { %4271 = vmatmul.mubr.bf16.vlgmr.msra.gmra.mxu0 %v2117_v1  ;;  %4282 = vmatprep.subr.bf16.mxu1 %v4556_v29  ;;  %v3720_v1 = vld [vmem:[%s4693_s30 + $0x1d0] sm:$0xff] }
 0x1a4   : > { %4274 = vmatprep.mubr.bf16.mxu0 %v2118_v50  ;;  %4303 = vmatpush3.bf16.msra.mxu0 %v4553_v44  ;;  %v4598_v44 = vld [vmem:[%s5622_s3 + $0x200] sm:$0xff]  }
 0x1a5   : > { %4304 = vmatprep.subr.bf16.mxu0 %v4555_v59  ;;  %4251 = vmatmul.mubr.bf16.gmra.mxu1 %v5309_v60 }
 0x1a6   : > { %4283 = vmatpush3.bf16.msra.mxu1 %v4556_v29  ;;  %4294 = vmatprep.mubr.bf16.mxu1 %v2266_v43  ;;  %v4597_v29 = vld [vmem:[%s5624_s5 + $0x8] sm:$0xff]   ;;  %v2866_v43 = vld [vmem:[#allocation2 + $0x92] sm:$0xff] }
 0x1a7   : > { %4284 = vmatprep.subr.bf16.mxu1 %v4558_v61 }
 0x1a8   : > { %4305 = vmatpush3.bf16.msra.mxu0 %v4555_v59  ;;  %v3721_v59 = vld [vmem:[%s4693_s30 + $0x1e0] sm:$0xff] }
 0x1a9   : > { %4306 = vmatprep.subr.bf16.mxu0 %v4557_v62  ;;  %v3033_v50 = vpack.c.bf16 %v3721_v59, %v3720_v1 }
 0x1aa   : > { %4285 = vmatpush3.bf16.msra.mxu1 %v4558_v61  ;;  %v3723_v61 = vld [vmem:[%s4693_s30 + $0x200] sm:$0xff] }
 0x1ab   : > { %4275 = vmatmul.mubr.bf16.gmra.mxu0 %v2119_v11  ;;  %4286 = vmatprep.subr.bf16.mxu1 %v4560_v6 }
 0x1ac   : > { %4307 = vmatpush3.bf16.msra.mxu0 %v4557_v62  ;;  %4318 = vmatprep.mubr.bf16.mxu0 %v2416_v20  ;;  %v3034_v62 = vpack.c.bf16 %v3723_v61, %v3722_v24 }
 0x1ad   : > { %4308 = vmatprep.subr.bf16.mxu0 %v4559_v55 }
 0x1ae   : > { %4287 = vmatpush3.bf16.msra.mxu1 %v4560_v6 }
 0x1af   : > { %4288 = vmatprep.subr.bf16.mxu1 %v4562_v7 }
 0x1b0   : > { %4309 = vmatpush3.bf16.msra.mxu0 %v4559_v55 }
 0x1b1   : > { %4310 = vmatprep.subr.bf16.mxu0 %v4561_v19 }
 0x1b2   : > { %4289 = vmatpush3.bf16.msra.mxu1 %v4562_v7 }
 0x1b3   : > { %4290 = vmatprep.subr.bf16.mxu1 %v4564_v9 }
 0x1b4   : > { %4311 = vmatpush3.bf16.msra.mxu0 %v4561_v19 }
 0x1b5   : > { %4312 = vmatprep.subr.bf16.mxu0 %v4563_v10 }
 0x1b6   : > { %4291 = vmatpush3.bf16.msra.mxu1 %v4564_v9 }
 0x1b7   : > { %4292 = vmatprep.subr.bf16.mxu1 %v4566_v27 }
 0x1b8   : > { %4313 = vmatpush3.bf16.msra.mxu0 %v4563_v10 }
 0x1b9   : > { %4314 = vmatprep.subr.bf16.mxu0 %v4565_v21 }
 0x1ba   : > { %4293 = vmatpush3.bf16.msra.mxu1 %v4566_v27 }
 0x1bb   : > { %4326 = vmatprep.subr.bf16.mxu1 %v4568_v34 }
 0x1bc   : > { %4315 = vmatpush3.bf16.msra.mxu0 %v4565_v21 }
 0x1bd   : > { %4316 = vmatprep.subr.bf16.mxu0 %v4567_v28  ;;  %4295 = vmatmul.mubr.bf16.vlgmr.msra.gmra.mxu1 %v2267_v58  ;;  %v4574_v58 = vld [vmem:[%s5622_s3 + $0x1a0] sm:$0xff]  }
 0x1be   : > { %4298 = vmatprep.mubr.bf16.mxu1 %v2268_v37  ;;  %4327 = vmatpush3.bf16.msra.mxu1 %v4568_v34 }
 0x1bf   : > { %4328 = vmatprep.subr.bf16.mxu1 %v4570_v32 }
 0x1c0   : > { %4317 = vmatpush3.bf16.msra.mxu0 %v4567_v28 }
 0x1c1   : > { %4350 = vmatprep.subr.bf16.mxu0 %v4569_v33 }
 0x1c2   : > { %4329 = vmatpush3.bf16.msra.mxu1 %v4570_v32 }
 0x1c3   : > { %4319 = vmatmul.mubr.bf16.vlgmr.msra.gmra.mxu0 %v2417_v54  ;;  %4330 = vmatprep.subr.bf16.mxu1 %v4572_v38 }
 0x1c4   : > { %4322 = vmatprep.mubr.bf16.mxu0 %v2418_v22  ;;  %4351 = vmatpush3.bf16.msra.mxu0 %v4569_v33 }
 0x1c5   : > { %4352 = vmatprep.subr.bf16.mxu0 %v4571_v36  ;;  %4299 = vmatmul.mubr.bf16.gmra.mxu1 %v2269_v16  ;;  %v4578_v16 = vld [vmem:[%s5622_s3 + $0x190] sm:$0xff]  }
 0x1c6   : > { %4331 = vmatpush3.bf16.msra.mxu1 %v4572_v38  ;;  %4342 = vmatprep.mubr.bf16.mxu1 %v5209_v31  ;;  %v4577_v31 = vld [vmem:[%s5622_s3 + $0x1d8] sm:$0xff]  }
 0x1c7   : > { %4332 = vmatprep.subr.bf16.mxu1 %v4574_v58 }
 0x1c8   : > { %4353 = vmatpush3.bf16.msra.mxu0 %v4571_v36 }
 0x1c9   : > { %4354 = vmatprep.subr.bf16.mxu0 %v4573_v17 }
 0x1ca   : > { %4333 = vmatpush3.bf16.msra.mxu1 %v4574_v58 }
 0x1cb   : > { %4323 = vmatmul.mubr.bf16.gmra.mxu0 %v2419_v56  ;;  %4334 = vmatprep.subr.bf16.mxu1 %v4576_v48 }
 0x1cc   : > { %4355 = vmatpush3.bf16.msra.mxu0 %v4573_v17  ;;  %4366 = vmatprep.mubr.bf16.mxu0 %v5174_v14  ;;  %v4582_v14 = vld [vmem:[%s5622_s3 + $0x180] sm:$0xff]  }
 0x1cd   : > { %4356 = vmatprep.subr.bf16.mxu0 %v4575_v35 }
 0x1ce   : > { %4335 = vmatpush3.bf16.msra.mxu1 %v4576_v48 }
 0x1cf   : > { %4336 = vmatprep.subr.bf16.mxu1 %v4578_v16 }
 0x1d0   : > { %4357 = vmatpush3.bf16.msra.mxu0 %v4575_v35 }
 0x1d1   : > { %4358 = vmatprep.subr.bf16.mxu0 %v4577_v31 }
 0x1d2   : > { %4337 = vmatpush3.bf16.msra.mxu1 %v4578_v16 }
 0x1d3   : > { %4338 = vmatprep.subr.bf16.mxu1 %v4580_v2 }
 0x1d4   : > { %4359 = vmatpush3.bf16.msra.mxu0 %v4577_v31 }
 0x1d5   : > { %4360 = vmatprep.subr.bf16.mxu0 %v4579_v4 }
 0x1d6   : > { %4339 = vmatpush3.bf16.msra.mxu1 %v4580_v2 }
 0x1d7   : > { %4340 = vmatprep.subr.bf16.mxu1 %v4582_v14 }
 0x1d8   : > { %4361 = vmatpush3.bf16.msra.mxu0 %v4579_v4 }
 0x1d9   : > { %4362 = vmatprep.subr.bf16.mxu0 %v4581_v40 }
 0x1da   : > { %4341 = vmatpush3.bf16.msra.mxu1 %v4582_v14 }
 0x1db   : > { %4374 = vmatprep.subr.bf16.mxu1 %v4584_v5 }
 0x1dc   : > { %4363 = vmatpush3.bf16.msra.mxu0 %v4581_v40 }
 0x1dd   : > { %4364 = vmatprep.subr.bf16.mxu0 %v4583_v39  ;;  %4343 = vmatmul.mubr.bf16.vlgmr.msra.gmra.mxu1 %v5231_v41  ;;  %v4587_v41 = vld [vmem:[%s5624_s5 + $0x30] sm:$0xff]  }
 0x1de   : > { %4346 = vmatprep.mubr.bf16.mxu1 %v5243_v63  ;;  %4375 = vmatpush3.bf16.msra.mxu1 %v4584_v5  ;;  %v2570_v63 = vpack.c.bf16 %v5646_v57, %v5320_v3  ;;  %v4592_v57 = vld [vmem:[%s5622_s3 + $0x218] sm:$0xff]   ;;  %v2870_v3 = vpack.c.bf16 %v2866_v43, %v5385_v47 }
 0x1df   : > { %4376 = vmatprep.subr.bf16.mxu1 %v4586_v18 }
 0x1e0   : > { %4365 = vmatpush3.bf16.msra.mxu0 %v4583_v39 }
 0x1e1   : > { %4398 = vmatprep.subr.bf16.mxu0 %v4585_v46 }
 0x1e2   : > { %4377 = vmatpush3.bf16.msra.mxu1 %v4586_v18 }
 0x1e3   : > { %4367 = vmatmul.mubr.bf16.vlgmr.msra.gmra.mxu0 %v5192_v8  ;;  %4378 = vmatprep.subr.bf16.mxu1 %v4588_v13  ;;  %v2716_v8 = vld [vmem:[#allocation2 + $0x91] sm:$0xff] }
 0x1e4   : > { %4370 = vmatprep.mubr.bf16.mxu0 %v5216_v26  ;;  %4399 = vmatpush3.bf16.msra.mxu0 %v4585_v46  ;;  %v3032_v26 = vpack.c.bf16 %v3719_v30, %v3718_v15  ;;  %v2720_v49 = vpack.c.bf16 %v2716_v8, %v5186_v12  ;;  %v4596_v12 = vld [vmem:[%s5622_s3 + $0x208] sm:$0xff]  }
 0x1e5   : > { %4400 = vmatprep.subr.bf16.mxu0 %v4587_v41  ;;  %4347 = vmatmul.mubr.bf16.gmra.mxu1 %v2570_v63 }
 0x1e6   : > { %4379 = vmatpush3.bf16.msra.mxu1 %v4588_v13  ;;  %4390 = vmatprep.mubr.bf16.mxu1 %v5278_v42  ;;  %v4594_v42 = vld [vmem:[%s5622_s3 + $0x210] sm:$0xff]  }
 0x1e7   : > { %4380 = vmatprep.subr.bf16.mxu1 %v4590_v52 }
 0x1e8   : > { %4401 = vmatpush3.bf16.msra.mxu0 %v4587_v41 }
 0x1e9   : > { %4402 = vmatprep.subr.bf16.mxu0 %v4589_v23 }
 0x1ea   : > { %4381 = vmatpush3.bf16.msra.mxu1 %v4590_v52 }
 0x1eb   : > { %4371 = vmatmul.mubr.bf16.gmra.mxu0 %v2720_v49  ;;  %4382 = vmatprep.subr.bf16.mxu1 %v4592_v57 }
 0x1ec   : > { %4403 = vmatpush3.bf16.msra.mxu0 %v4589_v23  ;;  %4414 = vmatprep.mubr.bf16.mxu0 %v3032_v26 }
 0x1ed   : > { %4404 = vmatprep.subr.bf16.mxu0 %v4591_v53 }
 0x1ee   : > { %4383 = vmatpush3.bf16.msra.mxu1 %v4592_v57 }
 0x1ef   : > { %4384 = vmatprep.subr.bf16.mxu1 %v4594_v42 }
 0x1f0   : > { %4405 = vmatpush3.bf16.msra.mxu0 %v4591_v53 }
 0x1f1   : > { %4406 = vmatprep.subr.bf16.mxu0 %v4593_v51 }
 0x1f2   : > { %4385 = vmatpush3.bf16.msra.mxu1 %v4594_v42 }
 0x1f3   : > { %4386 = vmatprep.subr.bf16.mxu1 %v4596_v12 }
 0x1f4   : > { %4407 = vmatpush3.bf16.msra.mxu0 %v4593_v51 }
 0x1f5   : > { %4408 = vmatprep.subr.bf16.mxu0 %v4595_v25 }
 0x1f6   : > { %4387 = vmatpush3.bf16.msra.mxu1 %v4596_v12 }
 0x1f7   : > { %4388 = vmatprep.subr.bf16.mxu1 %v4598_v44 }
 0x1f8   : > { %4409 = vmatpush3.bf16.msra.mxu0 %v4595_v25 }
 0x1f9   : > { %4410 = vmatprep.subr.bf16.mxu0 %v4597_v29 }
 0x1fa   : > { %4389 = vmatpush3.bf16.msra.mxu1 %v4598_v44 }
 0x1fb   : > { %4422 = vmatprep.subr.bf16.mxu1 %v4585_v46 }
 0x1fc   : > { %4411 = vmatpush3.bf16.msra.mxu0 %v4597_v29 }
 0x1fd   : > { %4412 = vmatprep.subr.bf16.mxu0 %v4599_v45  ;;  %4391 = vmatmul.mubr.bf16.vlgmr.msra.gmra.mxu1 %v5284_v0  ;;  %v3724_v0 = vld [vmem:[%s4693_s30 + $0x210] sm:$0xff] }
 0x1fe   : > { %4394 = vmatprep.mubr.bf16.mxu1 %v5309_v60  ;;  %4430 = vmatpush3.bf16.msra.mxu1 %v4585_v46  ;;  %v3725_v60 = vld [vmem:[%s4693_s30 + $0x220] sm:$0xff] }
 0x1ff   : > { %4423 = vmatprep.subr.bf16.mxu1 %v4587_v41  ;;  %v3035_v6 = vpack.c.bf16 %v3725_v60, %v3724_v0 }
 0x200   : > { %4413 = vmatpush3.bf16.msra.mxu0 %v4599_v45 }
 0x202   : > { %4431 = vmatpush3.bf16.msra.mxu1 %v4587_v41 }
 0x203   : > { %4415 = vmatmul.mubr.bf16.vlgmr.msra.gmra.mxu0 %v3033_v50  ;;  %4424 = vmatprep.subr.bf16.mxu1 %v4589_v23 }
 0x205   : > { %4395 = vmatmul.mubr.bf16.gmra.mxu1 %v2870_v3 }
 0x206   : > { %4432 = vmatpush3.bf16.msra.mxu1 %v4589_v23  ;;  %4418 = vmatprep.mubr.bf16.mxu1 %v3034_v62 }
 0x207   : > { %4425 = vmatprep.subr.bf16.mxu1 %v4591_v53 }
 0x20a   : > { %4433 = vmatpush3.bf16.msra.mxu1 %v4591_v53 }
 0x20b   : > { %4426 = vmatprep.subr.bf16.mxu1 %v4593_v51 }
 0x20e   : > { %4434 = vmatpush3.bf16.msra.mxu1 %v4593_v51 }
 0x20f   : > { %4427 = vmatprep.subr.bf16.mxu1 %v4595_v25 }
 0x212   : > { %4435 = vmatpush3.bf16.msra.mxu1 %v4595_v25 }
 0x213   : > { %4428 = vmatprep.subr.bf16.mxu1 %v4597_v29 }
 0x216   : > { %4436 = vmatpush3.bf16.msra.mxu1 %v4597_v29 }
 0x217   : > { %4429 = vmatprep.subr.bf16.mxu1 %v4599_v45 }
 0x21a   : > { %4437 = vmatpush3.bf16.msra.mxu1 %v4599_v45 }
 0x21d   : > { %4419 = vmatmul.mubr.bf16.vlgmr.msra.gmra.mxu1 %v3035_v6 }
 0x23b   : > { %v4200_v11 = vpop.f32.mrf.mxu1 }
 0x23d   : > { %v1814_v55 = vpop.f32.mrf.mxu1 }
 0x23f   : > { %v5485_v20 = vpop.f32.mrf.mxu1 }
 0x241   : > { %v5487_v7 = vpop.f32.mrf.mxu1 }
 0x243   : > { %v4224_v19 = vpop.f32.mrf.mxu0  ;;  %v4204_v10 = vpop.f32.mrf.mxu1 }
 0x244   : > { %v1936_v0 = vadd.f32 %v4224_v19, %v4200_v11 }
 0x245   : > { %v1927_v9 = vpop.f32.mrf.mxu0  ;;  %v1830_v34 = vpop.f32.mrf.mxu1 }
 0x246   : > { %v1928_v6 = vadd.f32 %v1927_v9, %v1814_v55 }
 0x247   : > { %v4225_v27 = vpop.f32.mrf.mxu0  ;;  %v4205_v33 = vpop.f32.mrf.mxu1 }
 0x249   : > { %v1930_v21 = vpop.f32.mrf.mxu0  ;;  %v1833_v22 = vpop.f32.mrf.mxu1 }
 0x24b   : > { %v4228_v28 = vpop.f32.mrf.mxu0 }
 0x24c   : > { %v5489_v32 = vadd.f32 %v4228_v28, %v4204_v10  ;;  %v1939_v28 = vadd.f32 %v4225_v27, %v5485_v20 }
 0x24d   : > { %v1943_v37 = vpop.f32.mrf.mxu0 }
 0x24e   : > { %v5491_v38 = vadd.f32 %v1943_v37, %v1830_v34 }
 0x24f   : > { %v4229_v54 = vpop.f32.mrf.mxu0 }
 0x250   : > { %v5493_v36 = vadd.f32 %v4229_v54, %v4205_v33 }
 0x251   : > { %v1946_v58 = vpop.f32.mrf.mxu0 }
 0x252   : > { %v5495_v17 = vadd.f32 %v1946_v58, %v1833_v22  ;;  %v1931_v22 = vadd.f32 %v1930_v21, %v5487_v7 }
 0x25c   : > { %v4248_v47 = vpop.f32.mrf.mxu1 }
 0x25d   : > { %v2102_v10 = vadd.f32 %v4248_v47, %v1936_v0 }
 0x25e   : > { %v2069_v48 = vpop.f32.mrf.mxu1 }
 0x25f   : > { %v2100_v33 = vadd.f32 %v2069_v48, %v1928_v6 }
 0x260   : > { %v4249_v35 = vpop.f32.mrf.mxu1 }
 0x262   : > { %v2072_v31 = vpop.f32.mrf.mxu1 }
 0x263   : > { %v4272_v56 = vpop.f32.mrf.mxu0  ;;  %v2101_v19 = vadd.f32 %v2072_v31, %v1931_v22 }
 0x264   : > { %v2252_v37 = vadd.f32 %v4272_v56, %v2102_v10 }
 0x265   : > { %v2219_v16 = vpop.f32.mrf.mxu0  ;;  %v5497_v4 = vpop.f32.mrf.mxu1 }
 0x266   : > { %v2250_v58 = vadd.f32 %v2219_v16, %v2100_v33 }
 0x267   : > { %v4273_v2 = vpop.f32.mrf.mxu0  ;;  %v5499_v40 = vpop.f32.mrf.mxu1 }
 0x269   : > { %v2222_v14 = vpop.f32.mrf.mxu0  ;;  %v5503_v39 = vpop.f32.mrf.mxu1 }
 0x26a   : > { %v2251_v0 = vadd.f32 %v2222_v14, %v2101_v19  ;;  %v5552_v14 = vld [vmem:[%s5623_s4] ss:$0 sm:$0xff] }
 0x26b   : > { %v5501_v5 = vpop.f32.mrf.mxu0  ;;  %v5507_v46 = vpop.f32.mrf.mxu1 }
 0x26d   : > { %v5505_v18 = vpop.f32.mrf.mxu0 }
 0x26f   : > { %v5509_v13 = vpop.f32.mrf.mxu0 }
 0x271   : > { %v5511_v63 = vpop.f32.mrf.mxu0 }
 0x27d   : > { %v4296_v41 = vpop.f32.mrf.mxu1 }
 0x27f   : > { %v2369_v52 = vpop.f32.mrf.mxu1 }
 0x280   : > { %v2400_v9 = vadd.f32 %v2369_v52, %v2250_v58 }
 0x281   : > { %v4297_v15 = vpop.f32.mrf.mxu1 }
 0x283   : > { %v4320_v23 = vpop.f32.mrf.mxu0  ;;  %v2372_v8 = vpop.f32.mrf.mxu1 }
 0x285   : > { %v2519_v30 = vpop.f32.mrf.mxu0  ;;  %v5513_v26 = vpop.f32.mrf.mxu1 }
 0x286   : > { %v2550_v20 = vadd.f32 %v2519_v30, %v2400_v9 }
 0x287   : > { %v4321_v57 = vpop.f32.mrf.mxu0  ;;  %v5515_v53 = vpop.f32.mrf.mxu1 }
 0x289   : > { %v2522_v49 = vpop.f32.mrf.mxu0  ;;  %v5519_v51 = vpop.f32.mrf.mxu1 }
 0x28b   : > { %v5517_v42 = vpop.f32.mrf.mxu0  ;;  %v5523_v25 = vpop.f32.mrf.mxu1 }
 0x28c   : > { %5648 = vst [vmem:[#allocation5_spill] sm:$0xff] %v5523_v25  ;;  %v2402_v25 = vadd.f32 %v4296_v41, %v2252_v37 }
 0x28d   : > { %v5521_v12 = vpop.f32.mrf.mxu0 }
 0x28e   : > { %v2552_v55 = vadd.f32 %v4320_v23, %v2402_v25 }
 0x28f   : > { %v5525_v44 = vpop.f32.mrf.mxu0 }
 0x290   : > { %5649 = vst [vmem:[#allocation6_spill] sm:$0xff] %v5525_v44 }
 0x291   : > { %v5527_v45 = vpop.f32.mrf.mxu0 }
 0x292   : > { %5650 = vst [vmem:[#allocation7_spill] sm:$0xff] %v5527_v45  ;;  %v2103_v45 = vadd.f32 %v4249_v35, %v1939_v28  ;;  %v2401_v35 = vadd.f32 %v2372_v8, %v2251_v0 }
 0x294   : > { %v2253_v11 = vadd.f32 %v4273_v2, %v2103_v45  ;;  %v2551_v2 = vadd.f32 %v2522_v49, %v2401_v35 }
 0x296   : > { %v2403_v27 = vadd.f32 %v4297_v15, %v2253_v11  ;;  %v5557_v15 = vld [vmem:[%s5625_s6] ss:$0 sm:$0xff] }
 0x298   : > { %v2553_v21 = vadd.f32 %v4321_v57, %v2403_v27 }
 0x29d   : > { %v4344_v29 = vpop.f32.mrf.mxu1 }
 0x29e   : > { %v2703_v48 = vadd.f32 %v4344_v29, %v2552_v55 }
 0x29f   : > { %v2670_v1 = vpop.f32.mrf.mxu1 }
 0x2a0   : > { %v2701_v41 = vadd.f32 %v2670_v1, %v2550_v20 }
 0x2a1   : > { %v4345_v50 = vpop.f32.mrf.mxu1 }
 0x2a2   : > { %v2704_v23 = vadd.f32 %v4345_v50, %v2553_v21 }
 0x2a3   : > { %v4368_v59 = vpop.f32.mrf.mxu0  ;;  %v2673_v61 = vpop.f32.mrf.mxu1 }
 0x2a4   : > { %v2853_v16 = vadd.f32 %v4368_v59, %v2703_v48  ;;  %v2702_v57 = vadd.f32 %v2673_v61, %v2551_v2  ;;  %v2107_v2 = vadd.f32 %v5503_v39, %v5493_v36 }
 0x2a5   : > { %v2820_v24 = vpop.f32.mrf.mxu0  ;;  %v5529_v62 = vpop.f32.mrf.mxu1 }
 0x2a6   : > { %v2851_v31 = vadd.f32 %v2820_v24, %v2701_v41  ;;  %v2104_v41 = vadd.f32 %v5499_v40, %v5491_v38 }
 0x2a7   : > { %v4369_v43 = vpop.f32.mrf.mxu0  ;;  %v5531_v60 = vpop.f32.mrf.mxu1 }
 0x2a8   : > { %v2854_v8 = vadd.f32 %v4369_v43, %v2704_v23 }
 0x2a9   : > { %v2823_v3 = vpop.f32.mrf.mxu0  ;;  %v5536_v54 = vpop.f32.mrf.mxu1 }
 0x2aa   : > { %v2852_v1 = vadd.f32 %v2823_v3, %v2702_v57 }
 0x2ab   : > { %v5533_v34 = vpop.f32.mrf.mxu0  ;;  %v5541_v47 = vpop.f32.mrf.mxu1 }
 0x2ad   : > { %v5539_v44 = vpop.f32.mrf.mxu0 }
 0x2af   : > { %v5544_v56 = vpop.f32.mrf.mxu0 }
 0x2b1   : > { %v5547_v25 = vpop.f32.mrf.mxu0 }
 0x2bd   : > { %v4392_v7 = vpop.f32.mrf.mxu1 }
 0x2be   : > { %v3003_v52 = vadd.f32 %v4392_v7, %v2853_v16  ;;  %v2106_v7 = vadd.f32 %v5497_v4, %v5489_v32  ;;  %v2105_v32 = vadd.f32 %v5507_v46, %v5495_v17  ;;  %v5653_v46 = vld [vmem:[#allocation7_spill] sm:$0xff] }
 0x2bf   : > { %v2970_v6 = vpop.f32.mrf.mxu1 }
 0x2c0   : > { %v3001_v49 = vadd.f32 %v2970_v6, %v2851_v31  ;;  %v3018_v59 = vadd.f32 %v5552_v14, %v3003_v52  ;;  %v2256_v16 = vadd.f32 %v5501_v5, %v2106_v7  ;;  %v2254_v6 = vadd.f32 %v5505_v18, %v2104_v41 }
 0x2c1   : > { %v4393_v30 = vpop.f32.mrf.mxu1  ;;  %v2257_v52 = vadd.f32 %v5509_v13, %v2107_v2  ;;  %v2255_v38 = vadd.f32 %v5511_v63, %v2105_v32 }
 0x2c2   : > { %v3004_v24 = vadd.f32 %v4393_v30, %v2854_v8  ;;  %v3016_v28 = vadd.f32 %v5552_v14, %v3001_v49  ;;  %v2406_v31 = vadd.f32 %v5513_v26, %v2256_v16  ;;  %v2404_v5 = vadd.f32 %v5515_v53, %v2254_v6  ;;  %v5651_v26 = vld [vmem:[#allocation6_spill] sm:$0xff]  ;;  %v5652_v8 = vld [vmem:[#allocation5_spill] sm:$0xff] }
 0x2c3   : > { %v4416_v29 = vpop.f32.mrf.mxu0  ;;  %v2973_v45 = vpop.f32.mrf.mxu1  ;;  %v2407_v18 = vadd.f32 %v5519_v51, %v2257_v52  ;;  %v2405_v13 = vadd.f32 %v5652_v8, %v2255_v38 }
 0x2c4   : > { %v3150_v50 = vadd.f32 %v4416_v29, %v5557_v15  ;;  %v3002_v22 = vadd.f32 %v2973_v45, %v2852_v1  ;;  %v3019_v3 = vadd.f32 %v5552_v14, %v3004_v24  ;;  %v2556_v4 = vadd.f32 %v5517_v42, %v2406_v31 }
 0x2c5   : > { %v3141_v10 = vpop.f32.mrf.mxu0  ;;  %v4396_v35 = vpop.f32.mrf.mxu1  ;;  %v2554_v40 = vadd.f32 %v5521_v12, %v2404_v5  ;;  %v2557_v30 = vadd.f32 %v5651_v26, %v2407_v18  ;;  %v2555_v42 = vadd.f32 %v5653_v46, %v2405_v13 }
 0x2c6   : > { %v3174_v37 = vadd.f32 %v3150_v50, %v3018_v59  ;;  %v3142_v33 = vadd.f32 %v5557_v15, %v3141_v10  ;;  %v3017_v9 = vadd.f32 %v5552_v14, %v3002_v22  ;;  %v2707_v36 = vadd.f32 %v5529_v62, %v2556_v4 }
 0x2c7   : > { %v4417_v61 = vpop.f32.mrf.mxu0  ;;  %v2986_v23 = vpop.f32.mrf.mxu1  ;;  %v2705_v17 = vadd.f32 %v5531_v60, %v2554_v40  ;;  %v2708_v63 = vadd.f32 %v5536_v54, %v2557_v30  ;;  %v2706_v62 = vadd.f32 %v5541_v47, %v2555_v42 }
 0x2c8   : > { %v3182_v43 = vmax.f32 %v3174_v37, 0.0  ;;  %v3172_v58 = vadd.f32 %v3142_v33, %v3016_v28  ;;  %v3153_v11 = vadd.f32 %v4417_v61, %v5557_v15  ;;  %v2857_v57 = vadd.f32 %v5533_v34, %v2707_v36 }
 0x2c9   : > { %v3144_v19 = vpop.f32.mrf.mxu0  ;;  %v4397_v39 = vpop.f32.mrf.mxu1  ;;  %v2855_v53 = vadd.f32 %v5539_v44, %v2705_v17  ;;  %v2858_v51 = vadd.f32 %v5544_v56, %v2708_v63  ;;  %v2856_v1 = vadd.f32 %v5547_v25, %v2706_v62 }
 0x2ca   : > { %3190 = vst [vmem:[%s5566_s19 + $0x10] sm:$0xff] %v3182_v43  ;;  %v3180_v55 = vmax.f32 %v3172_v58, 0.0  ;;  %v3175_v0 = vadd.f32 %v3153_v11, %v3019_v3  ;;  %v3145_v20 = vadd.f32 %v5557_v15, %v3144_v19  ;;  %v3007_v12 = vadd.f32 %v4396_v35, %v2857_v57 }
 0x2cb   : > { %v2989_v49 = vpop.f32.mrf.mxu1  ;;  %v3005_v29 = vadd.f32 %v2986_v23, %v2855_v53  ;;  %v3008_v60 = vadd.f32 %v4397_v39, %v2858_v51 }
 0x2cc   : > { %3188 = vst [vmem:[%s5566_s19] sm:$0xff] %v3180_v55  ;;  %v3183_v27 = vmax.f32 %v3175_v0, 0.0  ;;  %v3173_v48 = vadd.f32 %v3145_v20, %v3017_v9  ;;  %v3022_v34 = vadd.f32 %v5552_v14, %v3007_v12  ;;  %v3006_v54 = vadd.f32 %v2989_v49, %v2856_v1 }
 0x2cd   : > { %v3020_v44 = vadd.f32 %v5552_v14, %v3005_v29  ;;  %v3023_v10 = vadd.f32 %v5552_v14, %v3008_v60 }
 0x2ce   : > { %3191 = vst [vmem:[%s5566_s19 + $0x18] sm:$0xff] %v3183_v27  ;;  %v3181_v21 = vmax.f32 %v3173_v48, 0.0  ;;  %v3021_v22 = vadd.f32 %v5552_v14, %v3006_v54 }
 0x2d0   : > { %3189 = vst [vmem:[%s5566_s19 + $0x8] sm:$0xff] %v3181_v21 }
 0x2dd   : > { %v4420_v45 = vpop.f32.mrf.mxu1 }
 0x2de   : > { %v3166_v59 = vadd.f32 %v4420_v45, %v5557_v15 }
 0x2df   : > { %v3157_v50 = vpop.f32.mrf.mxu1 }
 0x2e0   : > { %v3178_v24 = vadd.f32 %v3166_v59, %v3022_v34  ;;  %v3158_v56 = vadd.f32 %v5557_v15, %v3157_v50 }
 0x2e1   : > { %v4421_v47 = vpop.f32.mrf.mxu1 }
 0x2e2   : > { %v3186_v25 = vmax.f32 %v3178_v24, 0.0  ;;  %v3176_v28 = vadd.f32 %v3158_v56, %v3020_v44  ;;  %v3169_v37 = vadd.f32 %v4421_v47, %v5557_v15 }
 0x2e3   : > { %v3160_v33 = vpop.f32.mrf.mxu1 }
 0x2e4   : > { %3194 = vst [vmem:[%s5566_s19 + $0x30] sm:$0xff] %v3186_v25  ;;  %v3184_v61 = vmax.f32 %v3176_v28, 0.0  ;;  %v3179_v43 = vadd.f32 %v3169_v37, %v3023_v10  ;;  %v3161_v3 = vadd.f32 %v5557_v15, %v3160_v33 }
 0x2e6   : > { %3192 = vst [vmem:[%s5566_s19 + $0x20] sm:$0xff] %v3184_v61  ;;  %v3187_v58 = vmax.f32 %v3179_v43, 0.0  ;;  %v3177_v11 = vadd.f32 %v3161_v3, %v3021_v22 }
 0x2e8   : > { %3195 = vst [vmem:[%s5566_s19 + $0x38] sm:$0xff] %v3187_v58  ;;  %v3185_v19 = vmax.f32 %v3177_v11, 0.0 }
 0x2ea   : > { %3193 = vst [vmem:[%s5566_s19 + $0x28] sm:$0xff] %v3185_v19 }
 0x2eb PF: > { %s17_s24 = sadd.s32 1, %s4606_s24  }
 0x2ec   : > { %p14_p5 = scmp.ge.s32.totalorder %s17_s24, 4  }
 0x2ee   :  { %16 = sbr.rel (!%p14_p5) target bundleno = 1 (0x1), region = 101 }

// kernel: _lambda_.3
= control target key start
LH: loop header
LB: loop body
LE: loop exit
PB: predicated region body
PF: predicated region fallthrough
CT: control target
= control target key end

     0   :  { %s4359_s18 = smov 0   ;;  %s5244_s0 = inlined_call_operand.vmem [shape: f32[2,10,10,128], index: 0, kind: input, shape index: {}]   ;;  %s5245_s1 = inlined_call_operand.vmem [shape: bf16[9,128,128], index: 1, kind: input, shape index: {}]   ;;  %s5246_s2 = inlined_call_operand.vmem [shape: f32[1,128], index: 2, kind: input, shape index: {}]   ;;  %s5247_s3 = inlined_call_operand.vmem [shape: bf16[9,128,128], index: 3, kind: input, shape index: {}]   ;;  %s5248_s4 = inlined_call_operand.vmem [shape: f32[1,128], index: 4, kind: input, shape index: {}]   ;;  %s5249_s5 = inlined_call_operand.vmem [shape: f32[2,8,8,128], index: 5, kind: output, shape index: {}]  }
   0x1 LB: > { %s3049_s19 = sadd.s32 4294967295, %s4326_s18   ;;  %p3053_p0 = scmp.ge.s32.totalorder %s4326_s18, 1  ;;  %s4326_s18 = sphi %s4359_s18, %s15_s18  }
   0x2   : > { %p187_p1 = scmp.lt.s32.totalorder %s4326_s18, 3 }
   0x4   : > { %p188_p2 = pnand %p3053_p0, %p187_p1 }
   0x6   : > { %191 = sbr.rel (%p188_p2) target bundleno = 725 (0x2d5), region = 40 }
   0xb   : > { %v4176_v0 = vld [vmem:[%s5245_s1 + $0x78] sm:$0xff]   ;;  %p215_p3 = scmp.lt.s32.totalorder %s3049_s19, 1  ;;  %v4178_v2 = vld [vmem:[%s5245_s1 + $0x70] sm:$0xff]   ;;  %v4180_v4 = vld [vmem:[%s5245_s1 + $0x68] sm:$0xff]  }
   0xc   : > { %v4177_v1 = vld [vmem:[%s5245_s1 + $0x38] sm:$0xff]   ;;  %3734 = vmatprep.subr.bf16.mxu0 %v4176_v0  ;;  %v4179_v3 = vld [vmem:[%s5245_s1 + $0x30] sm:$0xff]   ;;  %v4181_v5 = vld [vmem:[%s5245_s1 + $0x28] sm:$0xff]  }
   0xd   : > { %3758 = vmatprep.subr.bf16.mxu1 %v4177_v1  ;;  %3735 = vmatpush3.bf16.msra.mxu0 %v4176_v0  ;;  %s5290_s19 = smov (!%p215_p3, %s3049_s19), 1  ;;  %v4182_v6 = vld [vmem:[%s5245_s1 + $0x60] sm:$0xff]   ;;  %v4184_v8 = vld [vmem:[%s5245_s1 + $0x58] sm:$0xff]   ;;  %v4186_v10 = vld [vmem:[%s5245_s1 + $0x50] sm:$0xff]  }
   0xe   : > { %3759 = vmatpush3.bf16.msra.mxu1 %v4177_v1  ;;  %3736 = vmatprep.subr.bf16.mxu0 %v4178_v2  ;;  %v4183_v7 = vld [vmem:[%s5245_s1 + $0x20] sm:$0xff]   ;;  %s4166_s11 = smul.u32 160, %s5290_s19  ;;  %v4185_v9 = vld [vmem:[%s5245_s1 + $0x18] sm:$0xff]   ;;  %v4187_v14 = vld [vmem:[%s5245_s1 + $0x10] sm:$0xff]   ;;  %s3517_s29 = sshll.u32 %s5290_s19, 6 }
   0xf   : > { %3760 = vmatprep.subr.bf16.mxu1 %v4179_v3  ;;  %v4188_v18 = vld [vmem:[%s5245_s1 + $0x48] sm:$0xff]   ;;  %v4190_v20 = vld [vmem:[%s5245_s1 + $0x40] sm:$0xff]   ;;  %v4192_v26 = vld [vmem:[%s5245_s1 + $0xb8] sm:$0xff]   ;;  %s5217_s6 = scalar_lea.vmem %s5249_s5, %s3517_s29 }
  0x10   : > { %s4403_s20 = scalar_lea.vmem %s5244_s0, %s4166_s11  ;;  %v4189_v19 = vld [vmem:[%s5245_s1 + $0x8] sm:$0xff]   ;;  %v4191_v21 = vld [vmem:[%s5245_s1] sm:$0xff]   ;;  %v4193_v27 = vld [vmem:[%s5245_s1 + $0xf8] sm:$0xff]  }
  0x11   : > { %3737 = vmatpush3.bf16.msra.mxu0 %v4178_v2  ;;  %v254_v11 = vld [vmem:[%s4403_s20 + $0x1] sm:$0xff]  ;;  %v4410_v12 = vld [vmem:[%s4403_s20 + $0x11] sm:$0xff] }
  0x12   : > { %3761 = vmatpush3.bf16.msra.mxu1 %v4179_v3  ;;  %3738 = vmatprep.subr.bf16.mxu0 %v4180_v4  ;;  %v226_v13 = vld [vmem:[%s4403_s20] sm:$0xff]  ;;  %v262_v15 = vpack.c.bf16 %v4410_v12, %v254_v11  ;;  %v4418_v16 = vld [vmem:[%s4403_s20 + $0x10] sm:$0xff]  ;;  %v4196_v38 = vld [vmem:[%s5245_s1 + $0xa8] sm:$0xff]  }
  0x13   : > { %3762 = vmatprep.subr.bf16.mxu1 %v4181_v5  ;;  %v234_v17 = vpack.c.bf16 %v4418_v16, %v226_v13  ;;  %v4434_v22 = vld [vmem:[%s4403_s20 + $0x21] sm:$0xff]  ;;  %v4437_v23 = vld [vmem:[%s4403_s20 + $0x31] sm:$0xff] }
  0x14   : > { %3750 = vmatprep.mubr.bf16.mxu0 %v262_v15  ;;  %v228_v24 = vld [vmem:[%s4403_s20 + $0x20] sm:$0xff]  ;;  %v4441_v25 = vld [vmem:[%s4403_s20 + $0x30] sm:$0xff]  ;;  %v4451_v28 = vpack.c.bf16 %v4437_v23, %v4434_v22  ;;  %v4197_v43 = vld [vmem:[%s5245_s1 + $0xe8] sm:$0xff]  }
  0x15   : > { %3739 = vmatpush3.bf16.msra.mxu0 %v4180_v4  ;;  %3774 = vmatprep.mubr.bf16.mxu1 %v234_v17  ;;  %v4194_v29 = vld [vmem:[%s5245_s1 + $0xb0] sm:$0xff]   ;;  %v4457_v30 = vld [vmem:[%s4403_s20 + $0x41] sm:$0xff]  ;;  %v4466_v33 = vpack.c.bf16 %v4441_v25, %v228_v24  ;;  %v668_v51 = vpack.c.bf16 %v228_v24, %v4418_v16  ;;  %v4200_v52 = vld [vmem:[%s5245_s1 + $0x98] sm:$0xff]  }
  0x16   : > { %3763 = vmatpush3.bf16.msra.mxu1 %v4181_v5  ;;  %3740 = vmatprep.subr.bf16.mxu0 %v4182_v6  ;;  %v4460_v31 = vld [vmem:[%s4403_s20 + $0x51] sm:$0xff]  ;;  %v4463_v32 = vld [vmem:[%s4403_s20 + $0x40] sm:$0xff]  ;;  %v4204_v56 = vld [vmem:[%s5245_s1 + $0x88] sm:$0xff]  }
  0x17   : > { %3764 = vmatprep.subr.bf16.mxu1 %v4183_v7  ;;  %v4469_v34 = vld [vmem:[%s4403_s20 + $0x50] sm:$0xff]  ;;  %v4476_v36 = vpack.c.bf16 %v4460_v31, %v4457_v30  ;;  %v4479_v37 = vld [vmem:[%s4403_s20 + $0x61] sm:$0xff]  ;;  %v4201_v53 = vld [vmem:[%s5245_s1 + $0xd8] sm:$0xff]   ;;  %v669_v3 = vpack.c.bf16 %v4463_v32, %v4441_v25 }
  0x18   : > { %v4195_v35 = vld [vmem:[%s5245_s1 + $0xf0] sm:$0xff]   ;;  %v4487_v39 = vpack.c.bf16 %v4469_v34, %v4463_v32  ;;  %v4494_v41 = vld [vmem:[%s4403_s20 + $0x60] sm:$0xff]  ;;  %v4205_v57 = vld [vmem:[%s5245_s1 + $0xc8] sm:$0xff]  }
  0x19   : > { %3741 = vmatpush3.bf16.msra.mxu0 %v4182_v6  ;;  %v4490_v40 = vld [vmem:[%s4403_s20 + $0x71] sm:$0xff]  ;;  %v509_v45 = vld [vmem:[%s4403_s20 + $0x2] sm:$0xff] }
  0x1a   : > { %3765 = vmatpush3.bf16.msra.mxu1 %v4183_v7  ;;  %3742 = vmatprep.subr.bf16.mxu0 %v4184_v8  ;;  %v4497_v42 = vld [vmem:[%s4403_s20 + $0x70] sm:$0xff]  ;;  %v4506_v44 = vpack.c.bf16 %v4490_v40, %v4479_v37  ;;  %v4198_v48 = vld [vmem:[%s5245_s1 + $0xa0] sm:$0xff]   ;;  %v4208_v62 = vld [vmem:[%s5245_s1 + $0x138] sm:$0xff]  }
  0x1b   : > { %3766 = vmatprep.subr.bf16.mxu1 %v4185_v9  ;;  %v4510_v46 = vld [vmem:[%s4403_s20 + $0x12] sm:$0xff]  ;;  %v4514_v47 = vpack.c.bf16 %v4497_v42, %v4494_v41  ;;  %v4199_v49 = vld [vmem:[%s5245_s1 + $0xe0] sm:$0xff]   ;;  %v4213_v13 = vld [vmem:[%s5245_s1 + $0x168] sm:$0xff]  }
  0x1c   : > { %v517_v50 = vpack.c.bf16 %v4510_v46, %v509_v45  ;;  %v4202_v54 = vld [vmem:[%s5245_s1 + $0x90] sm:$0xff]   ;;  %v4206_v58 = vld [vmem:[%s5245_s1 + $0x80] sm:$0xff]   ;;  %v4209_v63 = vld [vmem:[%s5245_s1 + $0x178] sm:$0xff]  }
  0x1d   : > { %3743 = vmatpush3.bf16.msra.mxu0 %v4184_v8  ;;  %v4203_v55 = vld [vmem:[%s5245_s1 + $0xd0] sm:$0xff]   ;;  %v4207_v59 = vld [vmem:[%s5245_s1 + $0xc0] sm:$0xff]   ;;  %v4220_v24 = vld [vmem:[%s5245_s1 + $0x108] sm:$0xff]  }
  0x1e   : > { %3767 = vmatpush3.bf16.msra.mxu1 %v4185_v9  ;;  %3744 = vmatprep.subr.bf16.mxu0 %v4186_v10  ;;  %v511_v60 = vld [vmem:[%s4403_s20 + $0x22] sm:$0xff]  ;;  %v4552_v61 = vld [vmem:[%s4403_s20 + $0x32] sm:$0xff]  ;;  %v670_v9 = vpack.c.bf16 %v4494_v41, %v4469_v34  ;;  %v819_v34 = vpack.c.bf16 %v4457_v30, %v4437_v23 }
  0x1f   : > { %3768 = vmatprep.subr.bf16.mxu1 %v4187_v14  ;;  %v4561_v0 = vld [vmem:[%s4403_s20 + $0x42] sm:$0xff]  ;;  %v4564_v1 = vpack.c.bf16 %v4552_v61, %v511_v60  ;;  %v4567_v2 = vld [vmem:[%s4403_s20 + $0x52] sm:$0xff] }
  0x20   : > { %v4210_v4 = vld [vmem:[%s5245_s1 + $0x130] sm:$0xff]   ;;  %v4579_v6 = vpack.c.bf16 %v4567_v2, %v4561_v0  ;;  %v4582_v7 = vld [vmem:[%s4403_s20 + $0x62] sm:$0xff]  ;;  %v4225_v32 = vld [vmem:[%s5245_s1 + $0x1f8] sm:$0xff]  }
  0x21   : > { %3745 = vmatpush3.bf16.msra.mxu0 %v4186_v10  ;;  %v4211_v5 = vld [vmem:[%s5245_s1 + $0x170] sm:$0xff]   ;;  %v4212_v10 = vld [vmem:[%s5245_s1 + $0x128] sm:$0xff]   ;;  %v4594_v11 = vld [vmem:[%s4403_s20 + $0x80] sm:$0xff]  ;;  %v970_v30 = vpack.c.bf16 %v4582_v7, %v4567_v2 }
  0x22   : > { %3769 = vmatpush3.bf16.msra.mxu1 %v4187_v14  ;;  %3746 = vmatprep.subr.bf16.mxu0 %v4188_v18  ;;  %v4586_v8 = vld [vmem:[%s4403_s20 + $0x72] sm:$0xff]  ;;  %v671_v15 = vpack.c.bf16 %v4594_v11, %v4497_v42  ;;  %v4214_v16 = vld [vmem:[%s5245_s1 + $0x120] sm:$0xff]   ;;  %v4221_v25 = vld [vmem:[%s5245_s1 + $0x148] sm:$0xff]   ;;  %v820_v42 = vpack.c.bf16 %v4479_v37, %v4460_v31 }
  0x23   : > { %3770 = vmatprep.subr.bf16.mxu1 %v4189_v19  ;;  %v4602_v14 = vpack.c.bf16 %v4586_v8, %v4582_v7  ;;  %v4215_v17 = vld [vmem:[%s5245_s1 + $0x160] sm:$0xff]   ;;  %v4227_v41 = vld [vmem:[%s5245_s1 + $0x1f0] sm:$0xff]   ;;  %v4228_v23 = vld [vmem:[%s5245_s1 + $0x1a8] sm:$0xff]  }
  0x24   : > { %v4667_v45 = vld [vmem:[%s4403_s20 + $0x82] sm:$0xff]  ;;  %v4249_v2 = vld [vmem:[%s5247_s3 + $0x38] sm:$0xff]  }
  0x25   : > { %3747 = vmatpush3.bf16.msra.mxu0 %v4188_v18  ;;  %v818_v18 = vpack.c.bf16 %v4434_v22, %v4410_v12  ;;  %v4218_v12 = vld [vmem:[%s5245_s1 + $0x110] sm:$0xff]   ;;  %v4230_v37 = vld [vmem:[%s5245_s1 + $0x1a0] sm:$0xff]  }
  0x26   : > { %3771 = vmatpush3.bf16.msra.mxu1 %v4189_v19  ;;  %3748 = vmatprep.subr.bf16.mxu0 %v4190_v20  ;;  %v968_v19 = vpack.c.bf16 %v511_v60, %v4510_v46  ;;  %v4219_v22 = vld [vmem:[%s5245_s1 + $0x150] sm:$0xff]   ;;  %v4229_v46 = vld [vmem:[%s5245_s1 + $0x1e8] sm:$0xff]   ;;  %v4254_v7 = vld [vmem:[%s5247_s3 + $0x60] sm:$0xff]  }
  0x27   : > { %3772 = vmatprep.subr.bf16.mxu1 %v4191_v21 }
  0x29   : > { %3749 = vmatpush3.bf16.msra.mxu0 %v4190_v20  ;;  %v4216_v20 = vld [vmem:[%s5245_s1 + $0x118] sm:$0xff]  }
  0x2a   : > { %3773 = vmatpush3.bf16.msra.mxu1 %v4191_v21  ;;  %3782 = vmatprep.subr.bf16.mxu0 %v4192_v26  ;;  %v4217_v21 = vld [vmem:[%s5245_s1 + $0x158] sm:$0xff]  }
  0x2b   : > { %3806 = vmatprep.subr.bf16.mxu1 %v4193_v27 }
  0x2c   : > { %3751 = vmatmul.mubr.bf16.vlgmr.msra.gmra.mxu0 %v4451_v28 }
  0x2d   : > { %3775 = vmatmul.mubr.bf16.vlgmr.msra.gmra.mxu1 %v4466_v33  ;;  %3783 = vmatpush3.bf16.msra.mxu0 %v4192_v26  ;;  %v4222_v26 = vld [vmem:[%s5245_s1 + $0x100] sm:$0xff]  }
  0x2e   : > { %3807 = vmatpush3.bf16.msra.mxu1 %v4193_v27  ;;  %3784 = vmatprep.subr.bf16.mxu0 %v4194_v29  ;;  %v4223_v27 = vld [vmem:[%s5245_s1 + $0x140] sm:$0xff]  }
  0x2f   : > { %3808 = vmatprep.subr.bf16.mxu1 %v4195_v35  ;;  %3754 = vmatprep.mubr.bf16.mxu0 %v4476_v36 }
  0x30   : > { %3778 = vmatprep.mubr.bf16.mxu1 %v4487_v39 }
  0x31   : > { %3785 = vmatpush3.bf16.msra.mxu0 %v4194_v29  ;;  %v4224_v29 = vld [vmem:[%s5245_s1 + $0x1b8] sm:$0xff]  }
  0x32   : > { %3809 = vmatpush3.bf16.msra.mxu1 %v4195_v35  ;;  %3786 = vmatprep.subr.bf16.mxu0 %v4196_v38  ;;  %v4226_v35 = vld [vmem:[%s5245_s1 + $0x1b0] sm:$0xff]  }
  0x33   : > { %3810 = vmatprep.subr.bf16.mxu1 %v4197_v43 }
  0x34   : > { %3755 = vmatmul.mubr.bf16.gmra.mxu0 %v4506_v44 }
  0x35   : > { %3787 = vmatpush3.bf16.msra.mxu0 %v4196_v38  ;;  %3779 = vmatmul.mubr.bf16.gmra.mxu1 %v4514_v47  ;;  %v969_v38 = vpack.c.bf16 %v4561_v0, %v4552_v61 }
  0x36   : > { %3811 = vmatpush3.bf16.msra.mxu1 %v4197_v43  ;;  %3788 = vmatprep.subr.bf16.mxu0 %v4198_v48  ;;  %v4659_v43 = vld [vmem:[%s4403_s20 + $0x81] sm:$0xff] }
  0x37   : > { %3812 = vmatprep.subr.bf16.mxu1 %v4199_v49  ;;  %3798 = vmatprep.mubr.bf16.mxu0 %v517_v50  ;;  %v821_v31 = vpack.c.bf16 %v4659_v43, %v4490_v40  ;;  %v4232_v40 = vld [vmem:[%s5245_s1 + $0x198] sm:$0xff]  }
  0x38   : > { %3822 = vmatprep.mubr.bf16.mxu1 %v668_v51  ;;  %v4233_v50 = vld [vmem:[%s5245_s1 + $0x1d8] sm:$0xff]   ;;  %v4234_v51 = vld [vmem:[%s5245_s1 + $0x190] sm:$0xff]  }
  0x39   : > { %3789 = vmatpush3.bf16.msra.mxu0 %v4198_v48  ;;  %v971_v48 = vpack.c.bf16 %v4667_v45, %v4586_v8  ;;  %v4256_v8 = vld [vmem:[%s5247_s3 + $0x58] sm:$0xff]  }
  0x3a   : > { %3813 = vmatpush3.bf16.msra.mxu1 %v4199_v49  ;;  %3790 = vmatprep.subr.bf16.mxu0 %v4200_v52  ;;  %v4231_v49 = vld [vmem:[%s5245_s1 + $0x1e0] sm:$0xff]  }
  0x3b   : > { %3814 = vmatprep.subr.bf16.mxu1 %v4201_v53 }
  0x3d   : > { %3791 = vmatpush3.bf16.msra.mxu0 %v4200_v52  ;;  %v4235_v52 = vld [vmem:[%s5245_s1 + $0x1d0] sm:$0xff]  }
  0x3e   : > { %3815 = vmatpush3.bf16.msra.mxu1 %v4201_v53  ;;  %3792 = vmatprep.subr.bf16.mxu0 %v4202_v54  ;;  %v4236_v53 = vld [vmem:[%s5245_s1 + $0x188] sm:$0xff]  }
  0x3f   : > { %3816 = vmatprep.subr.bf16.mxu1 %v4203_v55 }
  0x41   : > { %3793 = vmatpush3.bf16.msra.mxu0 %v4202_v54  ;;  %v4239_v54 = vld [vmem:[%s5245_s1 + $0x1c0] sm:$0xff]  }
  0x42   : > { %3817 = vmatpush3.bf16.msra.mxu1 %v4203_v55  ;;  %3794 = vmatprep.subr.bf16.mxu0 %v4204_v56  ;;  %v4240_v55 = vld [vmem:[%s5245_s1 + $0x238] sm:$0xff]  }
  0x43   : > { %3818 = vmatprep.subr.bf16.mxu1 %v4205_v57 }
  0x45   : > { %3795 = vmatpush3.bf16.msra.mxu0 %v4204_v56  ;;  %v4241_v56 = vld [vmem:[%s5245_s1 + $0x230] sm:$0xff]  }
  0x46   : > { %3819 = vmatpush3.bf16.msra.mxu1 %v4205_v57  ;;  %3796 = vmatprep.subr.bf16.mxu0 %v4206_v58  ;;  %v3216_v57 = vld [vmem:[%s4403_s20 + $0x90] sm:$0xff] }
  0x47   : > { %3820 = vmatprep.subr.bf16.mxu1 %v4207_v59  ;;  %v1122_v60 = vpack.c.bf16 %v3216_v57, %v4594_v11  ;;  %v5250_v11 = vmov 0.0  }
  0x48   : > { %1590 = vst [vmem:[#allocation2 + $0x30] sm:$0xff] %v5250_v11  ;;  %1591 = vst [vmem:[#allocation2 + $0x38] sm:$0x3] %v5250_v11 }
  0x49   : > { %3797 = vmatpush3.bf16.msra.mxu0 %v4206_v58  ;;  %v4242_v58 = vld [vmem:[%s5245_s1 + $0x228] sm:$0xff]   ;;  %1584 = vst [vmem:[#allocation2] sm:$0xff] %v5250_v11  ;;  %1585 = vst [vmem:[#allocation2 + $0x8] sm:$0x3] %v5250_v11 }
  0x4a   : > { %3821 = vmatpush3.bf16.msra.mxu1 %v4207_v59  ;;  %3830 = vmatprep.subr.bf16.mxu0 %v4208_v62  ;;  %v3248_v59 = vld [vmem:[%s4403_s20 + $0x91] sm:$0xff]  ;;  %1586 = vst [vmem:[#allocation2 + $0x10] sm:$0xff] %v5250_v11  ;;  %1587 = vst [vmem:[#allocation2 + $0x18] sm:$0x3] %v5250_v11 }
  0x4b   : > { %3854 = vmatprep.subr.bf16.mxu1 %v4209_v63  ;;  %v1272_v61 = vpack.c.bf16 %v3248_v59, %v4659_v43  ;;  %1588 = vst [vmem:[#allocation2 + $0x20] sm:$0xff] %v5250_v11  ;;  %1589 = vst [vmem:[#allocation2 + $0x28] sm:$0x3] %v5250_v11 }
  0x4c   : > { %3799 = vmatmul.mubr.bf16.vlgmr.msra.gmra.mxu0 %v4564_v1  ;;  %1592 = vst [vmem:[#allocation2 + $0x40] sm:$0xff] %v5250_v11  ;;  %1593 = vst [vmem:[#allocation2 + $0x48] sm:$0x3] %v5250_v11 }
  0x4d   : > { %3831 = vmatpush3.bf16.msra.mxu0 %v4208_v62  ;;  %3823 = vmatmul.mubr.bf16.vlgmr.msra.gmra.mxu1 %v669_v3  ;;  %v4247_v62 = vld [vmem:[%s5245_s1 + $0x200] sm:$0xff]   ;;  %v4250_v3 = vld [vmem:[%s5247_s3 + $0x70] sm:$0xff]   ;;  %1594 = vst [vmem:[#allocation2 + $0x50] sm:$0xff] %v5250_v11  ;;  %1595 = vst [vmem:[#allocation2 + $0x58] sm:$0x3] %v5250_v11 }
  0x4e   : > { %3855 = vmatpush3.bf16.msra.mxu1 %v4209_v63  ;;  %3832 = vmatprep.subr.bf16.mxu0 %v4210_v4  ;;  %v3280_v63 = vld [vmem:[%s4403_s20 + $0x92] sm:$0xff]  ;;  %1596 = vst [vmem:[#allocation2 + $0x60] sm:$0xff] %v5250_v11  ;;  %1597 = vst [vmem:[#allocation2 + $0x68] sm:$0x3] %v5250_v11 }
  0x4f   : > { %3856 = vmatprep.subr.bf16.mxu1 %v4211_v5  ;;  %3802 = vmatprep.mubr.bf16.mxu0 %v4579_v6  ;;  %v1422_v0 = vpack.c.bf16 %v3280_v63, %v4667_v45  ;;  %1598 = vst [vmem:[#allocation2 + $0x70] sm:$0xff] %v5250_v11  ;;  %1599 = vst [vmem:[#allocation2 + $0x78] sm:$0x3] %v5250_v11 }
  0x50   : > { %3826 = vmatprep.mubr.bf16.mxu1 %v670_v9  ;;  %v4255_v9 = vld [vmem:[%s5247_s3 + $0x20] sm:$0xff]   ;;  %1600 = vst [vmem:[#allocation2 + $0x80] sm:$0xff] %v5250_v11  ;;  %1601 = vst [vmem:[#allocation2 + $0x88] sm:$0x3] %v5250_v11 }
  0x51   : > { %3833 = vmatpush3.bf16.msra.mxu0 %v4210_v4  ;;  %v4251_v4 = vld [vmem:[%s5247_s3 + $0x30] sm:$0xff]   ;;  %1602 = vst [vmem:[#allocation2 + $0x90] sm:$0xff] %v5250_v11  ;;  %1603 = vst [vmem:[#allocation2 + $0x98] sm:$0x3] %v5250_v11 }
  0x52   : > { %3857 = vmatpush3.bf16.msra.mxu1 %v4211_v5  ;;  %3834 = vmatprep.subr.bf16.mxu0 %v4212_v10  ;;  %v4252_v5 = vld [vmem:[%s5247_s3 + $0x68] sm:$0xff]  }
  0x53   : > { %3858 = vmatprep.subr.bf16.mxu1 %v4213_v13 }
  0x54   : > { %3803 = vmatmul.mubr.bf16.gmra.mxu0 %v4602_v14 }
  0x55   : > { %3835 = vmatpush3.bf16.msra.mxu0 %v4212_v10  ;;  %3827 = vmatmul.mubr.bf16.gmra.mxu1 %v671_v15  ;;  %v4258_v10 = vld [vmem:[%s5247_s3 + $0x50] sm:$0xff]  }
  0x56   : > { %3859 = vmatpush3.bf16.msra.mxu1 %v4213_v13  ;;  %3836 = vmatprep.subr.bf16.mxu0 %v4214_v16  ;;  %v4257_v13 = vld [vmem:[%s5247_s3 + $0x18] sm:$0xff]   ;;  %v4259_v15 = vld [vmem:[%s5247_s3 + $0x10] sm:$0xff]  }
  0x57   : > { %3860 = vmatprep.subr.bf16.mxu1 %v4215_v17  ;;  %3846 = vmatprep.mubr.bf16.mxu0 %v818_v18  ;;  %v4261_v18 = vld [vmem:[%s5247_s3 + $0x8] sm:$0xff]  }
  0x58   : > { %3870 = vmatprep.mubr.bf16.mxu1 %v968_v19  ;;  %v4815_v19 = vld [vmem:[%s5247_s3 + $0xb8] sm:$0xff]  }
  0x59   : > { %3837 = vmatpush3.bf16.msra.mxu0 %v4214_v16  ;;  %v4262_v16 = vld [vmem:[%s5247_s3 + $0x40] sm:$0xff]   ;;  %5254 = vst [vmem:[#allocation3_spill] sm:$0xff] %v4815_v19 }
  0x5a   : > { %3861 = vmatpush3.bf16.msra.mxu1 %v4215_v17  ;;  %3838 = vmatprep.subr.bf16.mxu0 %v4216_v20 }
  0x5b   : > { %3862 = vmatprep.subr.bf16.mxu1 %v4217_v21 }
  0x5d   : > { %3839 = vmatpush3.bf16.msra.mxu0 %v4216_v20 }
  0x5e   : > { %3863 = vmatpush3.bf16.msra.mxu1 %v4217_v21  ;;  %3840 = vmatprep.subr.bf16.mxu0 %v4218_v12  ;;  %v4263_v21 = vld [vmem:[%s5247_s3] sm:$0xff]  }
  0x5f   : > { %3864 = vmatprep.subr.bf16.mxu1 %v4219_v22 }
  0x61   : > { %3841 = vmatpush3.bf16.msra.mxu0 %v4218_v12 }
  0x62   : > { %3865 = vmatpush3.bf16.msra.mxu1 %v4219_v22  ;;  %3842 = vmatprep.subr.bf16.mxu0 %v4220_v24 }
  0x63   : > { %3866 = vmatprep.subr.bf16.mxu1 %v4221_v25 }
  0x65   : > { %3843 = vmatpush3.bf16.msra.mxu0 %v4220_v24  ;;  %v4824_v24 = vld [vmem:[%s5247_s3 + $0xf8] sm:$0xff]  }
  0x66   : > { %3867 = vmatpush3.bf16.msra.mxu1 %v4221_v25  ;;  %3844 = vmatprep.subr.bf16.mxu0 %v4222_v26  ;;  %5255 = vst [vmem:[#allocation4_spill] sm:$0xff] %v4824_v24 }
  0x67   : > { %3868 = vmatprep.subr.bf16.mxu1 %v4223_v27 }
  0x69   : > { %3845 = vmatpush3.bf16.msra.mxu0 %v4222_v26 }
  0x6a   : > { %3869 = vmatpush3.bf16.msra.mxu1 %v4223_v27  ;;  %3878 = vmatprep.subr.bf16.mxu0 %v4224_v29 }
  0x6b   : > { %3902 = vmatprep.subr.bf16.mxu1 %v4225_v32 }
  0x6c   : > { %3847 = vmatmul.mubr.bf16.vlgmr.msra.gmra.mxu0 %v819_v34 }
  0x6d   : > { %3879 = vmatpush3.bf16.msra.mxu0 %v4224_v29  ;;  %3871 = vmatmul.mubr.bf16.vlgmr.msra.gmra.mxu1 %v969_v38 }
  0x6e   : > { %3903 = vmatpush3.bf16.msra.mxu1 %v4225_v32  ;;  %3880 = vmatprep.subr.bf16.mxu0 %v4226_v35 }
  0x6f   : > { %3904 = vmatprep.subr.bf16.mxu1 %v4227_v41  ;;  %3850 = vmatprep.mubr.bf16.mxu0 %v820_v42 }
  0x70   : > { %3874 = vmatprep.mubr.bf16.mxu1 %v970_v30 }
  0x71   : > { %3881 = vmatpush3.bf16.msra.mxu0 %v4226_v35 }
  0x72   : > { %3905 = vmatpush3.bf16.msra.mxu1 %v4227_v41  ;;  %3882 = vmatprep.subr.bf16.mxu0 %v4228_v23 }
  0x73   : > { %3906 = vmatprep.subr.bf16.mxu1 %v4229_v46 }
  0x74   : > { %3851 = vmatmul.mubr.bf16.gmra.mxu0 %v821_v31 }
  0x75   : > { %3883 = vmatpush3.bf16.msra.mxu0 %v4228_v23  ;;  %3875 = vmatmul.mubr.bf16.gmra.mxu1 %v971_v48 }
  0x76   : > { %3907 = vmatpush3.bf16.msra.mxu1 %v4229_v46  ;;  %3884 = vmatprep.subr.bf16.mxu0 %v4230_v37 }
  0x77   : > { %3908 = vmatprep.subr.bf16.mxu1 %v4231_v49  ;;  %3894 = vmatprep.mubr.bf16.mxu0 %v4466_v33  ;;  %v4237_v33 = vld [vmem:[%s5245_s1 + $0x1c8] sm:$0xff]  }
  0x78   : > { %3918 = vmatprep.mubr.bf16.mxu1 %v4451_v28  ;;  %v4238_v28 = vld [vmem:[%s5245_s1 + $0x180] sm:$0xff]  }
  0x79   : > { %3885 = vmatpush3.bf16.msra.mxu0 %v4230_v37 }
  0x7a   : > { %3909 = vmatpush3.bf16.msra.mxu1 %v4231_v49  ;;  %3886 = vmatprep.subr.bf16.mxu0 %v4232_v40 }
  0x7b   : > { %3910 = vmatprep.subr.bf16.mxu1 %v4233_v50 }
  0x7d   : > { %3887 = vmatpush3.bf16.msra.mxu0 %v4232_v40 }
  0x7e   : > { %3911 = vmatpush3.bf16.msra.mxu1 %v4233_v50  ;;  %3888 = vmatprep.subr.bf16.mxu0 %v4234_v51 }
  0x7f   : > { %3912 = vmatprep.subr.bf16.mxu1 %v4235_v52 }
  0x81   : > { %3889 = vmatpush3.bf16.msra.mxu0 %v4234_v51 }
  0x82   : > { %3913 = vmatpush3.bf16.msra.mxu1 %v4235_v52  ;;  %3890 = vmatprep.subr.bf16.mxu0 %v4236_v53 }
  0x83   : > { %3914 = vmatprep.subr.bf16.mxu1 %v4237_v33 }
  0x85   : > { %3891 = vmatpush3.bf16.msra.mxu0 %v4236_v53 }
  0x86   : > { %3915 = vmatpush3.bf16.msra.mxu1 %v4237_v33  ;;  %3892 = vmatprep.subr.bf16.mxu0 %v4238_v28 }
  0x87   : > { %3916 = vmatprep.subr.bf16.mxu1 %v4239_v54 }
  0x89   : > { %3893 = vmatpush3.bf16.msra.mxu0 %v4238_v28 }
  0x8a   : > { %3917 = vmatpush3.bf16.msra.mxu1 %v4239_v54  ;;  %3926 = vmatprep.subr.bf16.mxu0 %v4240_v55 }
  0x8c   : > { %3895 = vmatmul.mubr.bf16.vlgmr.msra.gmra.mxu0 %v4487_v39  ;;  %v4244_v39 = vld [vmem:[%s5245_s1 + $0x218] sm:$0xff]  }
  0x8d   : > { %3927 = vmatpush3.bf16.msra.mxu0 %v4240_v55  ;;  %3919 = vmatmul.mubr.bf16.vlgmr.msra.gmra.mxu1 %v4476_v36  ;;  %v4243_v36 = vld [vmem:[%s5245_s1 + $0x220] sm:$0xff]  }
  0x8e   : > { %3928 = vmatprep.subr.bf16.mxu0 %v4241_v56  ;;  %3898 = vmatprep.mubr.bf16.mxu0 %v4514_v47  ;;  %v4246_v47 = vld [vmem:[%s5245_s1 + $0x208] sm:$0xff]  }
  0x8f   : > { %3922 = vmatprep.mubr.bf16.mxu1 %v4506_v44  ;;  %v4245_v44 = vld [vmem:[%s5245_s1 + $0x210] sm:$0xff]  }
  0x91   : > { %3929 = vmatpush3.bf16.msra.mxu0 %v4241_v56 }
  0x92   : > { %3930 = vmatprep.subr.bf16.mxu0 %v4242_v58 }
  0x94   : > { %3899 = vmatmul.mubr.bf16.gmra.mxu0 %v1122_v60 }
  0x95   : > { %3931 = vmatpush3.bf16.msra.mxu0 %v4242_v58  ;;  %3923 = vmatmul.mubr.bf16.gmra.mxu1 %v1272_v61 }
  0x96   : > { %3932 = vmatprep.subr.bf16.mxu0 %v4243_v36  ;;  %3942 = vmatprep.mubr.bf16.mxu0 %v4564_v1  ;;  %v4248_v1 = vld [vmem:[%s5247_s3 + $0x78] sm:$0xff]  }
  0x97   : > { %3950 = vmatprep.subr.bf16.mxu1 %v4248_v1 }
  0x98   : > { %3951 = vmatpush3.bf16.msra.mxu1 %v4248_v1 }
  0x99   : > { %3933 = vmatpush3.bf16.msra.mxu0 %v4243_v36  ;;  %3952 = vmatprep.subr.bf16.mxu1 %v4250_v3 }
  0x9a   : > { %3934 = vmatprep.subr.bf16.mxu0 %v4244_v39 }
  0x9c   : > { %3953 = vmatpush3.bf16.msra.mxu1 %v4250_v3 }
  0x9d   : > { %3935 = vmatpush3.bf16.msra.mxu0 %v4244_v39  ;;  %3954 = vmatprep.subr.bf16.mxu1 %v4252_v5 }
  0x9e   : > { %3936 = vmatprep.subr.bf16.mxu0 %v4245_v44 }
  0xa0   : > { %3955 = vmatpush3.bf16.msra.mxu1 %v4252_v5 }
  0xa1   : > { %3937 = vmatpush3.bf16.msra.mxu0 %v4245_v44  ;;  %3956 = vmatprep.subr.bf16.mxu1 %v4254_v7 }
  0xa2   : > { %3938 = vmatprep.subr.bf16.mxu0 %v4246_v47 }
  0xa4   : > { %3957 = vmatpush3.bf16.msra.mxu1 %v4254_v7 }
  0xa5   : > { %3939 = vmatpush3.bf16.msra.mxu0 %v4246_v47  ;;  %3958 = vmatprep.subr.bf16.mxu1 %v4256_v8 }
  0xa6   : > { %3940 = vmatprep.subr.bf16.mxu0 %v4247_v62 }
  0xa8   : > { %3959 = vmatpush3.bf16.msra.mxu1 %v4256_v8 }
  0xa9   : > { %3941 = vmatpush3.bf16.msra.mxu0 %v4247_v62  ;;  %3960 = vmatprep.subr.bf16.mxu1 %v4258_v10 }
  0xaa   : > { %3974 = vmatprep.subr.bf16.mxu0 %v4249_v2 }
  0xac   : > { %3943 = vmatmul.mubr.bf16.vlgmr.msra.gmra.mxu0 %v4579_v6  ;;  %v4253_v6 = vld [vmem:[%s5247_s3 + $0x28] sm:$0xff]   ;;  %3961 = vmatpush3.bf16.msra.mxu1 %v4258_v10 }
  0xad   : > { %3946 = vmatprep.mubr.bf16.mxu0 %v4602_v14  ;;  %3975 = vmatpush3.bf16.msra.mxu0 %v4249_v2  ;;  %v4260_v14 = vld [vmem:[%s5247_s3 + $0x48] sm:$0xff]  }
  0xae   : > { %3976 = vmatprep.subr.bf16.mxu0 %v4251_v4  ;;  %3962 = vmatprep.subr.bf16.mxu1 %v4260_v14 }
  0xb0   : > { %3963 = vmatpush3.bf16.msra.mxu1 %v4260_v14 }
  0xb1   : > { %3977 = vmatpush3.bf16.msra.mxu0 %v4251_v4  ;;  %3964 = vmatprep.subr.bf16.mxu1 %v4262_v16 }
  0xb2   : > { %3978 = vmatprep.subr.bf16.mxu0 %v4253_v6 }
  0xb4   : > { %3947 = vmatmul.mubr.bf16.gmra.mxu0 %v1422_v0  ;;  %3965 = vmatpush3.bf16.msra.mxu1 %v4262_v16 }
  0xb5   : > { %3979 = vmatpush3.bf16.msra.mxu0 %v4253_v6  ;;  %3998 = vmatprep.subr.bf16.mxu1 %v4815_v19 }
  0xb6   : > { %3980 = vmatprep.subr.bf16.mxu0 %v4255_v9 }
  0xb9   : > { %3981 = vmatpush3.bf16.msra.mxu0 %v4255_v9 }
  0xba   : > { %3982 = vmatprep.subr.bf16.mxu0 %v4257_v13 }
  0xbd   : > { %3983 = vmatpush3.bf16.msra.mxu0 %v4257_v13 }
  0xbe   : > { %3984 = vmatprep.subr.bf16.mxu0 %v4259_v15 }
  0xc1   : > { %3985 = vmatpush3.bf16.msra.mxu0 %v4259_v15 }
  0xc2   : > { %3986 = vmatprep.subr.bf16.mxu0 %v4261_v18 }
  0xc5   : > { %3987 = vmatpush3.bf16.msra.mxu0 %v4261_v18 }
  0xc6   : > { %3988 = vmatprep.subr.bf16.mxu0 %v4263_v21 }
  0xc9   : > { %3989 = vmatpush3.bf16.msra.mxu0 %v4263_v21 }
  0xca   : > { %4022 = vmatprep.subr.bf16.mxu0 %v4824_v24 }
  0xec   : > { %v4807_v17 = vpop.f32.mrf.mxu0 }
  0xed   : > { %v3776_v22 = vpop.f32.mrf.mxu1 }
  0xee   : > { %v365_v20 = vpop.f32.mrf.mxu0  ;;  %v487_v7 = vadd.f32 %v3776_v22, %v4807_v17 }
  0xef   : > { %v478_v27 = vpop.f32.mrf.mxu1 }
  0xf0   : > { %v3753_v12 = vpop.f32.mrf.mxu0  ;;  %v479_v10 = vadd.f32 %v478_v27, %v365_v20 }
  0xf1   : > { %v3777_v32 = vpop.f32.mrf.mxu1 }
  0xf2   : > { %v368_v25 = vpop.f32.mrf.mxu0  ;;  %v490_v14 = vadd.f32 %v3777_v32, %v3753_v12 }
  0xf3   : > { %v481_v35 = vpop.f32.mrf.mxu1 }
  0xf4   : > { %v3756_v26 = vpop.f32.mrf.mxu0  ;;  %v482_v21 = vadd.f32 %v481_v35, %v368_v25 }
  0xf5   : > { %v3780_v38 = vpop.f32.mrf.mxu1 }
  0xf6   : > { %v381_v29 = vpop.f32.mrf.mxu0  ;;  %v503_v19 = vadd.f32 %v3780_v38, %v3756_v26 }
  0xf7   : > { %v494_v43 = vpop.f32.mrf.mxu1 }
  0xf8   : > { %v4827_v34 = vpop.f32.mrf.mxu0 }
  0xf9   : > { %5256 = vst [vmem:[#allocation5_spill] sm:$0xff] %v4827_v34  ;;  %v3781_v30 = vpop.f32.mrf.mxu1  ;;  %v495_v34 = vadd.f32 %v494_v43, %v381_v29 }
  0xfa   : > { %v4829_v41 = vpop.f32.mrf.mxu0 }
  0xfb   : > { %5257 = vst [vmem:[#allocation6_spill] sm:$0xff] %v4829_v41  ;;  %v497_v46 = vpop.f32.mrf.mxu1 }
 0x100   : > { %v5262_v27 = vld [vmem:[#allocation5_spill] sm:$0xff] }
 0x102   : > { %v5263_v25 = vld [vmem:[#allocation6_spill] sm:$0xff] }
 0x103   : > { %v498_v35 = vadd.f32 %v497_v46, %v5263_v25 }
 0x10c   : > { %v3800_v42 = vpop.f32.mrf.mxu0 }
 0x10d   : > { %v3824_v31 = vpop.f32.mrf.mxu1  ;;  %v653_v13 = vadd.f32 %v3800_v42, %v487_v7  ;;  %v506_v7 = vadd.f32 %v3781_v30, %v5262_v27 }
 0x10e   : > { %v620_v23 = vpop.f32.mrf.mxu0 }
 0x10f   : > { %v771_v48 = vpop.f32.mrf.mxu1  ;;  %v651_v15 = vadd.f32 %v620_v23, %v479_v10  ;;  %v804_v11 = vadd.f32 %v3824_v31, %v653_v13 }
 0x110   : > { %v3801_v45 = vpop.f32.mrf.mxu0 }
 0x111   : > { %v3825_v40 = vpop.f32.mrf.mxu1  ;;  %v654_v24 = vadd.f32 %v3801_v45, %v490_v14 }
 0x112   : > { %v623_v37 = vpop.f32.mrf.mxu0 }
 0x113   : > { %v774_v51 = vpop.f32.mrf.mxu1  ;;  %v805_v17 = vadd.f32 %v3825_v40, %v654_v24 }
 0x114   : > { %v3804_v49 = vpop.f32.mrf.mxu0 }
 0x115   : > { %v3828_v53 = vpop.f32.mrf.mxu1  ;;  %v657_v22 = vadd.f32 %v3804_v49, %v503_v19 }
 0x116   : > { %v636_v50 = vpop.f32.mrf.mxu0 }
 0x117   : > { %v787_v54 = vpop.f32.mrf.mxu1  ;;  %v655_v42 = vadd.f32 %v636_v50, %v495_v34  ;;  %v808_v38 = vadd.f32 %v3828_v53, %v657_v22  ;;  %v4846_v53 = vld [vmem:[%s5246_s2] ss:$0 sm:$0xff] }
 0x118   : > { %v3805_v52 = vpop.f32.mrf.mxu0 }
 0x119   : > { %v3829_v56 = vpop.f32.mrf.mxu1  ;;  %v658_v45 = vadd.f32 %v3805_v52, %v506_v7  ;;  %v806_v29 = vadd.f32 %v787_v54, %v655_v42 }
 0x11a   : > { %v639_v33 = vpop.f32.mrf.mxu0 }
 0x11b   : > { %v4831_v58 = vpop.f32.mrf.mxu1  ;;  %v656_v43 = vadd.f32 %v639_v33, %v498_v35  ;;  %v809_v30 = vadd.f32 %v3829_v56, %v658_v45 }
 0x11c   : > { %5258 = vst [vmem:[#allocation7_spill] sm:$0xff] %v4831_v58  ;;  %v652_v58 = vadd.f32 %v623_v37, %v482_v21 }
 0x11e   : > { %v803_v12 = vadd.f32 %v774_v51, %v652_v58 }
 0x12c   : > { %v3848_v28 = vpop.f32.mrf.mxu0 }
 0x12d   : > { %v3872_v59 = vpop.f32.mrf.mxu1 }
 0x12e   : > { %v921_v55 = vpop.f32.mrf.mxu0 }
 0x12f   : > { %v1071_v61 = vpop.f32.mrf.mxu1 }
 0x130   : > { %v3849_v57 = vpop.f32.mrf.mxu0 }
 0x131   : > { %v3873_v39 = vpop.f32.mrf.mxu1  ;;  %v955_v23 = vadd.f32 %v3849_v57, %v805_v17 }
 0x132   : > { %v924_v60 = vpop.f32.mrf.mxu0 }
 0x133   : > { %v1074_v47 = vpop.f32.mrf.mxu1  ;;  %v1105_v24 = vadd.f32 %v3873_v39, %v955_v23 }
 0x134   : > { %v3852_v36 = vpop.f32.mrf.mxu0 }
 0x135   : > { %v3876_v63 = vpop.f32.mrf.mxu1  ;;  %v958_v19 = vadd.f32 %v3852_v36, %v808_v38 }
 0x136   : > { %v937_v44 = vpop.f32.mrf.mxu0 }
 0x137   : > { %v1087_v2 = vpop.f32.mrf.mxu1  ;;  %v956_v34 = vadd.f32 %v937_v44, %v806_v29  ;;  %v1108_v33 = vadd.f32 %v3876_v63, %v958_v19 }
 0x138   : > { %v3853_v62 = vpop.f32.mrf.mxu0 }
 0x139   : > { %v4835_v4 = vpop.f32.mrf.mxu1  ;;  %v959_v52 = vadd.f32 %v3853_v62, %v809_v30  ;;  %v1106_v56 = vadd.f32 %v1087_v2, %v956_v34 }
 0x13a   : > { %v4833_v0 = vpop.f32.mrf.mxu0  ;;  %5260 = vst [vmem:[#allocation9_spill] sm:$0xff] %v4835_v4  ;;  %v954_v4 = vadd.f32 %v3848_v28, %v804_v11  ;;  %v953_v11 = vadd.f32 %v924_v60, %v803_v12 }
 0x13b   : > { %5259 = vst [vmem:[#allocation8_spill] sm:$0xff] %v4833_v0  ;;  %v4837_v6 = vpop.f32.mrf.mxu1  ;;  %v802_v0 = vadd.f32 %v771_v48, %v651_v15 }
 0x13c   : > { %5261 = vst [vmem:[#allocation10_spill] sm:$0xff] %v4837_v6  ;;  %v1104_v32 = vadd.f32 %v3872_v59, %v954_v4  ;;  %v1103_v50 = vadd.f32 %v1074_v47, %v953_v11 }
 0x13d   : > { %v952_v20 = vadd.f32 %v921_v55, %v802_v0  ;;  %v5264_v55 = vld [vmem:[#allocation7_spill] sm:$0xff] }
 0x13e   : > { %v807_v46 = vadd.f32 %v5264_v55, %v656_v43 }
 0x13f   : > { %v1102_v31 = vadd.f32 %v1071_v61, %v952_v20 }
 0x142   : > { %v5265_v61 = vld [vmem:[#allocation8_spill] sm:$0xff] }
 0x143   : > { %v957_v36 = vadd.f32 %v5265_v61, %v807_v46  ;;  %v5267_v2 = vld [vmem:[#allocation10_spill] sm:$0xff]  ;;  %v5269_v46 = vmov 0.0  }
 0x145   : > { %v1107_v15 = vadd.f32 %v5267_v2, %v957_v36  ;;  %v4267_v36 = vld [vmem:[%s5247_s3 + $0xf0] sm:$0xff]  }
 0x14c   : > { %v3896_v1 = vpop.f32.mrf.mxu0 }
 0x14d   : > { %v3920_v8 = vpop.f32.mrf.mxu1  ;;  %v1255_v37 = vadd.f32 %v3896_v1, %v1104_v32  ;;  %v5266_v1 = vld [vmem:[#allocation9_spill] sm:$0xff] }
 0x14e   : > { %v1222_v3 = vpop.f32.mrf.mxu0 }
 0x14f   : > { %v1372_v16 = vpop.f32.mrf.mxu1  ;;  %v1253_v48 = vadd.f32 %v1222_v3, %v1102_v31  ;;  %v1405_v51 = vadd.f32 %v3920_v8, %v1255_v37  ;;  %v1109_v3 = vadd.f32 %v5266_v1, %v959_v52 }
 0x150   : > { %v3897_v5 = vpop.f32.mrf.mxu0 }
 0x151   : > { %v3921_v41 = vpop.f32.mrf.mxu1  ;;  %v1256_v28 = vadd.f32 %v3897_v5, %v1105_v24  ;;  %v1403_v54 = vadd.f32 %v1372_v16, %v1253_v48  ;;  %v4266_v48 = vld [vmem:[%s5247_s3 + $0xb0] sm:$0xff]  }
 0x152   : > { %v1225_v9 = vpop.f32.mrf.mxu0 }
 0x153   : > { %v1375_v10 = vpop.f32.mrf.mxu1  ;;  %v1254_v58 = vadd.f32 %v1225_v9, %v1103_v50  ;;  %v1406_v44 = vadd.f32 %v3921_v41, %v1256_v28  ;;  %v1641_v41 = vld [vmem:[#allocation2 + $0x1] sm:$0xff] }
 0x154   : > { %v3900_v18 = vpop.f32.mrf.mxu0 }
 0x155   : > { %v3924_v49 = vpop.f32.mrf.mxu1  ;;  %v1259_v47 = vadd.f32 %v3900_v18, %v1108_v33  ;;  %v1404_v8 = vadd.f32 %v1375_v10, %v1254_v58  ;;  %v4268_v33 = vld [vmem:[%s5247_s3 + $0xa8] sm:$0xff]  }
 0x156   : > { %v1238_v6 = vpop.f32.mrf.mxu0  ;;  %v1896_v58 = vld [vmem:[#allocation2 + $0x2] sm:$0xff] }
 0x157   : > { %v1388_v59 = vpop.f32.mrf.mxu1  ;;  %v1257_v4 = vadd.f32 %v1238_v6, %v1106_v56  ;;  %v1409_v18 = vadd.f32 %v3924_v49, %v1259_v47 }
 0x158   : > { %v3901_v26 = vpop.f32.mrf.mxu0 }
 0x159   : > { %v3925_v13 = vpop.f32.mrf.mxu1  ;;  %v1260_v16 = vadd.f32 %v3901_v26, %v1109_v3  ;;  %v1407_v20 = vadd.f32 %v1388_v59, %v1257_v4  ;;  %v4269_v4 = vld [vmem:[%s5247_s3 + $0xe8] sm:$0xff]  }
 0x15a   : > { %v1241_v40 = vpop.f32.mrf.mxu0 }
 0x15b   : > { %v1258_v27 = vadd.f32 %v1241_v40, %v1107_v15  ;;  %v1391_v42 = vpop.f32.mrf.mxu1  ;;  %v1410_v25 = vadd.f32 %v3925_v13, %v1260_v16  ;;  %v4274_v15 = vld [vmem:[%s5247_s3 + $0x90] sm:$0xff]   ;;  %v4273_v16 = vld [vmem:[%s5247_s3 + $0xd8] sm:$0xff]  }
 0x15d   : > { %v1408_v11 = vadd.f32 %v1391_v42, %v1258_v27 }
 0x16c   : > { %v3944_v57 = vpop.f32.mrf.mxu0 }
 0x16d   : > { %v1555_v60 = vadd.f32 %v3944_v57, %v1405_v51  ;;  %v5268_v51 = vld [vmem:[#allocation3_spill] sm:$0xff] }
 0x16e   : > { %v1522_v39 = vpop.f32.mrf.mxu0 }
 0x16f   : > { %v1570_v0 = vadd.f32 %v4846_v53, %v1555_v60  ;;  %v1553_v62 = vadd.f32 %v1522_v39, %v1403_v54 }
 0x170   : > { %v3945_v5 = vpop.f32.mrf.mxu0 }
 0x171   : > { %v4851_v63 = vmax.f32 %v1570_v0, 0.0  ;;  %v1568_v9 = vadd.f32 %v4846_v53, %v1553_v62  ;;  %v1556_v14 = vadd.f32 %v3945_v5, %v1406_v44  ;;  %v4270_v44 = vld [vmem:[%s5247_s3 + $0xa0] sm:$0xff]   ;;  %v5270_v0 = vld [vmem:[#allocation4_spill] sm:$0xff]  ;;  %v4272_v5 = vld [vmem:[%s5247_s3 + $0x98] sm:$0xff]  }
 0x172   : > { %v1525_v21 = vpop.f32.mrf.mxu0 }
 0x173   : > { %1607 = vst [vmem:[#allocation2 + $0x31] sm:$0xff] %v4851_v63  ;;  %v4856_v17 = vmax.f32 %v1568_v9, 0.0  ;;  %v1571_v6 = vadd.f32 %v4846_v53, %v1556_v14  ;;  %v1554_v22 = vadd.f32 %v1525_v21, %v1404_v8  ;;  %v4271_v14 = vld [vmem:[%s5247_s3 + $0xe0] sm:$0xff]   ;;  %v4276_v21 = vld [vmem:[%s5247_s3 + $0x88] sm:$0xff]  }
 0x174   : > { %v3948_v7 = vpop.f32.mrf.mxu0 }
 0x175   : > { %1605 = vst [vmem:[#allocation2 + $0x11] sm:$0xff] %v4856_v17  ;;  %v4860_v12 = vmax.f32 %v1571_v6, 0.0  ;;  %v1569_v32 = vadd.f32 %v4846_v53, %v1554_v22  ;;  %v1559_v23 = vadd.f32 %v3948_v7, %v1409_v18  ;;  %v1649_v10 = vpack.c.bf16 %v4856_v17, %v1641_v41  ;;  %v4275_v41 = vld [vmem:[%s5247_s3 + $0xd0] sm:$0xff]   ;;  %v4278_v18 = vld [vmem:[%s5247_s3 + $0x80] sm:$0xff]   ;;  %v4277_v6 = vld [vmem:[%s5247_s3 + $0xc8] sm:$0xff]  }
 0x176   : > { %v1538_v35 = vpop.f32.mrf.mxu0  ;;  %v4280_v22 = vld [vmem:[%s5247_s3 + $0x138] sm:$0xff]   ;;  %v4279_v7 = vld [vmem:[%s5247_s3 + $0xc0] sm:$0xff]  }
 0x177   : > { %1608 = vst [vmem:[#allocation2 + $0x41] sm:$0xff] %v4860_v12  ;;  %v4865_v45 = vmax.f32 %v1569_v32, 0.0  ;;  %v1574_v26 = vadd.f32 %v4846_v53, %v1559_v23  ;;  %v1557_v38 = vadd.f32 %v1538_v35, %v1407_v20  ;;  %3966 = vmatprep.mubr.bf16.mxu1 %v1649_v10  ;;  %v2205_v31 = vpack.c.bf16 %v4860_v12, %v4851_v63  ;;  %v4281_v35 = vld [vmem:[%s5247_s3 + $0x178] sm:$0xff]  }
 0x178   : > { %v3949_v37 = vpop.f32.mrf.mxu0 }
 0x179   : > { %1606 = vst [vmem:[#allocation2 + $0x21] sm:$0xff] %v4865_v45  ;;  %v4871_v29 = vmax.f32 %v1574_v26, 0.0  ;;  %v1572_v43 = vadd.f32 %v4846_v53, %v1557_v38  ;;  %v1560_v24 = vadd.f32 %v3949_v37, %v1410_v25  ;;  %v4876_v19 = vpack.c.bf16 %v4851_v63, %v4865_v45  ;;  %v4282_v25 = vld [vmem:[%s5247_s3 + $0x130] sm:$0xff]   ;;  %v4284_v26 = vld [vmem:[%s5247_s3 + $0x128] sm:$0xff]  }
 0x17a   : > { %v1541_v49 = vpop.f32.mrf.mxu0  ;;  %v4905_v60 = vld [vmem:[#allocation2 + $0x30] sm:$0xff] }
 0x17b   : > { %1611 = vst [vmem:[#allocation2 + $0x71] sm:$0xff] %v4871_v29  ;;  %v4882_v30 = vmax.f32 %v1572_v43, 0.0  ;;  %v1575_v34 = vadd.f32 %v4846_v53, %v1560_v24  ;;  %v1558_v40 = vadd.f32 %v1541_v49, %v1408_v11  ;;  %3967 = vmatmul.mubr.bf16.vlgmr.msra.gmra.mxu1 %v4876_v19  ;;  %v4977_v42 = vld [vmem:[#allocation2 + $0x32] sm:$0xff]  ;;  %v4286_v49 = vld [vmem:[%s5247_s3 + $0x120] sm:$0xff]  }
 0x17c   : > { %v1614_v50 = vld [vmem:[#allocation2 + $0x10] sm:$0xff]  ;;  %3999 = vmatpush3.bf16.msra.mxu1 %v5268_v51  ;;  %v4288_v51 = vld [vmem:[%s5247_s3 + $0x118] sm:$0xff]  }
 0x17d   : > { %1609 = vst [vmem:[#allocation2 + $0x51] sm:$0xff] %v4882_v30  ;;  %v4888_v28 = vmax.f32 %v1575_v34, 0.0  ;;  %v1573_v55 = vadd.f32 %v4846_v53, %v1558_v40  ;;  %v1621_v52 = vpack.c.bf16 %v1614_v50, %v5269_v46  ;;  %4000 = vmatprep.subr.bf16.mxu1 %v4266_v48  ;;  %v4894_v57 = vpack.c.bf16 %v4882_v30, %v4860_v12  ;;  %v4907_v56 = vld [vmem:[#allocation2 + $0x12] sm:$0xff]  ;;  %v4285_v40 = vld [vmem:[%s5247_s3 + $0x168] sm:$0xff]  }
 0x17e   : > { %v1904_v47 = vpack.c.bf16 %v4907_v56, %v1896_v58  ;;  %v4927_v62 = vld [vmem:[#allocation2 + $0x40] sm:$0xff]  ;;  %v4283_v37 = vld [vmem:[%s5247_s3 + $0x170] sm:$0xff]   ;;  %v2204_v34 = vpack.c.bf16 %v4865_v45, %v4856_v17  ;;  %v4292_v58 = vld [vmem:[%s5247_s3 + $0x108] sm:$0xff]  }
 0x17f   : > { %1612 = vst [vmem:[#allocation2 + $0x81] sm:$0xff] %v4888_v28  ;;  %v4900_v54 = vmax.f32 %v1573_v55, 0.0  ;;  %3990 = vmatprep.mubr.bf16.mxu0 %v1621_v52  ;;  %3970 = vmatprep.mubr.bf16.mxu1 %v4894_v57  ;;  %v2207_v53 = vpack.c.bf16 %v4888_v28, %v4871_v29  ;;  %v4982_v23 = vld [vmem:[#allocation2 + $0x42] sm:$0xff]  ;;  %v2055_v11 = vpack.c.bf16 %v4927_v62, %v4905_v60  ;;  %v4290_v52 = vld [vmem:[%s5247_s3 + $0x110] sm:$0xff]  }
 0x180   : > { %v1615_v59 = vld [vmem:[#allocation2 + $0x20] sm:$0xff]  ;;  %4001 = vmatpush3.bf16.msra.mxu1 %v4266_v48  ;;  %v4299_v63 = vld [vmem:[%s5247_s3 + $0x1f0] sm:$0xff]  }
 0x181   : > { %1610 = vst [vmem:[#allocation2 + $0x61] sm:$0xff] %v4900_v54  ;;  %v4911_v61 = vpack.c.bf16 %v4905_v60, %v1615_v59  ;;  %4002 = vmatprep.subr.bf16.mxu1 %v4268_v33  ;;  %v4918_v39 = vpack.c.bf16 %v4871_v29, %v4900_v54  ;;  %v2054_v2 = vpack.c.bf16 %v1615_v59, %v1614_v50  ;;  %v1898_v20 = vld [vmem:[#allocation2 + $0x22] sm:$0xff]  ;;  %v4291_v59 = vld [vmem:[%s5247_s3 + $0x150] sm:$0xff]  }
 0x182   : > { %v4942_v13 = vld [vmem:[#allocation2 + $0x70] sm:$0xff]  ;;  %v4980_v32 = vpack.c.bf16 %v4977_v42, %v1898_v20  ;;  %v4287_v45 = vld [vmem:[%s5247_s3 + $0x160] sm:$0xff]   ;;  %v2354_v55 = vpack.c.bf16 %v1898_v20, %v4907_v56  ;;  %v4293_v56 = vld [vmem:[%s5247_s3 + $0x148] sm:$0xff]  }
 0x183   : > { %3991 = vmatmul.mubr.bf16.vlgmr.msra.gmra.mxu0 %v4911_v61  ;;  %3971 = vmatmul.mubr.bf16.gmra.mxu1 %v4918_v39  ;;  %v5007_v24 = vld [vmem:[#allocation2 + $0x72] sm:$0xff]  ;;  %v4294_v60 = vld [vmem:[%s5247_s3 + $0x100] sm:$0xff]  }
 0x184   : > { %4023 = vmatpush3.bf16.msra.mxu0 %v5270_v0  ;;  %v4929_v1 = vld [vmem:[#allocation2 + $0x50] sm:$0xff]  ;;  %4003 = vmatpush3.bf16.msra.mxu1 %v4268_v33  ;;  %v4289_v33 = vld [vmem:[%s5247_s3 + $0x158] sm:$0xff]   ;;  %v2206_v0 = vpack.c.bf16 %v4900_v54, %v4882_v30  ;;  %v2355_v30 = vpack.c.bf16 %v4982_v23, %v4977_v42  ;;  %v4301_v54 = vld [vmem:[%s5247_s3 + $0x1e8] sm:$0xff]  }
 0x185   : > { %4024 = vmatprep.subr.bf16.mxu0 %v4267_v36  ;;  %v4933_v3 = vpack.c.bf16 %v4929_v1, %v4927_v62  ;;  %4014 = vmatprep.mubr.bf16.mxu1 %v1904_v47  ;;  %v4972_v27 = vld [vmem:[#allocation2 + $0x52] sm:$0xff]  ;;  %v4303_v29 = vld [vmem:[%s5247_s3 + $0x1e0] sm:$0xff]  }
 0x186   : > { %4004 = vmatprep.subr.bf16.mxu1 %v4270_v44  ;;  %v4986_v10 = vpack.c.bf16 %v4972_v27, %v4982_v23  ;;  %v5022_v50 = vld [vmem:[#allocation2 + $0x80] sm:$0xff]  ;;  %v4298_v47 = vld [vmem:[%s5247_s3 + $0x1b0] sm:$0xff]   ;;  %v4297_v62 = vld [vmem:[%s5247_s3 + $0x1f8] sm:$0xff]  }
 0x187   : > { %3994 = vmatprep.mubr.bf16.mxu0 %v4933_v3  ;;  %v2057_v17 = vpack.c.bf16 %v5022_v50, %v4942_v13 }
 0x188   : > { %4025 = vmatpush3.bf16.msra.mxu0 %v4267_v36  ;;  %v1619_v8 = vld [vmem:[#allocation2 + $0x60] sm:$0xff]  ;;  %4005 = vmatpush3.bf16.msra.mxu1 %v4270_v44  ;;  %v4296_v36 = vld [vmem:[%s5247_s3 + $0x1b8] sm:$0xff]  }
 0x189   : > { %4026 = vmatprep.subr.bf16.mxu0 %v4269_v4  ;;  %v4945_v9 = vpack.c.bf16 %v4942_v13, %v1619_v8  ;;  %4006 = vmatprep.subr.bf16.mxu1 %v4272_v5  ;;  %v4999_v38 = vld [vmem:[#allocation2 + $0x62] sm:$0xff]  ;;  %v2056_v43 = vpack.c.bf16 %v1619_v8, %v4929_v1 }
 0x18a   : > { %v5011_v48 = vpack.c.bf16 %v5007_v24, %v4999_v38  ;;  %v4295_v44 = vld [vmem:[%s5247_s3 + $0x140] sm:$0xff]   ;;  %v4300_v1 = vld [vmem:[%s5247_s3 + $0x1a8] sm:$0xff]   ;;  %v2356_v12 = vpack.c.bf16 %v4999_v38, %v4972_v27 }
 0x18b   : > { %3995 = vmatmul.mubr.bf16.gmra.mxu0 %v4945_v9  ;;  %v4308_v13 = vld [vmem:[%s5247_s3 + $0x188] sm:$0xff]  }
 0x18c   : > { %4027 = vmatpush3.bf16.msra.mxu0 %v4269_v4  ;;  %4038 = vmatprep.mubr.bf16.mxu0 %v2054_v2  ;;  %v5087_v4 = vld [vmem:[#allocation2 + $0x82] sm:$0xff] }
 0x18d   : > { %4028 = vmatprep.subr.bf16.mxu0 %v4271_v14  ;;  %4007 = vmatpush3.bf16.msra.mxu1 %v4272_v5  ;;  %v4304_v5 = vld [vmem:[%s5247_s3 + $0x198] sm:$0xff]   ;;  %v2357_v8 = vpack.c.bf16 %v5087_v4, %v5007_v24  ;;  %v4309_v2 = vld [vmem:[%s5247_s3 + $0x1c8] sm:$0xff]  }
 0x18e   : > { %4008 = vmatprep.subr.bf16.mxu1 %v4274_v15 }
 0x190   : > { %4029 = vmatpush3.bf16.msra.mxu0 %v4271_v14  ;;  %v4307_v14 = vld [vmem:[%s5247_s3 + $0x1d0] sm:$0xff]  }
 0x191   : > { %4030 = vmatprep.subr.bf16.mxu0 %v4273_v16  ;;  %4009 = vmatpush3.bf16.msra.mxu1 %v4274_v15  ;;  %v4312_v15 = vld [vmem:[%s5247_s3 + $0x238] sm:$0xff]  }
 0x192   : > { %4010 = vmatprep.subr.bf16.mxu1 %v4276_v21 }
 0x194   : > { %4031 = vmatpush3.bf16.msra.mxu0 %v4273_v16  ;;  %v4311_v16 = vld [vmem:[%s5247_s3 + $0x1c0] sm:$0xff]  }
 0x195   : > { %4032 = vmatprep.subr.bf16.mxu0 %v4275_v41  ;;  %4011 = vmatpush3.bf16.msra.mxu1 %v4276_v21  ;;  %v4313_v21 = vld [vmem:[%s5247_s3 + $0x230] sm:$0xff]  }
 0x196   : > { %4012 = vmatprep.subr.bf16.mxu1 %v4278_v18 }
 0x198   : > { %4033 = vmatpush3.bf16.msra.mxu0 %v4275_v41  ;;  %v4314_v41 = vld [vmem:[%s5247_s3 + $0x228] sm:$0xff]  }
 0x199   : > { %4034 = vmatprep.subr.bf16.mxu0 %v4277_v6  ;;  %4013 = vmatpush3.bf16.msra.mxu1 %v4278_v18  ;;  %v2508_v18 = vpack.c.bf16 %v5269_v46, %v5022_v50  ;;  %v4317_v46 = vld [vmem:[%s5247_s3 + $0x210] sm:$0xff]  }
 0x19a   : > { %4046 = vmatprep.subr.bf16.mxu1 %v4280_v22 }
 0x19c   : > { %4035 = vmatpush3.bf16.msra.mxu0 %v4277_v6  ;;  %4015 = vmatmul.mubr.bf16.vlgmr.msra.gmra.mxu1 %v4980_v32 }
 0x19d   : > { %4036 = vmatprep.subr.bf16.mxu0 %v4279_v7  ;;  %4018 = vmatprep.mubr.bf16.mxu1 %v4986_v10 }
 0x19e   : > { %4047 = vmatpush3.bf16.msra.mxu1 %v4280_v22  ;;  %v4319_v22 = vld [vmem:[%s5247_s3 + $0x200] sm:$0xff]  }
 0x19f   : > { %4048 = vmatprep.subr.bf16.mxu1 %v4282_v25 }
 0x1a0   : > { %4037 = vmatpush3.bf16.msra.mxu0 %v4279_v7 }
 0x1a1   : > { %4070 = vmatprep.subr.bf16.mxu0 %v4281_v35 }
 0x1a2   : > { %4049 = vmatpush3.bf16.msra.mxu1 %v4282_v25 }
 0x1a3   : > { %4039 = vmatmul.mubr.bf16.vlgmr.msra.gmra.mxu0 %v2055_v11  ;;  %4050 = vmatprep.subr.bf16.mxu1 %v4284_v26 }
 0x1a4   : > { %4042 = vmatprep.mubr.bf16.mxu0 %v2056_v43  ;;  %4071 = vmatpush3.bf16.msra.mxu0 %v4281_v35 }
 0x1a5   : > { %4072 = vmatprep.subr.bf16.mxu0 %v4283_v37  ;;  %4019 = vmatmul.mubr.bf16.gmra.mxu1 %v5011_v48 }
 0x1a6   : > { %4051 = vmatpush3.bf16.msra.mxu1 %v4284_v26  ;;  %4062 = vmatprep.mubr.bf16.mxu1 %v2204_v34 }
 0x1a7   : > { %4052 = vmatprep.subr.bf16.mxu1 %v4286_v49 }
 0x1a8   : > { %4073 = vmatpush3.bf16.msra.mxu0 %v4283_v37 }
 0x1a9   : > { %4074 = vmatprep.subr.bf16.mxu0 %v4285_v40 }
 0x1aa   : > { %4053 = vmatpush3.bf16.msra.mxu1 %v4286_v49 }
 0x1ab   : > { %4043 = vmatmul.mubr.bf16.gmra.mxu0 %v2057_v17  ;;  %4054 = vmatprep.subr.bf16.mxu1 %v4288_v51 }
 0x1ac   : > { %4075 = vmatpush3.bf16.msra.mxu0 %v4285_v40  ;;  %4086 = vmatprep.mubr.bf16.mxu0 %v2354_v55 }
 0x1ad   : > { %4076 = vmatprep.subr.bf16.mxu0 %v4287_v45 }
 0x1ae   : > { %4055 = vmatpush3.bf16.msra.mxu1 %v4288_v51 }
 0x1af   : > { %4056 = vmatprep.subr.bf16.mxu1 %v4290_v52 }
 0x1b0   : > { %4077 = vmatpush3.bf16.msra.mxu0 %v4287_v45 }
 0x1b1   : > { %4078 = vmatprep.subr.bf16.mxu0 %v4289_v33 }
 0x1b2   : > { %4057 = vmatpush3.bf16.msra.mxu1 %v4290_v52 }
 0x1b3   : > { %4058 = vmatprep.subr.bf16.mxu1 %v4292_v58 }
 0x1b4   : > { %4079 = vmatpush3.bf16.msra.mxu0 %v4289_v33 }
 0x1b5   : > { %4080 = vmatprep.subr.bf16.mxu0 %v4291_v59 }
 0x1b6   : > { %4059 = vmatpush3.bf16.msra.mxu1 %v4292_v58 }
 0x1b7   : > { %4060 = vmatprep.subr.bf16.mxu1 %v4294_v60 }
 0x1b8   : > { %4081 = vmatpush3.bf16.msra.mxu0 %v4291_v59 }
 0x1b9   : > { %4082 = vmatprep.subr.bf16.mxu0 %v4293_v56 }
 0x1ba   : > { %4061 = vmatpush3.bf16.msra.mxu1 %v4294_v60 }
 0x1bb   : > { %4094 = vmatprep.subr.bf16.mxu1 %v4296_v36 }
 0x1bc   : > { %4083 = vmatpush3.bf16.msra.mxu0 %v4293_v56 }
 0x1bd   : > { %4084 = vmatprep.subr.bf16.mxu0 %v4295_v44  ;;  %4063 = vmatmul.mubr.bf16.vlgmr.msra.gmra.mxu1 %v2205_v31  ;;  %v4302_v31 = vld [vmem:[%s5247_s3 + $0x1a0] sm:$0xff]  }
 0x1be   : > { %4066 = vmatprep.mubr.bf16.mxu1 %v2206_v0  ;;  %4095 = vmatpush3.bf16.msra.mxu1 %v4296_v36 }
 0x1bf   : > { %4096 = vmatprep.subr.bf16.mxu1 %v4298_v47 }
 0x1c0   : > { %4085 = vmatpush3.bf16.msra.mxu0 %v4295_v44 }
 0x1c1   : > { %4118 = vmatprep.subr.bf16.mxu0 %v4297_v62 }
 0x1c2   : > { %4097 = vmatpush3.bf16.msra.mxu1 %v4298_v47 }
 0x1c3   : > { %4087 = vmatmul.mubr.bf16.vlgmr.msra.gmra.mxu0 %v2355_v30  ;;  %4098 = vmatprep.subr.bf16.mxu1 %v4300_v1 }
 0x1c4   : > { %4090 = vmatprep.mubr.bf16.mxu0 %v2356_v12  ;;  %4119 = vmatpush3.bf16.msra.mxu0 %v4297_v62 }
 0x1c5   : > { %4120 = vmatprep.subr.bf16.mxu0 %v4299_v63  ;;  %4067 = vmatmul.mubr.bf16.gmra.mxu1 %v2207_v53  ;;  %v4306_v53 = vld [vmem:[%s5247_s3 + $0x190] sm:$0xff]  }
 0x1c6   : > { %4099 = vmatpush3.bf16.msra.mxu1 %v4300_v1  ;;  %4110 = vmatprep.mubr.bf16.mxu1 %v4911_v61  ;;  %v4305_v61 = vld [vmem:[%s5247_s3 + $0x1d8] sm:$0xff]  }
 0x1c7   : > { %4100 = vmatprep.subr.bf16.mxu1 %v4302_v31 }
 0x1c8   : > { %4121 = vmatpush3.bf16.msra.mxu0 %v4299_v63 }
 0x1c9   : > { %4122 = vmatprep.subr.bf16.mxu0 %v4301_v54 }
 0x1ca   : > { %4101 = vmatpush3.bf16.msra.mxu1 %v4302_v31 }
 0x1cb   : > { %4091 = vmatmul.mubr.bf16.gmra.mxu0 %v2357_v8  ;;  %4102 = vmatprep.subr.bf16.mxu1 %v4304_v5 }
 0x1cc   : > { %4123 = vmatpush3.bf16.msra.mxu0 %v4301_v54  ;;  %4134 = vmatprep.mubr.bf16.mxu0 %v4876_v19  ;;  %v4310_v19 = vld [vmem:[%s5247_s3 + $0x180] sm:$0xff]  }
 0x1cd   : > { %4124 = vmatprep.subr.bf16.mxu0 %v4303_v29 }
 0x1ce   : > { %4103 = vmatpush3.bf16.msra.mxu1 %v4304_v5 }
 0x1cf   : > { %4104 = vmatprep.subr.bf16.mxu1 %v4306_v53 }
 0x1d0   : > { %4125 = vmatpush3.bf16.msra.mxu0 %v4303_v29 }
 0x1d1   : > { %4126 = vmatprep.subr.bf16.mxu0 %v4305_v61 }
 0x1d2   : > { %4105 = vmatpush3.bf16.msra.mxu1 %v4306_v53 }
 0x1d3   : > { %4106 = vmatprep.subr.bf16.mxu1 %v4308_v13 }
 0x1d4   : > { %4127 = vmatpush3.bf16.msra.mxu0 %v4305_v61 }
 0x1d5   : > { %4128 = vmatprep.subr.bf16.mxu0 %v4307_v14 }
 0x1d6   : > { %4107 = vmatpush3.bf16.msra.mxu1 %v4308_v13 }
 0x1d7   : > { %4108 = vmatprep.subr.bf16.mxu1 %v4310_v19 }
 0x1d8   : > { %4129 = vmatpush3.bf16.msra.mxu0 %v4307_v14 }
 0x1d9   : > { %4130 = vmatprep.subr.bf16.mxu0 %v4309_v2 }
 0x1da   : > { %4109 = vmatpush3.bf16.msra.mxu1 %v4310_v19 }
 0x1db   : > { %4142 = vmatprep.subr.bf16.mxu1 %v4312_v15 }
 0x1dc   : > { %4131 = vmatpush3.bf16.msra.mxu0 %v4309_v2 }
 0x1dd   : > { %4132 = vmatprep.subr.bf16.mxu0 %v4311_v16  ;;  %4111 = vmatmul.mubr.bf16.vlgmr.msra.gmra.mxu1 %v4933_v3  ;;  %v4315_v3 = vld [vmem:[%s5247_s3 + $0x220] sm:$0xff]  }
 0x1de   : > { %4114 = vmatprep.mubr.bf16.mxu1 %v4945_v9  ;;  %4143 = vmatpush3.bf16.msra.mxu1 %v4312_v15  ;;  %v2654_v9 = vld [vmem:[#allocation2 + $0x91] sm:$0xff] }
 0x1df   : > { %4144 = vmatprep.subr.bf16.mxu1 %v4313_v21  ;;  %v2658_v6 = vpack.c.bf16 %v2654_v9, %v4888_v28  ;;  %v2804_v28 = vld [vmem:[#allocation2 + $0x92] sm:$0xff] }
 0x1e0   : > { %4133 = vmatpush3.bf16.msra.mxu0 %v4311_v16  ;;  %v2808_v20 = vpack.c.bf16 %v2804_v28, %v5087_v4 }
 0x1e2   : > { %4145 = vmatpush3.bf16.msra.mxu1 %v4313_v21 }
 0x1e3   : > { %4135 = vmatmul.mubr.bf16.vlgmr.msra.gmra.mxu0 %v4894_v57  ;;  %4146 = vmatprep.subr.bf16.mxu1 %v4314_v41  ;;  %v4316_v57 = vld [vmem:[%s5247_s3 + $0x218] sm:$0xff]  }
 0x1e4   : > { %4138 = vmatprep.mubr.bf16.mxu0 %v4918_v39  ;;  %v4318_v39 = vld [vmem:[%s5247_s3 + $0x208] sm:$0xff]  }
 0x1e5   : > { %4115 = vmatmul.mubr.bf16.gmra.mxu1 %v2508_v18 }
 0x1e6   : > { %4147 = vmatpush3.bf16.msra.mxu1 %v4314_v41  ;;  %4158 = vmatprep.mubr.bf16.mxu1 %v4980_v32 }
 0x1e7   : > { %4148 = vmatprep.subr.bf16.mxu1 %v4315_v3 }
 0x1ea   : > { %4149 = vmatpush3.bf16.msra.mxu1 %v4315_v3 }
 0x1eb   : > { %4139 = vmatmul.mubr.bf16.gmra.mxu0 %v2658_v6  ;;  %4150 = vmatprep.subr.bf16.mxu1 %v4316_v57 }
 0x1ee   : > { %4151 = vmatpush3.bf16.msra.mxu1 %v4316_v57 }
 0x1ef   : > { %4152 = vmatprep.subr.bf16.mxu1 %v4317_v46 }
 0x1f2   : > { %4153 = vmatpush3.bf16.msra.mxu1 %v4317_v46 }
 0x1f3   : > { %4154 = vmatprep.subr.bf16.mxu1 %v4318_v39 }
 0x1f6   : > { %4155 = vmatpush3.bf16.msra.mxu1 %v4318_v39 }
 0x1f7   : > { %4156 = vmatprep.subr.bf16.mxu1 %v4319_v22 }
 0x1fa   : > { %4157 = vmatpush3.bf16.msra.mxu1 %v4319_v22 }
 0x1fd   : > { %4159 = vmatmul.mubr.bf16.vlgmr.msra.gmra.mxu1 %v4986_v10 }
 0x1fe   : > { %4162 = vmatprep.mubr.bf16.mxu1 %v5011_v48 }
 0x205   : > { %4163 = vmatmul.mubr.bf16.gmra.mxu1 %v2808_v20 }
 0x23b   : > { %v3968_v27 = vpop.f32.mrf.mxu1 }
 0x23d   : > { %v1752_v7 = vpop.f32.mrf.mxu1 }
 0x23f   : > { %v3969_v42 = vpop.f32.mrf.mxu1 }
 0x241   : > { %v1755_v23 = vpop.f32.mrf.mxu1 }
 0x243   : > { %v3992_v32 = vpop.f32.mrf.mxu0  ;;  %v3972_v35 = vpop.f32.mrf.mxu1 }
 0x244   : > { %v1874_v3 = vadd.f32 %v3992_v32, %v3968_v27 }
 0x245   : > { %v1865_v25 = vpop.f32.mrf.mxu0  ;;  %v5155_v38 = vpop.f32.mrf.mxu1 }
 0x246   : > { %v1866_v9 = vadd.f32 %v1865_v25, %v1752_v7 }
 0x247   : > { %v3993_v26 = vpop.f32.mrf.mxu0  ;;  %v5157_v37 = vpop.f32.mrf.mxu1 }
 0x248   : > { %v1877_v39 = vadd.f32 %v3993_v26, %v3969_v42 }
 0x249   : > { %v1868_v11 = vpop.f32.mrf.mxu0  ;;  %v5159_v43 = vpop.f32.mrf.mxu1 }
 0x24a   : > { %v1869_v20 = vadd.f32 %v1868_v11, %v1755_v23 }
 0x24b   : > { %v3996_v10 = vpop.f32.mrf.mxu0 }
 0x24d   : > { %v1881_v48 = vpop.f32.mrf.mxu0 }
 0x24e   : > { %v1882_v7 = vadd.f32 %v1881_v48, %v5155_v38 }
 0x24f   : > { %v5161_v34 = vpop.f32.mrf.mxu0 }
 0x250   : > { %v1893_v23 = vadd.f32 %v5161_v34, %v5157_v37  ;;  %v5198_v37 = vld [vmem:[%s5248_s4] ss:$0 sm:$0xff] }
 0x251   : > { %v5163_v50 = vpop.f32.mrf.mxu0 }
 0x252   : > { %v1885_v38 = vadd.f32 %v5163_v50, %v5159_v43 }
 0x25c   : > { %v4016_v24 = vpop.f32.mrf.mxu1 }
 0x25d   : > { %v2040_v57 = vadd.f32 %v4016_v24, %v1874_v3 }
 0x25e   : > { %v2007_v49 = vpop.f32.mrf.mxu1 }
 0x25f   : > { %v2038_v28 = vadd.f32 %v2007_v49, %v1866_v9 }
 0x260   : > { %v4017_v40 = vpop.f32.mrf.mxu1 }
 0x262   : > { %v2010_v17 = vpop.f32.mrf.mxu1 }
 0x263   : > { %v4040_v51 = vpop.f32.mrf.mxu0 }
 0x264   : > { %v2190_v22 = vadd.f32 %v4040_v51, %v2040_v57 }
 0x265   : > { %v2157_v45 = vpop.f32.mrf.mxu0  ;;  %v4020_v55 = vpop.f32.mrf.mxu1 }
 0x267   : > { %v4041_v52 = vpop.f32.mrf.mxu0  ;;  %v2023_v33 = vpop.f32.mrf.mxu1 }
 0x269   : > { %v2160_v58 = vpop.f32.mrf.mxu0  ;;  %v5165_v59 = vpop.f32.mrf.mxu1 }
 0x26b   : > { %v4044_v60 = vpop.f32.mrf.mxu0  ;;  %v5167_v56 = vpop.f32.mrf.mxu1 }
 0x26c   : > { %5271 = vst [vmem:[#allocation5_spill] sm:$0xff] %v5167_v56  ;;  %v2039_v56 = vadd.f32 %v2010_v17, %v1869_v20 }
 0x26d   : > { %v2173_v44 = vpop.f32.mrf.mxu0 }
 0x26e   : > { %v2189_v25 = vadd.f32 %v2160_v58, %v2039_v56 }
 0x26f   : > { %v5169_v0 = vpop.f32.mrf.mxu0 }
 0x270   : > { %5272 = vst [vmem:[#allocation6_spill] sm:$0xff] %v5169_v0 }
 0x271   : > { %v5171_v1 = vpop.f32.mrf.mxu0 }
 0x272   : > { %5273 = vst [vmem:[#allocation7_spill] sm:$0xff] %v5171_v1  ;;  %v1890_v1 = vadd.f32 %v3996_v10, %v3972_v35 }
 0x273   : > { %v5281_v43 = vld [vmem:[#allocation5_spill] sm:$0xff] }
 0x274   : > { %v2044_v32 = vadd.f32 %v4020_v55, %v1890_v1  ;;  %v2045_v55 = vadd.f32 %v5165_v59, %v1893_v23  ;;  %v2043_v50 = vadd.f32 %v5281_v43, %v1885_v38  ;;  %v3509_v1 = vld [vmem:[%s4403_s20 + $0x31] sm:$0xff]  ;;  %v3514_v43 = vld [vmem:[%s4403_s20 + $0x81] sm:$0xff] }
 0x276   : > { %v2194_v11 = vadd.f32 %v4044_v60, %v2044_v32 }
 0x27d   : > { %v4064_v36 = vpop.f32.mrf.mxu1 }
 0x27f   : > { %v2307_v47 = vpop.f32.mrf.mxu1 }
 0x281   : > { %v4065_v62 = vpop.f32.mrf.mxu1 }
 0x283   : > { %v4088_v30 = vpop.f32.mrf.mxu0  ;;  %v2310_v63 = vpop.f32.mrf.mxu1 }
 0x284   : > { %v2339_v51 = vadd.f32 %v2310_v63, %v2189_v25 }
 0x285   : > { %v2457_v12 = vpop.f32.mrf.mxu0  ;;  %v4068_v31 = vpop.f32.mrf.mxu1 }
 0x287   : > { %v4089_v54 = vpop.f32.mrf.mxu0  ;;  %v5173_v4 = vpop.f32.mrf.mxu1 }
 0x288   : > { %5274 = vst [vmem:[#allocation8_spill] sm:$0xff] %v5173_v4 }
 0x289   : > { %v2460_v5 = vpop.f32.mrf.mxu0  ;;  %v5175_v8 = vpop.f32.mrf.mxu1 }
 0x28a   : > { %5275 = vst [vmem:[#allocation9_spill] sm:$0xff] %v5175_v8  ;;  %v2041_v8 = vadd.f32 %v4017_v40, %v1877_v39  ;;  %v2042_v40 = vadd.f32 %v2023_v33, %v1882_v7  ;;  %v2489_v34 = vadd.f32 %v2460_v5, %v2339_v51 }
 0x28b   : > { %v4092_v29 = vpop.f32.mrf.mxu0  ;;  %v5177_v53 = vpop.f32.mrf.mxu1 }
 0x28c   : > { %5276 = vst [vmem:[#allocation10_spill] sm:$0xff] %v5177_v53  ;;  %v2188_v53 = vadd.f32 %v2157_v45, %v2038_v28  ;;  %v2191_v4 = vadd.f32 %v4041_v52, %v2041_v8  ;;  %v2192_v48 = vadd.f32 %v2173_v44, %v2042_v40  ;;  %v2344_v52 = vadd.f32 %v4068_v31, %v2194_v11 }
 0x28d   : > { %v5179_v13 = vpop.f32.mrf.mxu0 }
 0x28e   : > { %5277 = vst [vmem:[#allocation3_spill] sm:$0xff] %v5179_v13  ;;  %v2338_v27 = vadd.f32 %v2307_v47, %v2188_v53  ;;  %v2341_v42 = vadd.f32 %v4065_v62, %v2191_v4  ;;  %v5280_v47 = vld [vmem:[#allocation6_spill] sm:$0xff]  ;;  %v2494_v44 = vadd.f32 %v4092_v29, %v2344_v52  ;;  %v5283_v4 = vld [vmem:[#allocation7_spill] sm:$0xff] }
 0x28f   : > { %v5181_v19 = vpop.f32.mrf.mxu0  ;;  %v5282_v59 = vld [vmem:[#allocation8_spill] sm:$0xff]  ;;  %v2193_v5 = vadd.f32 %v5283_v4, %v2043_v50 }
 0x290   : > { %5278 = vst [vmem:[#allocation4_spill] sm:$0xff] %v5181_v19  ;;  %v2340_v19 = vadd.f32 %v4064_v36, %v2190_v22  ;;  %v2488_v24 = vadd.f32 %v2457_v12, %v2338_v27  ;;  %v2491_v10 = vadd.f32 %v4089_v54, %v2341_v42  ;;  %v2342_v62 = vadd.f32 %v5282_v59, %v2192_v48  ;;  %v3513_v48 = vld [vmem:[%s4403_s20 + $0x71] sm:$0xff] }
 0x291   : > { %v5183_v15 = vpop.f32.mrf.mxu0 }
 0x292   : > { %5279 = vst [vmem:[#allocation11_spill] sm:$0xff] %v5183_v15  ;;  %v2490_v0 = vadd.f32 %v4088_v30, %v2340_v19 }
 0x293   : > { %v5287_v39 = vld [vmem:[#allocation10_spill] sm:$0xff] }
 0x294   : > { %v2343_v22 = vadd.f32 %v5287_v39, %v2193_v5 }
 0x295   : > { %v5284_v8 = vld [vmem:[#allocation3_spill] sm:$0xff] }
 0x296   : > { %v2492_v53 = vadd.f32 %v5284_v8, %v2342_v62 }
 0x297   : > { %v5286_v57 = vld [vmem:[#allocation4_spill] sm:$0xff] }
 0x29d   : > { %v4112_v61 = vpop.f32.mrf.mxu1 }
 0x29e   : > { %v2641_v26 = vadd.f32 %v4112_v61, %v2490_v0  ;;  %v2195_v0 = vadd.f32 %v5280_v47, %v2045_v55  ;;  %v5285_v61 = vld [vmem:[#allocation9_spill] sm:$0xff] }
 0x29f   : > { %v2608_v14 = vpop.f32.mrf.mxu1 }
 0x2a0   : > { %v2639_v17 = vadd.f32 %v2608_v14, %v2488_v24  ;;  %v2345_v14 = vadd.f32 %v5285_v61, %v2195_v0  ;;  %v5288_v24 = vld [vmem:[#allocation11_spill] sm:$0xff] }
 0x2a1   : > { %v4113_v2 = vpop.f32.mrf.mxu1  ;;  %v2493_v42 = vadd.f32 %v5288_v24, %v2343_v22 }
 0x2a2   : > { %v2642_v60 = vadd.f32 %v4113_v2, %v2491_v10  ;;  %v3507_v2 = vld [vmem:[%s4403_s20 + $0x11] sm:$0xff] }
 0x2a3   : > { %v4136_v16 = vpop.f32.mrf.mxu0  ;;  %v2611_v21 = vpop.f32.mrf.mxu1 }
 0x2a4   : > { %v2791_v45 = vadd.f32 %v4136_v16, %v2641_v26  ;;  %v2640_v12 = vadd.f32 %v2611_v21, %v2489_v34 }
 0x2a5   : > { %v2758_v41 = vpop.f32.mrf.mxu0  ;;  %v4116_v18 = vpop.f32.mrf.mxu1 }
 0x2a6   : > { %v2789_v33 = vadd.f32 %v2758_v41, %v2639_v17  ;;  %v2645_v19 = vadd.f32 %v4116_v18, %v2494_v44 }
 0x2a7   : > { %v4137_v6 = vpop.f32.mrf.mxu0  ;;  %v5185_v46 = vpop.f32.mrf.mxu1 }
 0x2a8   : > { %v2792_v63 = vadd.f32 %v4137_v6, %v2642_v60  ;;  %v2495_v6 = vadd.f32 %v5286_v57, %v2345_v14  ;;  %v2643_v20 = vadd.f32 %v5185_v46, %v2492_v53  ;;  %v3511_v60 = vld [vmem:[%s4403_s20 + $0x51] sm:$0xff] }
 0x2a9   : > { %v2761_v13 = vpop.f32.mrf.mxu0  ;;  %v5187_v15 = vpop.f32.mrf.mxu1 }
 0x2aa   : > { %v2790_v16 = vadd.f32 %v2761_v13, %v2640_v12  ;;  %v3510_v13 = vld [vmem:[%s4403_s20 + $0x41] sm:$0xff]  ;;  %v2646_v46 = vadd.f32 %v5187_v15, %v2495_v6 }
 0x2ab   : > { %v4140_v49 = vpop.f32.mrf.mxu0  ;;  %v2627_v35 = vpop.f32.mrf.mxu1 }
 0x2ac   : > { %v2795_v28 = vadd.f32 %v4140_v49, %v2645_v19  ;;  %v3508_v49 = vld [vmem:[%s4403_s20 + $0x21] sm:$0xff]  ;;  %v2644_v38 = vadd.f32 %v2627_v35, %v2493_v42 }
 0x2ad   : > { %v2774_v56 = vpop.f32.mrf.mxu0 }
 0x2ae   : > { %v2793_v26 = vadd.f32 %v2774_v56, %v2643_v20 }
 0x2af   : > { %v4141_v41 = vpop.f32.mrf.mxu0 }
 0x2b0   : > { %v2796_v17 = vadd.f32 %v4141_v41, %v2646_v46 }
 0x2b1   : > { %v2777_v11 = vpop.f32.mrf.mxu0 }
 0x2bd   : > { %v4160_v58 = vpop.f32.mrf.mxu1 }
 0x2be   : > { %v2941_v36 = vadd.f32 %v4160_v58, %v2791_v45 }
 0x2bf   : > { %v2908_v30 = vpop.f32.mrf.mxu1 }
 0x2c0   : > { %v2956_v31 = vadd.f32 %v5198_v37, %v2941_v36  ;;  %v2939_v54 = vadd.f32 %v2908_v30, %v2789_v33  ;;  %v2794_v33 = vadd.f32 %v2777_v11, %v2644_v38  ;;  %v3512_v30 = vld [vmem:[%s4403_s20 + $0x61] sm:$0xff] }
 0x2c1   : > { %v4161_v29 = vpop.f32.mrf.mxu1 }
 0x2c2   : > { %v2972_v3 = vadd.f32 %v3509_v1, %v2956_v31  ;;  %v2954_v9 = vadd.f32 %v5198_v37, %v2939_v54  ;;  %v2942_v21 = vadd.f32 %v4161_v29, %v2792_v63 }
 0x2c3   : > { %v2911_v18 = vpop.f32.mrf.mxu1 }
 0x2c4   : > { %v2980_v27 = vmax.f32 %v2972_v3, 0.0  ;;  %v2970_v7 = vadd.f32 %v3507_v2, %v2954_v9  ;;  %v2957_v32 = vadd.f32 %v5198_v37, %v2942_v21  ;;  %v2940_v25 = vadd.f32 %v2911_v18, %v2790_v16 }
 0x2c5   : > { %v4164_v23 = vpop.f32.mrf.mxu1 }
 0x2c6   : > { %2988 = vst [vmem:[%s5217_s6 + $0x10] sm:$0xff] %v2980_v27  ;;  %v2978_v40 = vmax.f32 %v2970_v7, 0.0  ;;  %v2973_v10 = vadd.f32 %v3510_v13, %v2957_v32  ;;  %v2955_v51 = vadd.f32 %v5198_v37, %v2940_v25  ;;  %v2945_v45 = vadd.f32 %v4164_v23, %v2795_v28 }
 0x2c7   : > { %v2924_v55 = vpop.f32.mrf.mxu1 }
 0x2c8   : > { %2986 = vst [vmem:[%s5217_s6] sm:$0xff] %v2978_v40  ;;  %v2981_v52 = vmax.f32 %v2973_v10, 0.0  ;;  %v2971_v15 = vadd.f32 %v3508_v49, %v2955_v51  ;;  %v2960_v58 = vadd.f32 %v5198_v37, %v2945_v45  ;;  %v2943_v34 = vadd.f32 %v2924_v55, %v2793_v26 }
 0x2c9   : > { %v4165_v56 = vpop.f32.mrf.mxu1 }
 0x2ca   : > { %2989 = vst [vmem:[%s5217_s6 + $0x18] sm:$0xff] %v2981_v52  ;;  %v2979_v36 = vmax.f32 %v2971_v15, 0.0  ;;  %v2976_v47 = vadd.f32 %v3513_v48, %v2960_v58  ;;  %v2958_v35 = vadd.f32 %v5198_v37, %v2943_v34  ;;  %v2946_v0 = vadd.f32 %v4165_v56, %v2796_v17 }
 0x2cb   : > { %v2927_v50 = vpop.f32.mrf.mxu1 }
 0x2cc   : > { %2987 = vst [vmem:[%s5217_s6 + $0x8] sm:$0xff] %v2979_v36  ;;  %v2984_v44 = vmax.f32 %v2976_v47, 0.0  ;;  %v2974_v59 = vadd.f32 %v3511_v60, %v2958_v35  ;;  %v2961_v62 = vadd.f32 %v5198_v37, %v2946_v0  ;;  %v2944_v1 = vadd.f32 %v2927_v50, %v2794_v33 }
 0x2ce   : > { %2992 = vst [vmem:[%s5217_s6 + $0x30] sm:$0xff] %v2984_v44  ;;  %v2982_v63 = vmax.f32 %v2974_v59, 0.0  ;;  %v2977_v12 = vadd.f32 %v3514_v43, %v2961_v62  ;;  %v2959_v31 = vadd.f32 %v5198_v37, %v2944_v1 }
 0x2d0   : > { %2990 = vst [vmem:[%s5217_s6 + $0x20] sm:$0xff] %v2982_v63  ;;  %v2985_v54 = vmax.f32 %v2977_v12, 0.0  ;;  %v2975_v4 = vadd.f32 %v3512_v30, %v2959_v31 }
 0x2d2   : > { %2993 = vst [vmem:[%s5217_s6 + $0x38] sm:$0xff] %v2985_v54  ;;  %v2983_v5 = vmax.f32 %v2975_v4, 0.0 }
 0x2d4   : > { %2991 = vst [vmem:[%s5217_s6 + $0x28] sm:$0xff] %v2983_v5 }
 0x2d5 PF: > { %s15_s18 = sadd.s32 1, %s4326_s18  }
 0x2d6   : > { %p12_p4 = scmp.ge.s32.totalorder %s15_s18, 4  }
 0x2d8   :  { %14 = sbr.rel (!%p12_p4) target bundleno = 1 (0x1), region = 90 }

</bundles_post_ra>
